<compile_context>
chip_gen: v7x
topology: tpu7x:2x2x1
jax: 0.10.0
libtpu: 0.0.40
codegen_flags: <defaults>
</compile_context>

<pallas_src>
import functools

import jax
import jax.numpy as jnp
from jax.experimental import pallas as pl
from jax.experimental.pallas import tpu as pltpu


K1, S1 = 8, 4     # conv1: kernel 8, stride 4
K2, S2 = 4, 2     # conv2: kernel 4, stride 2
K3, S3 = 3, 1     # conv3: kernel 3, stride 1


# ----------------------------------------------------------------------------
# Fused DQN forward kernel: one batch tile per grid step, all layers in VMEM.
# Activation layout inside the kernel: [spatial..., batch(tb), channels].
# ----------------------------------------------------------------------------
def _dqn_fused_kernel(x_ref, w1_ref, b1_ref, w2_ref, b2_ref, w3_ref, b3_ref,
                      f1w_ref, f1b_ref, f2w_ref, f2b_ref, out_ref,
                      *, tb, ho1, ho2, compute_dtype):
    f32 = jnp.float32
    x = x_ref[...]                                     # [hb, hb, tb, 16C]

    # ---- conv1 (k=8, s=4): stride-1 2x2 conv over the 4x4 space-to-depth input.
    # The four kernel-position windows are concatenated along K -> a single
    # [ho1^2*tb, 4*16C] x [4*16C, 32] MXU matmul (K=256 for C=4).
    m1 = ho1 * ho1 * tb
    wins = []
    for bi in range(2):
        for bj in range(2):
            win = x[bi:bi + ho1, bj:bj + ho1]          # [ho1, ho1, tb, 16C]
            wins.append(win.reshape(m1, win.shape[-1]))
    x1 = jnp.concatenate(wins, axis=-1)                # [m1, 4*16C]
    h1 = jnp.dot(x1, w1_ref[...], preferred_element_type=f32) + b1_ref[...]
    h1 = jnp.maximum(h1, 0.0).astype(compute_dtype)    # [m1, 32]
    oc1 = h1.shape[-1]
    h1 = h1.reshape(ho1, ho1, tb, oc1)                 # leading-dim split (free)

    # ---- conv2 (k=4, s=2): im2col via static leading-dim gathers (batch lives
    # on the sublane axis so each gathered piece is a whole [tb, 32] tile),
    # fused along K into one [ho2^2*tb, 512] x [512, 64] matmul.
    rows = []
    for p in range(ho2):
        for q in range(ho2):
            pieces = [h1[S2 * p + i, S2 * q + j]       # [tb, oc1]
                      for i in range(K2) for j in range(K2)]
            rows.append(jnp.concatenate(pieces, axis=-1))      # [tb, 16*oc1]
    x2 = jnp.concatenate(rows, axis=0)                 # [ho2^2*tb, 512]
    h2 = jnp.dot(x2, w2_ref[...], preferred_element_type=f32) + b2_ref[...]
    h2 = jnp.maximum(h2, 0.0).astype(compute_dtype)    # [ho2^2*tb, 64]
    oc2 = h2.shape[-1]
    h2 = h2.reshape(ho2 * ho2, tb, oc2)                # leading-dim split (free)

    # ---- conv3 (k=3, s=1, 3x3 -> 1x1): the whole receptive field flattens into
    # one [tb, 576] x [576, 64] matmul.
    x3 = jnp.concatenate([h2[s] for s in range(ho2 * ho2)], axis=-1)  # [tb, 576]
    h3 = jnp.dot(x3, w3_ref[...], preferred_element_type=f32) + b3_ref[...]
    h3 = jnp.maximum(h3, 0.0).astype(compute_dtype)    # [tb, 64]

    # ---- fc1 + ReLU ----
    h4 = jnp.dot(h3, f1w_ref[...], preferred_element_type=f32) + f1b_ref[...]
    h4 = jnp.maximum(h4, 0.0).astype(compute_dtype)    # [tb, 512]

    # ---- fc2 (output zero-padded to 128 lanes -> one unmasked lane-dense store)
    q_out = jnp.dot(h4, f2w_ref[...], preferred_element_type=f32) + f2b_ref[...]
    out_ref[...] = q_out.astype(out_ref.dtype)


# ----------------------------------------------------------------------------
# One-time weight re-packing (batch-size independent).
# ----------------------------------------------------------------------------
def prepare_params(params, *, compute_dtype=jnp.bfloat16):
    cdt = compute_dtype
    c1_w, c1_b = params["c1_w"], params["c1_b"]        # [32, C, 8, 8], [32]
    c2_w, c2_b = params["c2_w"], params["c2_b"]        # [64, 32, 4, 4]
    c3_w, c3_b = params["c3_w"], params["c3_b"]        # [64, 64, 3, 3]
    f1_w, f1_b = params["f1_w"], params["f1_b"]        # [512, conv_out]
    f2_w, f2_b = params["f2_w"], params["f2_b"]        # [n_actions, 512]

    oc1, C, k1, _ = c1_w.shape
    assert k1 == K1
    # conv1 weight: K axis ordered (bi, bj, u, v, c) to match the in-kernel
    # concatenation of the four 2x2 windows of the 4x4-blocked input.
    w1 = c1_w.reshape(oc1, C, 2, S1, 2, S1)            # (oc, c, bi, u, bj, v)
    w1 = jnp.transpose(w1, (2, 4, 3, 5, 1, 0)).reshape(4 * S1 * S1 * C, oc1)

    oc2, c2in, k2, _ = c2_w.shape
    w2 = jnp.transpose(c2_w, (2, 3, 1, 0)).reshape(k2 * k2 * c2in, oc2)  # (i,j,c)

    oc3, c3in, k3, _ = c3_w.shape
    w3 = jnp.transpose(c3_w, (2, 3, 1, 0)).reshape(k3 * k3 * c3in, oc3)  # (p,q,c)

    # Fused kernel assumes the conv stack ends at a 1x1 spatial map, so PyTorch's
    # .view(B, -1) flatten is exactly the channel axis.
    # TODO(synk): generalize the final flatten for inputs giving >1x1 conv output.
    assert f1_w.shape[1] == oc3, "fused kernel assumes a 1x1 final conv map"

    n_actions = f2_w.shape[0]
    n_pad = ((n_actions + 127) // 128) * 128
    f2w_pad = jnp.zeros((f2_w.shape[1], n_pad), f2_w.dtype).at[:, :n_actions].set(f2_w.T)
    f2b_pad = jnp.zeros((1, n_pad), jnp.float32).at[:, :n_actions].set(f2_b)

    return dict(
        w1=w1.astype(cdt), b1=c1_b.reshape(1, -1).astype(jnp.float32),
        w2=w2.astype(cdt), b2=c2_b.reshape(1, -1).astype(jnp.float32),
        w3=w3.astype(cdt), b3=c3_b.reshape(1, -1).astype(jnp.float32),
        f1_w=f1_w.T.astype(cdt), f1_b=f1_b.reshape(1, -1).astype(jnp.float32),
        f2_w=f2w_pad.astype(cdt), f2_b=f2b_pad,
    )


def _pick_tb(batch):
    # tb must be a multiple of 8 (batch rides the sublane axis).  Prefer >=2 grid
    # steps so both v7x TensorCores get work; cap tb to bound the vreg/VMEM
    # pressure of the conv1 im2col value.
    if batch <= 8:
        return 8
    tb = (batch // 2) // 8 * 8
    return max(8, min(64, tb))


# ----------------------------------------------------------------------------
# Forward wrapper: one pallas_call for the whole network.
# ----------------------------------------------------------------------------
def dqn_forward(prepped, x, *, n_actions, tb=None, compute_dtype=jnp.bfloat16):
    B, C, H, W = x.shape
    assert H == W and (H - K1) % S1 == 0
    ho1 = (H - K1) // S1 + 1
    ho2 = (ho1 - K2) // S2 + 1
    ho3 = (ho2 - K3) // S3 + 1
    assert ho3 == 1, "fused kernel assumes a 1x1 final conv map"
    hb = H // S1

    if tb is None:
        tb = _pick_tb(B)
    assert tb % 8 == 0
    b_pad = ((B + tb - 1) // tb) * tb

    # Module-boundary layout change (pure XLA): NCHW -> spatial-major with the
    # batch on the sublane axis and channels space-to-depth-blocked by conv1's
    # stride, so every in-kernel gather is a static leading-dim slice.
    # TODO(synk): at large batch this transpose is an extra HBM round trip; feed
    # the blocked layout from upstream to remove it.
    xb = jnp.transpose(x, (2, 3, 0, 1))                       # [H, W, B, C]
    xb = xb.reshape(hb, S1, hb, S1, B, C)
    xb = xb.transpose(0, 2, 4, 1, 3, 5).reshape(hb, hb, B, S1 * S1 * C)
    if b_pad != B:
        xb = jnp.pad(xb, ((0, 0), (0, 0), (0, b_pad - B), (0, 0)))
    xb = xb.astype(compute_dtype)

    n_pad = prepped["f2_w"].shape[-1]

    def invariant_spec(a):
        nd = a.ndim
        return pl.BlockSpec(a.shape, lambda i, _nd=nd: (0,) * _nd,
                            pipeline_mode=pl.Buffered(1))

    weights = (prepped["w1"], prepped["b1"], prepped["w2"], prepped["b2"],
               prepped["w3"], prepped["b3"], prepped["f1_w"], prepped["f1_b"],
               prepped["f2_w"], prepped["f2_b"])

    in_specs = [pl.BlockSpec((hb, hb, tb, S1 * S1 * C), lambda i: (0, 0, i, 0))]
    in_specs += [invariant_spec(a) for a in weights]

    kernel = functools.partial(_dqn_fused_kernel, tb=tb, ho1=ho1, ho2=ho2,
                               compute_dtype=compute_dtype)
    out = pl.pallas_call(
        kernel,
        grid=(b_pad // tb,),
        in_specs=in_specs,
        out_specs=pl.BlockSpec((tb, n_pad), lambda i: (i, 0)),
        out_shape=jax.ShapeDtypeStruct((b_pad, n_pad), jnp.float32),
        compiler_params=pltpu.CompilerParams(
            dimension_semantics=("parallel",),
            vmem_limit_bytes=48 * 1024 * 1024,
        ),
    )(xb, *weights)
    return out[:B, :n_actions]


# ----------------------------------------------------------------------------
# Plain-JAX reference of the PyTorch module (correctness checking only).
# ----------------------------------------------------------------------------
def dqn_reference(params, x):
    def conv(h, w, b, stride):
        out = jax.lax.conv_general_dilated(
            h, w, (stride, stride), "VALID",
            dimension_numbers=("NCHW", "OIHW", "NCHW"))
        return out + b.reshape(1, -1, 1, 1)

    h = jax.nn.relu(conv(x, params["c1_w"], params["c1_b"], 4))
    h = jax.nn.relu(conv(h, params["c2_w"], params["c2_b"], 2))
    h = jax.nn.relu(conv(h, params["c3_w"], params["c3_b"], 1))
    h = h.reshape(x.shape[0], -1)
    h = jax.nn.relu(h @ params["f1_w"].T + params["f1_b"])
    return h @ params["f2_w"].T + params["f2_b"]


# ----------------------------------------------------------------------------
# Deterministic synthetic weights with the exact DQN shapes.
# ----------------------------------------------------------------------------
def init_params(key, input_shape, n_actions, spatial):
    C, H, W = input_shape[0], spatial, spatial
    keys = jax.random.split(key, 10)

    def glorot(k, shape, fan_in):
        return jax.random.normal(k, shape, jnp.float32) / jnp.sqrt(float(fan_in))

    c1_w = glorot(keys[0], (32, C, 8, 8), C * 8 * 8)
    c1_b = glorot(keys[1], (32,), C * 8 * 8)
    c2_w = glorot(keys[2], (64, 32, 4, 4), 32 * 4 * 4)
    c2_b = glorot(keys[3], (64,), 32 * 4 * 4)
    c3_w = glorot(keys[4], (64, 64, 3, 3), 64 * 3 * 3)
    c3_b = glorot(keys[5], (64,), 64 * 3 * 3)

    ho = (H - 8) // 4 + 1; ho = (ho - 4) // 2 + 1; ho = (ho - 3) // 1 + 1
    wo = (W - 8) // 4 + 1; wo = (wo - 4) // 2 + 1; wo = (wo - 3) // 1 + 1
    conv_out_size = 64 * ho * wo

    f1_w = glorot(keys[6], (512, conv_out_size), conv_out_size)
    f1_b = glorot(keys[7], (512,), conv_out_size)
    f2_w = glorot(keys[8], (n_actions, 512), 512)
    f2_b = glorot(keys[9], (n_actions,), 512)

    return dict(c1_w=c1_w, c1_b=c1_b, c2_w=c2_w, c2_b=c2_b, c3_w=c3_w, c3_b=c3_b,
                f1_w=f1_w, f1_b=f1_b, f2_w=f2_w, f2_b=f2_b)


if __name__ == "__main__":
    # Smallest shapes consistent with the module:
    #   input_shape = (4, 36, 36), n_actions = 4
    #   36 -(k8,s4)-> 8 -(k4,s2)-> 3 -(k3,s1)-> 1  => conv_out_size = 64
    C, S, n_actions = 4, 36, 4
    key = jax.random.PRNGKey(0)
    k_param, k_x = jax.random.split(key)

    params = init_params(k_param, (C, S, S), n_actions, S)
    prepped = prepare_params(params)
    fwd = jax.jit(functools.partial(dqn_forward, n_actions=n_actions))

    # B=2: single grid step (batch padded to one sublane-aligned tile).
    # B=16: two grid steps (tb=8), exercising the "parallel" grid axis.
    for B in (2, 16):
        x = jax.random.normal(jax.random.fold_in(k_x, B), (B, C, S, S), jnp.float32)
        q = fwd(prepped, x)
        jax.block_until_ready(q)
        assert q.shape == (B, n_actions), q.shape

        q_ref = dqn_reference(params, x)
        err = float(jnp.max(jnp.abs(q - q_ref)))
        tol = 5e-2 * (1.0 + float(jnp.max(jnp.abs(q_ref))))
        assert err < tol, (B, err, tol)

    print("KERNEL_OK")
</pallas_src>

<mosaic_0001>
module attributes {stable_mosaic.version = 11 : i64} {
  func.func @_dqn_fused_kernel(%arg0: i32, %arg1: memref<9x9x8x64xbf16, #tpu.memory_space<vmem>>, %arg2: memref<256x32xbf16, #tpu.memory_space<vmem>>, %arg3: memref<1x32xf32, #tpu.memory_space<vmem>>, %arg4: memref<512x64xbf16, #tpu.memory_space<vmem>>, %arg5: memref<1x64xf32, #tpu.memory_space<vmem>>, %arg6: memref<576x64xbf16, #tpu.memory_space<vmem>>, %arg7: memref<1x64xf32, #tpu.memory_space<vmem>>, %arg8: memref<64x512xbf16, #tpu.memory_space<vmem>>, %arg9: memref<1x512xf32, #tpu.memory_space<vmem>>, %arg10: memref<512x128xbf16, #tpu.memory_space<vmem>>, %arg11: memref<1x128xf32, #tpu.memory_space<vmem>>, %arg12: memref<8x128xf32, #tpu.memory_space<vmem>>) attributes {dimension_semantics = [#tpu.dimension_semantics<parallel>], iteration_bounds = array<i64: 1>, scalar_prefetch = 0 : i64, scratch_operands = 0 : i64, tpu.core_type = #tpu.core_type<tc>, window_params = [{transform_indices = @transform_0, window_bounds = array<i64: 9, 9, 8, 64>}, {pipeline_mode = #tpu.pipeline_mode<synchronous>, transform_indices = @transform_1, window_bounds = array<i64: 256, 32>}, {pipeline_mode = #tpu.pipeline_mode<synchronous>, transform_indices = @transform_2, window_bounds = array<i64: 1, 32>}, {pipeline_mode = #tpu.pipeline_mode<synchronous>, transform_indices = @transform_3, window_bounds = array<i64: 512, 64>}, {pipeline_mode = #tpu.pipeline_mode<synchronous>, transform_indices = @transform_4, window_bounds = array<i64: 1, 64>}, {pipeline_mode = #tpu.pipeline_mode<synchronous>, transform_indices = @transform_5, window_bounds = array<i64: 576, 64>}, {pipeline_mode = #tpu.pipeline_mode<synchronous>, transform_indices = @transform_6, window_bounds = array<i64: 1, 64>}, {pipeline_mode = #tpu.pipeline_mode<synchronous>, transform_indices = @transform_7, window_bounds = array<i64: 64, 512>}, {pipeline_mode = #tpu.pipeline_mode<synchronous>, transform_indices = @transform_8, window_bounds = array<i64: 1, 512>}, {pipeline_mode = #tpu.pipeline_mode<synchronous>, transform_indices = @transform_9, window_bounds = array<i64: 512, 128>}, {pipeline_mode = #tpu.pipeline_mode<synchronous>, transform_indices = @transform_10, window_bounds = array<i64: 1, 128>}, {transform_indices = @transform_11, window_bounds = array<i64: 8, 128>}]} {
    %c0 = arith.constant 0 : index
    %c0_0 = arith.constant 0 : index
    %c0_1 = arith.constant 0 : index
    %c0_2 = arith.constant 0 : index
    %0 = vector.load %arg1[%c0, %c0_0, %c0_1, %c0_2] : memref<9x9x8x64xbf16, #tpu.memory_space<vmem>>, vector<9x9x8x64xbf16>
    %1 = vector.extract_strided_slice %0 {offsets = [0, 0, 0, 0], sizes = [8, 8, 8, 64], strides = [1, 1, 1, 1]} : vector<9x9x8x64xbf16> to vector<8x8x8x64xbf16>
    %2 = vector.shape_cast %1 : vector<8x8x8x64xbf16> to vector<512x64xbf16>
    %3 = vector.extract_strided_slice %0 {offsets = [0, 1, 0, 0], sizes = [8, 8, 8, 64], strides = [1, 1, 1, 1]} : vector<9x9x8x64xbf16> to vector<8x8x8x64xbf16>
    %4 = vector.shape_cast %3 : vector<8x8x8x64xbf16> to vector<512x64xbf16>
    %5 = vector.extract_strided_slice %0 {offsets = [1, 0, 0, 0], sizes = [8, 8, 8, 64], strides = [1, 1, 1, 1]} : vector<9x9x8x64xbf16> to vector<8x8x8x64xbf16>
    %6 = vector.shape_cast %5 : vector<8x8x8x64xbf16> to vector<512x64xbf16>
    %7 = vector.extract_strided_slice %0 {offsets = [1, 1, 0, 0], sizes = [8, 8, 8, 64], strides = [1, 1, 1, 1]} : vector<9x9x8x64xbf16> to vector<8x8x8x64xbf16>
    %8 = vector.shape_cast %7 : vector<8x8x8x64xbf16> to vector<512x64xbf16>
    %9 = tpu.concatenate %2, %4, %6, %8 in 1 : vector<512x64xbf16>, vector<512x64xbf16>, vector<512x64xbf16>, vector<512x64xbf16> -> vector<512x256xbf16>
    %c0_3 = arith.constant 0 : index
    %c0_4 = arith.constant 0 : index
    %10 = vector.load %arg2[%c0_3, %c0_4] : memref<256x32xbf16, #tpu.memory_space<vmem>>, vector<256x32xbf16>
    %cst = arith.constant dense<0.000000e+00> : vector<512x32xf32>
    %11 = tpu.matmul %9, %10, %cst {dimension_numbers = #tpu.dot_dimension_numbers<[1], [0], [0], [1], [0, 0, 1, 1], [], []>} : vector<512x256xbf16>, vector<256x32xbf16>, vector<512x32xf32> -> vector<512x32xf32>
    %c0_5 = arith.constant 0 : index
    %c0_6 = arith.constant 0 : index
    %12 = vector.load %arg3[%c0_5, %c0_6] : memref<1x32xf32, #tpu.memory_space<vmem>>, vector<1x32xf32>
    %13 = vector.broadcast %12 : vector<1x32xf32> to vector<512x32xf32>
    %14 = arith.addf %11, %13 : vector<512x32xf32>
    %cst_7 = arith.constant 0.000000e+00 : f32
    %15 = vector.broadcast %cst_7 : f32 to vector<512x32xf32>
    %16 = arith.maximumf %14, %15 : vector<512x32xf32>
    %17 = arith.truncf %16 : vector<512x32xf32> to vector<512x32xbf16>
    %18 = vector.shape_cast %17 : vector<512x32xbf16> to vector<8x8x8x32xbf16>
    %19 = vector.extract_strided_slice %18 {offsets = [0, 0, 0, 0], sizes = [1, 1, 8, 32], strides = [1, 1, 1, 1]} : vector<8x8x8x32xbf16> to vector<1x1x8x32xbf16>
    %20 = vector.shape_cast %19 : vector<1x1x8x32xbf16> to vector<8x32xbf16>
    %21 = vector.extract_strided_slice %18 {offsets = [0, 1, 0, 0], sizes = [1, 1, 8, 32], strides = [1, 1, 1, 1]} : vector<8x8x8x32xbf16> to vector<1x1x8x32xbf16>
    %22 = vector.shape_cast %21 : vector<1x1x8x32xbf16> to vector<8x32xbf16>
    %23 = vector.extract_strided_slice %18 {offsets = [0, 2, 0, 0], sizes = [1, 1, 8, 32], strides = [1, 1, 1, 1]} : vector<8x8x8x32xbf16> to vector<1x1x8x32xbf16>
    %24 = vector.shape_cast %23 : vector<1x1x8x32xbf16> to vector<8x32xbf16>
    %25 = vector.extract_strided_slice %18 {offsets = [0, 3, 0, 0], sizes = [1, 1, 8, 32], strides = [1, 1, 1, 1]} : vector<8x8x8x32xbf16> to vector<1x1x8x32xbf16>
    %26 = vector.shape_cast %25 : vector<1x1x8x32xbf16> to vector<8x32xbf16>
    %27 = vector.extract_strided_slice %18 {offsets = [1, 0, 0, 0], sizes = [1, 1, 8, 32], strides = [1, 1, 1, 1]} : vector<8x8x8x32xbf16> to vector<1x1x8x32xbf16>
    %28 = vector.shape_cast %27 : vector<1x1x8x32xbf16> to vector<8x32xbf16>
    %29 = vector.extract_strided_slice %18 {offsets = [1, 1, 0, 0], sizes = [1, 1, 8, 32], strides = [1, 1, 1, 1]} : vector<8x8x8x32xbf16> to vector<1x1x8x32xbf16>
    %30 = vector.shape_cast %29 : vector<1x1x8x32xbf16> to vector<8x32xbf16>
    %31 = vector.extract_strided_slice %18 {offsets = [1, 2, 0, 0], sizes = [1, 1, 8, 32], strides = [1, 1, 1, 1]} : vector<8x8x8x32xbf16> to vector<1x1x8x32xbf16>
    %32 = vector.shape_cast %31 : vector<1x1x8x32xbf16> to vector<8x32xbf16>
    %33 = vector.extract_strided_slice %18 {offsets = [1, 3, 0, 0], sizes = [1, 1, 8, 32], strides = [1, 1, 1, 1]} : vector<8x8x8x32xbf16> to vector<1x1x8x32xbf16>
    %34 = vector.shape_cast %33 : vector<1x1x8x32xbf16> to vector<8x32xbf16>
    %35 = vector.extract_strided_slice %18 {offsets = [2, 0, 0, 0], sizes = [1, 1, 8, 32], strides = [1, 1, 1, 1]} : vector<8x8x8x32xbf16> to vector<1x1x8x32xbf16>
    %36 = vector.shape_cast %35 : vector<1x1x8x32xbf16> to vector<8x32xbf16>
    %37 = vector.extract_strided_slice %18 {offsets = [2, 1, 0, 0], sizes = [1, 1, 8, 32], strides = [1, 1, 1, 1]} : vector<8x8x8x32xbf16> to vector<1x1x8x32xbf16>
    %38 = vector.shape_cast %37 : vector<1x1x8x32xbf16> to vector<8x32xbf16>
    %39 = vector.extract_strided_slice %18 {offsets = [2, 2, 0, 0], sizes = [1, 1, 8, 32], strides = [1, 1, 1, 1]} : vector<8x8x8x32xbf16> to vector<1x1x8x32xbf16>
    %40 = vector.shape_cast %39 : vector<1x1x8x32xbf16> to vector<8x32xbf16>
    %41 = vector.extract_strided_slice %18 {offsets = [2, 3, 0, 0], sizes = [1, 1, 8, 32], strides = [1, 1, 1, 1]} : vector<8x8x8x32xbf16> to vector<1x1x8x32xbf16>
    %42 = vector.shape_cast %41 : vector<1x1x8x32xbf16> to vector<8x32xbf16>
    %43 = vector.extract_strided_slice %18 {offsets = [3, 0, 0, 0], sizes = [1, 1, 8, 32], strides = [1, 1, 1, 1]} : vector<8x8x8x32xbf16> to vector<1x1x8x32xbf16>
    %44 = vector.shape_cast %43 : vector<1x1x8x32xbf16> to vector<8x32xbf16>
    %45 = vector.extract_strided_slice %18 {offsets = [3, 1, 0, 0], sizes = [1, 1, 8, 32], strides = [1, 1, 1, 1]} : vector<8x8x8x32xbf16> to vector<1x1x8x32xbf16>
    %46 = vector.shape_cast %45 : vector<1x1x8x32xbf16> to vector<8x32xbf16>
    %47 = vector.extract_strided_slice %18 {offsets = [3, 2, 0, 0], sizes = [1, 1, 8, 32], strides = [1, 1, 1, 1]} : vector<8x8x8x32xbf16> to vector<1x1x8x32xbf16>
    %48 = vector.shape_cast %47 : vector<1x1x8x32xbf16> to vector<8x32xbf16>
    %49 = vector.extract_strided_slice %18 {offsets = [3, 3, 0, 0], sizes = [1, 1, 8, 32], strides = [1, 1, 1, 1]} : vector<8x8x8x32xbf16> to vector<1x1x8x32xbf16>
    %50 = vector.shape_cast %49 : vector<1x1x8x32xbf16> to vector<8x32xbf16>
    %51 = tpu.concatenate %20, %22, %24, %26, %28, %30, %32, %34, %36, %38, %40, %42, %44, %46, %48, %50 in 1 : vector<8x32xbf16>, vector<8x32xbf16>, vector<8x32xbf16>, vector<8x32xbf16>, vector<8x32xbf16>, vector<8x32xbf16>, vector<8x32xbf16>, vector<8x32xbf16>, vector<8x32xbf16>, vector<8x32xbf16>, vector<8x32xbf16>, vector<8x32xbf16>, vector<8x32xbf16>, vector<8x32xbf16>, vector<8x32xbf16>, vector<8x32xbf16> -> vector<8x512xbf16>
    %52 = vector.extract_strided_slice %18 {offsets = [0, 2, 0, 0], sizes = [1, 1, 8, 32], strides = [1, 1, 1, 1]} : vector<8x8x8x32xbf16> to vector<1x1x8x32xbf16>
    %53 = vector.shape_cast %52 : vector<1x1x8x32xbf16> to vector<8x32xbf16>
    %54 = vector.extract_strided_slice %18 {offsets = [0, 3, 0, 0], sizes = [1, 1, 8, 32], strides = [1, 1, 1, 1]} : vector<8x8x8x32xbf16> to vector<1x1x8x32xbf16>
    %55 = vector.shape_cast %54 : vector<1x1x8x32xbf16> to vector<8x32xbf16>
    %56 = vector.extract_strided_slice %18 {offsets = [0, 4, 0, 0], sizes = [1, 1, 8, 32], strides = [1, 1, 1, 1]} : vector<8x8x8x32xbf16> to vector<1x1x8x32xbf16>
    %57 = vector.shape_cast %56 : vector<1x1x8x32xbf16> to vector<8x32xbf16>
    %58 = vector.extract_strided_slice %18 {offsets = [0, 5, 0, 0], sizes = [1, 1, 8, 32], strides = [1, 1, 1, 1]} : vector<8x8x8x32xbf16> to vector<1x1x8x32xbf16>
    %59 = vector.shape_cast %58 : vector<1x1x8x32xbf16> to vector<8x32xbf16>
    %60 = vector.extract_strided_slice %18 {offsets = [1, 2, 0, 0], sizes = [1, 1, 8, 32], strides = [1, 1, 1, 1]} : vector<8x8x8x32xbf16> to vector<1x1x8x32xbf16>
    %61 = vector.shape_cast %60 : vector<1x1x8x32xbf16> to vector<8x32xbf16>
    %62 = vector.extract_strided_slice %18 {offsets = [1, 3, 0, 0], sizes = [1, 1, 8, 32], strides = [1, 1, 1, 1]} : vector<8x8x8x32xbf16> to vector<1x1x8x32xbf16>
    %63 = vector.shape_cast %62 : vector<1x1x8x32xbf16> to vector<8x32xbf16>
    %64 = vector.extract_strided_slice %18 {offsets = [1, 4, 0, 0], sizes = [1, 1, 8, 32], strides = [1, 1, 1, 1]} : vector<8x8x8x32xbf16> to vector<1x1x8x32xbf16>
    %65 = vector.shape_cast %64 : vector<1x1x8x32xbf16> to vector<8x32xbf16>
    %66 = vector.extract_strided_slice %18 {offsets = [1, 5, 0, 0], sizes = [1, 1, 8, 32], strides = [1, 1, 1, 1]} : vector<8x8x8x32xbf16> to vector<1x1x8x32xbf16>
    %67 = vector.shape_cast %66 : vector<1x1x8x32xbf16> to vector<8x32xbf16>
    %68 = vector.extract_strided_slice %18 {offsets = [2, 2, 0, 0], sizes = [1, 1, 8, 32], strides = [1, 1, 1, 1]} : vector<8x8x8x32xbf16> to vector<1x1x8x32xbf16>
    %69 = vector.shape_cast %68 : vector<1x1x8x32xbf16> to vector<8x32xbf16>
    %70 = vector.extract_strided_slice %18 {offsets = [2, 3, 0, 0], sizes = [1, 1, 8, 32], strides = [1, 1, 1, 1]} : vector<8x8x8x32xbf16> to vector<1x1x8x32xbf16>
    %71 = vector.shape_cast %70 : vector<1x1x8x32xbf16> to vector<8x32xbf16>
    %72 = vector.extract_strided_slice %18 {offsets = [2, 4, 0, 0], sizes = [1, 1, 8, 32], strides = [1, 1, 1, 1]} : vector<8x8x8x32xbf16> to vector<1x1x8x32xbf16>
    %73 = vector.shape_cast %72 : vector<1x1x8x32xbf16> to vector<8x32xbf16>
    %74 = vector.extract_strided_slice %18 {offsets = [2, 5, 0, 0], sizes = [1, 1, 8, 32], strides = [1, 1, 1, 1]} : vector<8x8x8x32xbf16> to vector<1x1x8x32xbf16>
    %75 = vector.shape_cast %74 : vector<1x1x8x32xbf16> to vector<8x32xbf16>
    %76 = vector.extract_strided_slice %18 {offsets = [3, 2, 0, 0], sizes = [1, 1, 8, 32], strides = [1, 1, 1, 1]} : vector<8x8x8x32xbf16> to vector<1x1x8x32xbf16>
    %77 = vector.shape_cast %76 : vector<1x1x8x32xbf16> to vector<8x32xbf16>
    %78 = vector.extract_strided_slice %18 {offsets = [3, 3, 0, 0], sizes = [1, 1, 8, 32], strides = [1, 1, 1, 1]} : vector<8x8x8x32xbf16> to vector<1x1x8x32xbf16>
    %79 = vector.shape_cast %78 : vector<1x1x8x32xbf16> to vector<8x32xbf16>
    %80 = vector.extract_strided_slice %18 {offsets = [3, 4, 0, 0], sizes = [1, 1, 8, 32], strides = [1, 1, 1, 1]} : vector<8x8x8x32xbf16> to vector<1x1x8x32xbf16>
    %81 = vector.shape_cast %80 : vector<1x1x8x32xbf16> to vector<8x32xbf16>
    %82 = vector.extract_strided_slice %18 {offsets = [3, 5, 0, 0], sizes = [1, 1, 8, 32], strides = [1, 1, 1, 1]} : vector<8x8x8x32xbf16> to vector<1x1x8x32xbf16>
    %83 = vector.shape_cast %82 : vector<1x1x8x32xbf16> to vector<8x32xbf16>
    %84 = tpu.concatenate %53, %55, %57, %59, %61, %63, %65, %67, %69, %71, %73, %75, %77, %79, %81, %83 in 1 : vector<8x32xbf16>, vector<8x32xbf16>, vector<8x32xbf16>, vector<8x32xbf16>, vector<8x32xbf16>, vector<8x32xbf16>, vector<8x32xbf16>, vector<8x32xbf16>, vector<8x32xbf16>, vector<8x32xbf16>, vector<8x32xbf16>, vector<8x32xbf16>, vector<8x32xbf16>, vector<8x32xbf16>, vector<8x32xbf16>, vector<8x32xbf16> -> vector<8x512xbf16>
    %85 = vector.extract_strided_slice %18 {offsets = [0, 4, 0, 0], sizes = [1, 1, 8, 32], strides = [1, 1, 1, 1]} : vector<8x8x8x32xbf16> to vector<1x1x8x32xbf16>
    %86 = vector.shape_cast %85 : vector<1x1x8x32xbf16> to vector<8x32xbf16>
    %87 = vector.extract_strided_slice %18 {offsets = [0, 5, 0, 0], sizes = [1, 1, 8, 32], strides = [1, 1, 1, 1]} : vector<8x8x8x32xbf16> to vector<1x1x8x32xbf16>
    %88 = vector.shape_cast %87 : vector<1x1x8x32xbf16> to vector<8x32xbf16>
    %89 = vector.extract_strided_slice %18 {offsets = [0, 6, 0, 0], sizes = [1, 1, 8, 32], strides = [1, 1, 1, 1]} : vector<8x8x8x32xbf16> to vector<1x1x8x32xbf16>
    %90 = vector.shape_cast %89 : vector<1x1x8x32xbf16> to vector<8x32xbf16>
    %91 = vector.extract_strided_slice %18 {offsets = [0, 7, 0, 0], sizes = [1, 1, 8, 32], strides = [1, 1, 1, 1]} : vector<8x8x8x32xbf16> to vector<1x1x8x32xbf16>
    %92 = vector.shape_cast %91 : vector<1x1x8x32xbf16> to vector<8x32xbf16>
    %93 = vector.extract_strided_slice %18 {offsets = [1, 4, 0, 0], sizes = [1, 1, 8, 32], strides = [1, 1, 1, 1]} : vector<8x8x8x32xbf16> to vector<1x1x8x32xbf16>
    %94 = vector.shape_cast %93 : vector<1x1x8x32xbf16> to vector<8x32xbf16>
    %95 = vector.extract_strided_slice %18 {offsets = [1, 5, 0, 0], sizes = [1, 1, 8, 32], strides = [1, 1, 1, 1]} : vector<8x8x8x32xbf16> to vector<1x1x8x32xbf16>
    %96 = vector.shape_cast %95 : vector<1x1x8x32xbf16> to vector<8x32xbf16>
    %97 = vector.extract_strided_slice %18 {offsets = [1, 6, 0, 0], sizes = [1, 1, 8, 32], strides = [1, 1, 1, 1]} : vector<8x8x8x32xbf16> to vector<1x1x8x32xbf16>
    %98 = vector.shape_cast %97 : vector<1x1x8x32xbf16> to vector<8x32xbf16>
    %99 = vector.extract_strided_slice %18 {offsets = [1, 7, 0, 0], sizes = [1, 1, 8, 32], strides = [1, 1, 1, 1]} : vector<8x8x8x32xbf16> to vector<1x1x8x32xbf16>
    %100 = vector.shape_cast %99 : vector<1x1x8x32xbf16> to vector<8x32xbf16>
    %101 = vector.extract_strided_slice %18 {offsets = [2, 4, 0, 0], sizes = [1, 1, 8, 32], strides = [1, 1, 1, 1]} : vector<8x8x8x32xbf16> to vector<1x1x8x32xbf16>
    %102 = vector.shape_cast %101 : vector<1x1x8x32xbf16> to vector<8x32xbf16>
    %103 = vector.extract_strided_slice %18 {offsets = [2, 5, 0, 0], sizes = [1, 1, 8, 32], strides = [1, 1, 1, 1]} : vector<8x8x8x32xbf16> to vector<1x1x8x32xbf16>
    %104 = vector.shape_cast %103 : vector<1x1x8x32xbf16> to vector<8x32xbf16>
    %105 = vector.extract_strided_slice %18 {offsets = [2, 6, 0, 0], sizes = [1, 1, 8, 32], strides = [1, 1, 1, 1]} : vector<8x8x8x32xbf16> to vector<1x1x8x32xbf16>
    %106 = vector.shape_cast %105 : vector<1x1x8x32xbf16> to vector<8x32xbf16>
    %107 = vector.extract_strided_slice %18 {offsets = [2, 7, 0, 0], sizes = [1, 1, 8, 32], strides = [1, 1, 1, 1]} : vector<8x8x8x32xbf16> to vector<1x1x8x32xbf16>
    %108 = vector.shape_cast %107 : vector<1x1x8x32xbf16> to vector<8x32xbf16>
    %109 = vector.extract_strided_slice %18 {offsets = [3, 4, 0, 0], sizes = [1, 1, 8, 32], strides = [1, 1, 1, 1]} : vector<8x8x8x32xbf16> to vector<1x1x8x32xbf16>
    %110 = vector.shape_cast %109 : vector<1x1x8x32xbf16> to vector<8x32xbf16>
    %111 = vector.extract_strided_slice %18 {offsets = [3, 5, 0, 0], sizes = [1, 1, 8, 32], strides = [1, 1, 1, 1]} : vector<8x8x8x32xbf16> to vector<1x1x8x32xbf16>
    %112 = vector.shape_cast %111 : vector<1x1x8x32xbf16> to vector<8x32xbf16>
    %113 = vector.extract_strided_slice %18 {offsets = [3, 6, 0, 0], sizes = [1, 1, 8, 32], strides = [1, 1, 1, 1]} : vector<8x8x8x32xbf16> to vector<1x1x8x32xbf16>
    %114 = vector.shape_cast %113 : vector<1x1x8x32xbf16> to vector<8x32xbf16>
    %115 = vector.extract_strided_slice %18 {offsets = [3, 7, 0, 0], sizes = [1, 1, 8, 32], strides = [1, 1, 1, 1]} : vector<8x8x8x32xbf16> to vector<1x1x8x32xbf16>
    %116 = vector.shape_cast %115 : vector<1x1x8x32xbf16> to vector<8x32xbf16>
    %117 = tpu.concatenate %86, %88, %90, %92, %94, %96, %98, %100, %102, %104, %106, %108, %110, %112, %114, %116 in 1 : vector<8x32xbf16>, vector<8x32xbf16>, vector<8x32xbf16>, vector<8x32xbf16>, vector<8x32xbf16>, vector<8x32xbf16>, vector<8x32xbf16>, vector<8x32xbf16>, vector<8x32xbf16>, vector<8x32xbf16>, vector<8x32xbf16>, vector<8x32xbf16>, vector<8x32xbf16>, vector<8x32xbf16>, vector<8x32xbf16>, vector<8x32xbf16> -> vector<8x512xbf16>
    %118 = vector.extract_strided_slice %18 {offsets = [2, 0, 0, 0], sizes = [1, 1, 8, 32], strides = [1, 1, 1, 1]} : vector<8x8x8x32xbf16> to vector<1x1x8x32xbf16>
    %119 = vector.shape_cast %118 : vector<1x1x8x32xbf16> to vector<8x32xbf16>
    %120 = vector.extract_strided_slice %18 {offsets = [2, 1, 0, 0], sizes = [1, 1, 8, 32], strides = [1, 1, 1, 1]} : vector<8x8x8x32xbf16> to vector<1x1x8x32xbf16>
    %121 = vector.shape_cast %120 : vector<1x1x8x32xbf16> to vector<8x32xbf16>
    %122 = vector.extract_strided_slice %18 {offsets = [2, 2, 0, 0], sizes = [1, 1, 8, 32], strides = [1, 1, 1, 1]} : vector<8x8x8x32xbf16> to vector<1x1x8x32xbf16>
    %123 = vector.shape_cast %122 : vector<1x1x8x32xbf16> to vector<8x32xbf16>
    %124 = vector.extract_strided_slice %18 {offsets = [2, 3, 0, 0], sizes = [1, 1, 8, 32], strides = [1, 1, 1, 1]} : vector<8x8x8x32xbf16> to vector<1x1x8x32xbf16>
    %125 = vector.shape_cast %124 : vector<1x1x8x32xbf16> to vector<8x32xbf16>
    %126 = vector.extract_strided_slice %18 {offsets = [3, 0, 0, 0], sizes = [1, 1, 8, 32], strides = [1, 1, 1, 1]} : vector<8x8x8x32xbf16> to vector<1x1x8x32xbf16>
    %127 = vector.shape_cast %126 : vector<1x1x8x32xbf16> to vector<8x32xbf16>
    %128 = vector.extract_strided_slice %18 {offsets = [3, 1, 0, 0], sizes = [1, 1, 8, 32], strides = [1, 1, 1, 1]} : vector<8x8x8x32xbf16> to vector<1x1x8x32xbf16>
    %129 = vector.shape_cast %128 : vector<1x1x8x32xbf16> to vector<8x32xbf16>
    %130 = vector.extract_strided_slice %18 {offsets = [3, 2, 0, 0], sizes = [1, 1, 8, 32], strides = [1, 1, 1, 1]} : vector<8x8x8x32xbf16> to vector<1x1x8x32xbf16>
    %131 = vector.shape_cast %130 : vector<1x1x8x32xbf16> to vector<8x32xbf16>
    %132 = vector.extract_strided_slice %18 {offsets = [3, 3, 0, 0], sizes = [1, 1, 8, 32], strides = [1, 1, 1, 1]} : vector<8x8x8x32xbf16> to vector<1x1x8x32xbf16>
    %133 = vector.shape_cast %132 : vector<1x1x8x32xbf16> to vector<8x32xbf16>
    %134 = vector.extract_strided_slice %18 {offsets = [4, 0, 0, 0], sizes = [1, 1, 8, 32], strides = [1, 1, 1, 1]} : vector<8x8x8x32xbf16> to vector<1x1x8x32xbf16>
    %135 = vector.shape_cast %134 : vector<1x1x8x32xbf16> to vector<8x32xbf16>
    %136 = vector.extract_strided_slice %18 {offsets = [4, 1, 0, 0], sizes = [1, 1, 8, 32], strides = [1, 1, 1, 1]} : vector<8x8x8x32xbf16> to vector<1x1x8x32xbf16>
    %137 = vector.shape_cast %136 : vector<1x1x8x32xbf16> to vector<8x32xbf16>
    %138 = vector.extract_strided_slice %18 {offsets = [4, 2, 0, 0], sizes = [1, 1, 8, 32], strides = [1, 1, 1, 1]} : vector<8x8x8x32xbf16> to vector<1x1x8x32xbf16>
    %139 = vector.shape_cast %138 : vector<1x1x8x32xbf16> to vector<8x32xbf16>
    %140 = vector.extract_strided_slice %18 {offsets = [4, 3, 0, 0], sizes = [1, 1, 8, 32], strides = [1, 1, 1, 1]} : vector<8x8x8x32xbf16> to vector<1x1x8x32xbf16>
    %141 = vector.shape_cast %140 : vector<1x1x8x32xbf16> to vector<8x32xbf16>
    %142 = vector.extract_strided_slice %18 {offsets = [5, 0, 0, 0], sizes = [1, 1, 8, 32], strides = [1, 1, 1, 1]} : vector<8x8x8x32xbf16> to vector<1x1x8x32xbf16>
    %143 = vector.shape_cast %142 : vector<1x1x8x32xbf16> to vector<8x32xbf16>
    %144 = vector.extract_strided_slice %18 {offsets = [5, 1, 0, 0], sizes = [1, 1, 8, 32], strides = [1, 1, 1, 1]} : vector<8x8x8x32xbf16> to vector<1x1x8x32xbf16>
    %145 = vector.shape_cast %144 : vector<1x1x8x32xbf16> to vector<8x32xbf16>
    %146 = vector.extract_strided_slice %18 {offsets = [5, 2, 0, 0], sizes = [1, 1, 8, 32], strides = [1, 1, 1, 1]} : vector<8x8x8x32xbf16> to vector<1x1x8x32xbf16>
    %147 = vector.shape_cast %146 : vector<1x1x8x32xbf16> to vector<8x32xbf16>
    %148 = vector.extract_strided_slice %18 {offsets = [5, 3, 0, 0], sizes = [1, 1, 8, 32], strides = [1, 1, 1, 1]} : vector<8x8x8x32xbf16> to vector<1x1x8x32xbf16>
    %149 = vector.shape_cast %148 : vector<1x1x8x32xbf16> to vector<8x32xbf16>
    %150 = tpu.concatenate %119, %121, %123, %125, %127, %129, %131, %133, %135, %137, %139, %141, %143, %145, %147, %149 in 1 : vector<8x32xbf16>, vector<8x32xbf16>, vector<8x32xbf16>, vector<8x32xbf16>, vector<8x32xbf16>, vector<8x32xbf16>, vector<8x32xbf16>, vector<8x32xbf16>, vector<8x32xbf16>, vector<8x32xbf16>, vector<8x32xbf16>, vector<8x32xbf16>, vector<8x32xbf16>, vector<8x32xbf16>, vector<8x32xbf16>, vector<8x32xbf16> -> vector<8x512xbf16>
    %151 = vector.extract_strided_slice %18 {offsets = [2, 2, 0, 0], sizes = [1, 1, 8, 32], strides = [1, 1, 1, 1]} : vector<8x8x8x32xbf16> to vector<1x1x8x32xbf16>
    %152 = vector.shape_cast %151 : vector<1x1x8x32xbf16> to vector<8x32xbf16>
    %153 = vector.extract_strided_slice %18 {offsets = [2, 3, 0, 0], sizes = [1, 1, 8, 32], strides = [1, 1, 1, 1]} : vector<8x8x8x32xbf16> to vector<1x1x8x32xbf16>
    %154 = vector.shape_cast %153 : vector<1x1x8x32xbf16> to vector<8x32xbf16>
    %155 = vector.extract_strided_slice %18 {offsets = [2, 4, 0, 0], sizes = [1, 1, 8, 32], strides = [1, 1, 1, 1]} : vector<8x8x8x32xbf16> to vector<1x1x8x32xbf16>
    %156 = vector.shape_cast %155 : vector<1x1x8x32xbf16> to vector<8x32xbf16>
    %157 = vector.extract_strided_slice %18 {offsets = [2, 5, 0, 0], sizes = [1, 1, 8, 32], strides = [1, 1, 1, 1]} : vector<8x8x8x32xbf16> to vector<1x1x8x32xbf16>
    %158 = vector.shape_cast %157 : vector<1x1x8x32xbf16> to vector<8x32xbf16>
    %159 = vector.extract_strided_slice %18 {offsets = [3, 2, 0, 0], sizes = [1, 1, 8, 32], strides = [1, 1, 1, 1]} : vector<8x8x8x32xbf16> to vector<1x1x8x32xbf16>
    %160 = vector.shape_cast %159 : vector<1x1x8x32xbf16> to vector<8x32xbf16>
    %161 = vector.extract_strided_slice %18 {offsets = [3, 3, 0, 0], sizes = [1, 1, 8, 32], strides = [1, 1, 1, 1]} : vector<8x8x8x32xbf16> to vector<1x1x8x32xbf16>
    %162 = vector.shape_cast %161 : vector<1x1x8x32xbf16> to vector<8x32xbf16>
    %163 = vector.extract_strided_slice %18 {offsets = [3, 4, 0, 0], sizes = [1, 1, 8, 32], strides = [1, 1, 1, 1]} : vector<8x8x8x32xbf16> to vector<1x1x8x32xbf16>
    %164 = vector.shape_cast %163 : vector<1x1x8x32xbf16> to vector<8x32xbf16>
    %165 = vector.extract_strided_slice %18 {offsets = [3, 5, 0, 0], sizes = [1, 1, 8, 32], strides = [1, 1, 1, 1]} : vector<8x8x8x32xbf16> to vector<1x1x8x32xbf16>
    %166 = vector.shape_cast %165 : vector<1x1x8x32xbf16> to vector<8x32xbf16>
    %167 = vector.extract_strided_slice %18 {offsets = [4, 2, 0, 0], sizes = [1, 1, 8, 32], strides = [1, 1, 1, 1]} : vector<8x8x8x32xbf16> to vector<1x1x8x32xbf16>
    %168 = vector.shape_cast %167 : vector<1x1x8x32xbf16> to vector<8x32xbf16>
    %169 = vector.extract_strided_slice %18 {offsets = [4, 3, 0, 0], sizes = [1, 1, 8, 32], strides = [1, 1, 1, 1]} : vector<8x8x8x32xbf16> to vector<1x1x8x32xbf16>
    %170 = vector.shape_cast %169 : vector<1x1x8x32xbf16> to vector<8x32xbf16>
    %171 = vector.extract_strided_slice %18 {offsets = [4, 4, 0, 0], sizes = [1, 1, 8, 32], strides = [1, 1, 1, 1]} : vector<8x8x8x32xbf16> to vector<1x1x8x32xbf16>
    %172 = vector.shape_cast %171 : vector<1x1x8x32xbf16> to vector<8x32xbf16>
    %173 = vector.extract_strided_slice %18 {offsets = [4, 5, 0, 0], sizes = [1, 1, 8, 32], strides = [1, 1, 1, 1]} : vector<8x8x8x32xbf16> to vector<1x1x8x32xbf16>
    %174 = vector.shape_cast %173 : vector<1x1x8x32xbf16> to vector<8x32xbf16>
    %175 = vector.extract_strided_slice %18 {offsets = [5, 2, 0, 0], sizes = [1, 1, 8, 32], strides = [1, 1, 1, 1]} : vector<8x8x8x32xbf16> to vector<1x1x8x32xbf16>
    %176 = vector.shape_cast %175 : vector<1x1x8x32xbf16> to vector<8x32xbf16>
    %177 = vector.extract_strided_slice %18 {offsets = [5, 3, 0, 0], sizes = [1, 1, 8, 32], strides = [1, 1, 1, 1]} : vector<8x8x8x32xbf16> to vector<1x1x8x32xbf16>
    %178 = vector.shape_cast %177 : vector<1x1x8x32xbf16> to vector<8x32xbf16>
    %179 = vector.extract_strided_slice %18 {offsets = [5, 4, 0, 0], sizes = [1, 1, 8, 32], strides = [1, 1, 1, 1]} : vector<8x8x8x32xbf16> to vector<1x1x8x32xbf16>
    %180 = vector.shape_cast %179 : vector<1x1x8x32xbf16> to vector<8x32xbf16>
    %181 = vector.extract_strided_slice %18 {offsets = [5, 5, 0, 0], sizes = [1, 1, 8, 32], strides = [1, 1, 1, 1]} : vector<8x8x8x32xbf16> to vector<1x1x8x32xbf16>
    %182 = vector.shape_cast %181 : vector<1x1x8x32xbf16> to vector<8x32xbf16>
    %183 = tpu.concatenate %152, %154, %156, %158, %160, %162, %164, %166, %168, %170, %172, %174, %176, %178, %180, %182 in 1 : vector<8x32xbf16>, vector<8x32xbf16>, vector<8x32xbf16>, vector<8x32xbf16>, vector<8x32xbf16>, vector<8x32xbf16>, vector<8x32xbf16>, vector<8x32xbf16>, vector<8x32xbf16>, vector<8x32xbf16>, vector<8x32xbf16>, vector<8x32xbf16>, vector<8x32xbf16>, vector<8x32xbf16>, vector<8x32xbf16>, vector<8x32xbf16> -> vector<8x512xbf16>
    %184 = vector.extract_strided_slice %18 {offsets = [2, 4, 0, 0], sizes = [1, 1, 8, 32], strides = [1, 1, 1, 1]} : vector<8x8x8x32xbf16> to vector<1x1x8x32xbf16>
    %185 = vector.shape_cast %184 : vector<1x1x8x32xbf16> to vector<8x32xbf16>
    %186 = vector.extract_strided_slice %18 {offsets = [2, 5, 0, 0], sizes = [1, 1, 8, 32], strides = [1, 1, 1, 1]} : vector<8x8x8x32xbf16> to vector<1x1x8x32xbf16>
    %187 = vector.shape_cast %186 : vector<1x1x8x32xbf16> to vector<8x32xbf16>
    %188 = vector.extract_strided_slice %18 {offsets = [2, 6, 0, 0], sizes = [1, 1, 8, 32], strides = [1, 1, 1, 1]} : vector<8x8x8x32xbf16> to vector<1x1x8x32xbf16>
    %189 = vector.shape_cast %188 : vector<1x1x8x32xbf16> to vector<8x32xbf16>
    %190 = vector.extract_strided_slice %18 {offsets = [2, 7, 0, 0], sizes = [1, 1, 8, 32], strides = [1, 1, 1, 1]} : vector<8x8x8x32xbf16> to vector<1x1x8x32xbf16>
    %191 = vector.shape_cast %190 : vector<1x1x8x32xbf16> to vector<8x32xbf16>
    %192 = vector.extract_strided_slice %18 {offsets = [3, 4, 0, 0], sizes = [1, 1, 8, 32], strides = [1, 1, 1, 1]} : vector<8x8x8x32xbf16> to vector<1x1x8x32xbf16>
    %193 = vector.shape_cast %192 : vector<1x1x8x32xbf16> to vector<8x32xbf16>
    %194 = vector.extract_strided_slice %18 {offsets = [3, 5, 0, 0], sizes = [1, 1, 8, 32], strides = [1, 1, 1, 1]} : vector<8x8x8x32xbf16> to vector<1x1x8x32xbf16>
    %195 = vector.shape_cast %194 : vector<1x1x8x32xbf16> to vector<8x32xbf16>
    %196 = vector.extract_strided_slice %18 {offsets = [3, 6, 0, 0], sizes = [1, 1, 8, 32], strides = [1, 1, 1, 1]} : vector<8x8x8x32xbf16> to vector<1x1x8x32xbf16>
    %197 = vector.shape_cast %196 : vector<1x1x8x32xbf16> to vector<8x32xbf16>
    %198 = vector.extract_strided_slice %18 {offsets = [3, 7, 0, 0], sizes = [1, 1, 8, 32], strides = [1, 1, 1, 1]} : vector<8x8x8x32xbf16> to vector<1x1x8x32xbf16>
    %199 = vector.shape_cast %198 : vector<1x1x8x32xbf16> to vector<8x32xbf16>
    %200 = vector.extract_strided_slice %18 {offsets = [4, 4, 0, 0], sizes = [1, 1, 8, 32], strides = [1, 1, 1, 1]} : vector<8x8x8x32xbf16> to vector<1x1x8x32xbf16>
    %201 = vector.shape_cast %200 : vector<1x1x8x32xbf16> to vector<8x32xbf16>
    %202 = vector.extract_strided_slice %18 {offsets = [4, 5, 0, 0], sizes = [1, 1, 8, 32], strides = [1, 1, 1, 1]} : vector<8x8x8x32xbf16> to vector<1x1x8x32xbf16>
    %203 = vector.shape_cast %202 : vector<1x1x8x32xbf16> to vector<8x32xbf16>
    %204 = vector.extract_strided_slice %18 {offsets = [4, 6, 0, 0], sizes = [1, 1, 8, 32], strides = [1, 1, 1, 1]} : vector<8x8x8x32xbf16> to vector<1x1x8x32xbf16>
    %205 = vector.shape_cast %204 : vector<1x1x8x32xbf16> to vector<8x32xbf16>
    %206 = vector.extract_strided_slice %18 {offsets = [4, 7, 0, 0], sizes = [1, 1, 8, 32], strides = [1, 1, 1, 1]} : vector<8x8x8x32xbf16> to vector<1x1x8x32xbf16>
    %207 = vector.shape_cast %206 : vector<1x1x8x32xbf16> to vector<8x32xbf16>
    %208 = vector.extract_strided_slice %18 {offsets = [5, 4, 0, 0], sizes = [1, 1, 8, 32], strides = [1, 1, 1, 1]} : vector<8x8x8x32xbf16> to vector<1x1x8x32xbf16>
    %209 = vector.shape_cast %208 : vector<1x1x8x32xbf16> to vector<8x32xbf16>
    %210 = vector.extract_strided_slice %18 {offsets = [5, 5, 0, 0], sizes = [1, 1, 8, 32], strides = [1, 1, 1, 1]} : vector<8x8x8x32xbf16> to vector<1x1x8x32xbf16>
    %211 = vector.shape_cast %210 : vector<1x1x8x32xbf16> to vector<8x32xbf16>
    %212 = vector.extract_strided_slice %18 {offsets = [5, 6, 0, 0], sizes = [1, 1, 8, 32], strides = [1, 1, 1, 1]} : vector<8x8x8x32xbf16> to vector<1x1x8x32xbf16>
    %213 = vector.shape_cast %212 : vector<1x1x8x32xbf16> to vector<8x32xbf16>
    %214 = vector.extract_strided_slice %18 {offsets = [5, 7, 0, 0], sizes = [1, 1, 8, 32], strides = [1, 1, 1, 1]} : vector<8x8x8x32xbf16> to vector<1x1x8x32xbf16>
    %215 = vector.shape_cast %214 : vector<1x1x8x32xbf16> to vector<8x32xbf16>
    %216 = tpu.concatenate %185, %187, %189, %191, %193, %195, %197, %199, %201, %203, %205, %207, %209, %211, %213, %215 in 1 : vector<8x32xbf16>, vector<8x32xbf16>, vector<8x32xbf16>, vector<8x32xbf16>, vector<8x32xbf16>, vector<8x32xbf16>, vector<8x32xbf16>, vector<8x32xbf16>, vector<8x32xbf16>, vector<8x32xbf16>, vector<8x32xbf16>, vector<8x32xbf16>, vector<8x32xbf16>, vector<8x32xbf16>, vector<8x32xbf16>, vector<8x32xbf16> -> vector<8x512xbf16>
    %217 = vector.extract_strided_slice %18 {offsets = [4, 0, 0, 0], sizes = [1, 1, 8, 32], strides = [1, 1, 1, 1]} : vector<8x8x8x32xbf16> to vector<1x1x8x32xbf16>
    %218 = vector.shape_cast %217 : vector<1x1x8x32xbf16> to vector<8x32xbf16>
    %219 = vector.extract_strided_slice %18 {offsets = [4, 1, 0, 0], sizes = [1, 1, 8, 32], strides = [1, 1, 1, 1]} : vector<8x8x8x32xbf16> to vector<1x1x8x32xbf16>
    %220 = vector.shape_cast %219 : vector<1x1x8x32xbf16> to vector<8x32xbf16>
    %221 = vector.extract_strided_slice %18 {offsets = [4, 2, 0, 0], sizes = [1, 1, 8, 32], strides = [1, 1, 1, 1]} : vector<8x8x8x32xbf16> to vector<1x1x8x32xbf16>
    %222 = vector.shape_cast %221 : vector<1x1x8x32xbf16> to vector<8x32xbf16>
    %223 = vector.extract_strided_slice %18 {offsets = [4, 3, 0, 0], sizes = [1, 1, 8, 32], strides = [1, 1, 1, 1]} : vector<8x8x8x32xbf16> to vector<1x1x8x32xbf16>
    %224 = vector.shape_cast %223 : vector<1x1x8x32xbf16> to vector<8x32xbf16>
    %225 = vector.extract_strided_slice %18 {offsets = [5, 0, 0, 0], sizes = [1, 1, 8, 32], strides = [1, 1, 1, 1]} : vector<8x8x8x32xbf16> to vector<1x1x8x32xbf16>
    %226 = vector.shape_cast %225 : vector<1x1x8x32xbf16> to vector<8x32xbf16>
    %227 = vector.extract_strided_slice %18 {offsets = [5, 1, 0, 0], sizes = [1, 1, 8, 32], strides = [1, 1, 1, 1]} : vector<8x8x8x32xbf16> to vector<1x1x8x32xbf16>
    %228 = vector.shape_cast %227 : vector<1x1x8x32xbf16> to vector<8x32xbf16>
    %229 = vector.extract_strided_slice %18 {offsets = [5, 2, 0, 0], sizes = [1, 1, 8, 32], strides = [1, 1, 1, 1]} : vector<8x8x8x32xbf16> to vector<1x1x8x32xbf16>
    %230 = vector.shape_cast %229 : vector<1x1x8x32xbf16> to vector<8x32xbf16>
    %231 = vector.extract_strided_slice %18 {offsets = [5, 3, 0, 0], sizes = [1, 1, 8, 32], strides = [1, 1, 1, 1]} : vector<8x8x8x32xbf16> to vector<1x1x8x32xbf16>
    %232 = vector.shape_cast %231 : vector<1x1x8x32xbf16> to vector<8x32xbf16>
    %233 = vector.extract_strided_slice %18 {offsets = [6, 0, 0, 0], sizes = [1, 1, 8, 32], strides = [1, 1, 1, 1]} : vector<8x8x8x32xbf16> to vector<1x1x8x32xbf16>
    %234 = vector.shape_cast %233 : vector<1x1x8x32xbf16> to vector<8x32xbf16>
    %235 = vector.extract_strided_slice %18 {offsets = [6, 1, 0, 0], sizes = [1, 1, 8, 32], strides = [1, 1, 1, 1]} : vector<8x8x8x32xbf16> to vector<1x1x8x32xbf16>
    %236 = vector.shape_cast %235 : vector<1x1x8x32xbf16> to vector<8x32xbf16>
    %237 = vector.extract_strided_slice %18 {offsets = [6, 2, 0, 0], sizes = [1, 1, 8, 32], strides = [1, 1, 1, 1]} : vector<8x8x8x32xbf16> to vector<1x1x8x32xbf16>
    %238 = vector.shape_cast %237 : vector<1x1x8x32xbf16> to vector<8x32xbf16>
    %239 = vector.extract_strided_slice %18 {offsets = [6, 3, 0, 0], sizes = [1, 1, 8, 32], strides = [1, 1, 1, 1]} : vector<8x8x8x32xbf16> to vector<1x1x8x32xbf16>
    %240 = vector.shape_cast %239 : vector<1x1x8x32xbf16> to vector<8x32xbf16>
    %241 = vector.extract_strided_slice %18 {offsets = [7, 0, 0, 0], sizes = [1, 1, 8, 32], strides = [1, 1, 1, 1]} : vector<8x8x8x32xbf16> to vector<1x1x8x32xbf16>
    %242 = vector.shape_cast %241 : vector<1x1x8x32xbf16> to vector<8x32xbf16>
    %243 = vector.extract_strided_slice %18 {offsets = [7, 1, 0, 0], sizes = [1, 1, 8, 32], strides = [1, 1, 1, 1]} : vector<8x8x8x32xbf16> to vector<1x1x8x32xbf16>
    %244 = vector.shape_cast %243 : vector<1x1x8x32xbf16> to vector<8x32xbf16>
    %245 = vector.extract_strided_slice %18 {offsets = [7, 2, 0, 0], sizes = [1, 1, 8, 32], strides = [1, 1, 1, 1]} : vector<8x8x8x32xbf16> to vector<1x1x8x32xbf16>
    %246 = vector.shape_cast %245 : vector<1x1x8x32xbf16> to vector<8x32xbf16>
    %247 = vector.extract_strided_slice %18 {offsets = [7, 3, 0, 0], sizes = [1, 1, 8, 32], strides = [1, 1, 1, 1]} : vector<8x8x8x32xbf16> to vector<1x1x8x32xbf16>
    %248 = vector.shape_cast %247 : vector<1x1x8x32xbf16> to vector<8x32xbf16>
    %249 = tpu.concatenate %218, %220, %222, %224, %226, %228, %230, %232, %234, %236, %238, %240, %242, %244, %246, %248 in 1 : vector<8x32xbf16>, vector<8x32xbf16>, vector<8x32xbf16>, vector<8x32xbf16>, vector<8x32xbf16>, vector<8x32xbf16>, vector<8x32xbf16>, vector<8x32xbf16>, vector<8x32xbf16>, vector<8x32xbf16>, vector<8x32xbf16>, vector<8x32xbf16>, vector<8x32xbf16>, vector<8x32xbf16>, vector<8x32xbf16>, vector<8x32xbf16> -> vector<8x512xbf16>
    %250 = vector.extract_strided_slice %18 {offsets = [4, 2, 0, 0], sizes = [1, 1, 8, 32], strides = [1, 1, 1, 1]} : vector<8x8x8x32xbf16> to vector<1x1x8x32xbf16>
    %251 = vector.shape_cast %250 : vector<1x1x8x32xbf16> to vector<8x32xbf16>
    %252 = vector.extract_strided_slice %18 {offsets = [4, 3, 0, 0], sizes = [1, 1, 8, 32], strides = [1, 1, 1, 1]} : vector<8x8x8x32xbf16> to vector<1x1x8x32xbf16>
    %253 = vector.shape_cast %252 : vector<1x1x8x32xbf16> to vector<8x32xbf16>
    %254 = vector.extract_strided_slice %18 {offsets = [4, 4, 0, 0], sizes = [1, 1, 8, 32], strides = [1, 1, 1, 1]} : vector<8x8x8x32xbf16> to vector<1x1x8x32xbf16>
    %255 = vector.shape_cast %254 : vector<1x1x8x32xbf16> to vector<8x32xbf16>
    %256 = vector.extract_strided_slice %18 {offsets = [4, 5, 0, 0], sizes = [1, 1, 8, 32], strides = [1, 1, 1, 1]} : vector<8x8x8x32xbf16> to vector<1x1x8x32xbf16>
    %257 = vector.shape_cast %256 : vector<1x1x8x32xbf16> to vector<8x32xbf16>
    %258 = vector.extract_strided_slice %18 {offsets = [5, 2, 0, 0], sizes = [1, 1, 8, 32], strides = [1, 1, 1, 1]} : vector<8x8x8x32xbf16> to vector<1x1x8x32xbf16>
    %259 = vector.shape_cast %258 : vector<1x1x8x32xbf16> to vector<8x32xbf16>
    %260 = vector.extract_strided_slice %18 {offsets = [5, 3, 0, 0], sizes = [1, 1, 8, 32], strides = [1, 1, 1, 1]} : vector<8x8x8x32xbf16> to vector<1x1x8x32xbf16>
    %261 = vector.shape_cast %260 : vector<1x1x8x32xbf16> to vector<8x32xbf16>
    %262 = vector.extract_strided_slice %18 {offsets = [5, 4, 0, 0], sizes = [1, 1, 8, 32], strides = [1, 1, 1, 1]} : vector<8x8x8x32xbf16> to vector<1x1x8x32xbf16>
    %263 = vector.shape_cast %262 : vector<1x1x8x32xbf16> to vector<8x32xbf16>
    %264 = vector.extract_strided_slice %18 {offsets = [5, 5, 0, 0], sizes = [1, 1, 8, 32], strides = [1, 1, 1, 1]} : vector<8x8x8x32xbf16> to vector<1x1x8x32xbf16>
    %265 = vector.shape_cast %264 : vector<1x1x8x32xbf16> to vector<8x32xbf16>
    %266 = vector.extract_strided_slice %18 {offsets = [6, 2, 0, 0], sizes = [1, 1, 8, 32], strides = [1, 1, 1, 1]} : vector<8x8x8x32xbf16> to vector<1x1x8x32xbf16>
    %267 = vector.shape_cast %266 : vector<1x1x8x32xbf16> to vector<8x32xbf16>
    %268 = vector.extract_strided_slice %18 {offsets = [6, 3, 0, 0], sizes = [1, 1, 8, 32], strides = [1, 1, 1, 1]} : vector<8x8x8x32xbf16> to vector<1x1x8x32xbf16>
    %269 = vector.shape_cast %268 : vector<1x1x8x32xbf16> to vector<8x32xbf16>
    %270 = vector.extract_strided_slice %18 {offsets = [6, 4, 0, 0], sizes = [1, 1, 8, 32], strides = [1, 1, 1, 1]} : vector<8x8x8x32xbf16> to vector<1x1x8x32xbf16>
    %271 = vector.shape_cast %270 : vector<1x1x8x32xbf16> to vector<8x32xbf16>
    %272 = vector.extract_strided_slice %18 {offsets = [6, 5, 0, 0], sizes = [1, 1, 8, 32], strides = [1, 1, 1, 1]} : vector<8x8x8x32xbf16> to vector<1x1x8x32xbf16>
    %273 = vector.shape_cast %272 : vector<1x1x8x32xbf16> to vector<8x32xbf16>
    %274 = vector.extract_strided_slice %18 {offsets = [7, 2, 0, 0], sizes = [1, 1, 8, 32], strides = [1, 1, 1, 1]} : vector<8x8x8x32xbf16> to vector<1x1x8x32xbf16>
    %275 = vector.shape_cast %274 : vector<1x1x8x32xbf16> to vector<8x32xbf16>
    %276 = vector.extract_strided_slice %18 {offsets = [7, 3, 0, 0], sizes = [1, 1, 8, 32], strides = [1, 1, 1, 1]} : vector<8x8x8x32xbf16> to vector<1x1x8x32xbf16>
    %277 = vector.shape_cast %276 : vector<1x1x8x32xbf16> to vector<8x32xbf16>
    %278 = vector.extract_strided_slice %18 {offsets = [7, 4, 0, 0], sizes = [1, 1, 8, 32], strides = [1, 1, 1, 1]} : vector<8x8x8x32xbf16> to vector<1x1x8x32xbf16>
    %279 = vector.shape_cast %278 : vector<1x1x8x32xbf16> to vector<8x32xbf16>
    %280 = vector.extract_strided_slice %18 {offsets = [7, 5, 0, 0], sizes = [1, 1, 8, 32], strides = [1, 1, 1, 1]} : vector<8x8x8x32xbf16> to vector<1x1x8x32xbf16>
    %281 = vector.shape_cast %280 : vector<1x1x8x32xbf16> to vector<8x32xbf16>
    %282 = tpu.concatenate %251, %253, %255, %257, %259, %261, %263, %265, %267, %269, %271, %273, %275, %277, %279, %281 in 1 : vector<8x32xbf16>, vector<8x32xbf16>, vector<8x32xbf16>, vector<8x32xbf16>, vector<8x32xbf16>, vector<8x32xbf16>, vector<8x32xbf16>, vector<8x32xbf16>, vector<8x32xbf16>, vector<8x32xbf16>, vector<8x32xbf16>, vector<8x32xbf16>, vector<8x32xbf16>, vector<8x32xbf16>, vector<8x32xbf16>, vector<8x32xbf16> -> vector<8x512xbf16>
    %283 = vector.extract_strided_slice %18 {offsets = [4, 4, 0, 0], sizes = [1, 1, 8, 32], strides = [1, 1, 1, 1]} : vector<8x8x8x32xbf16> to vector<1x1x8x32xbf16>
    %284 = vector.shape_cast %283 : vector<1x1x8x32xbf16> to vector<8x32xbf16>
    %285 = vector.extract_strided_slice %18 {offsets = [4, 5, 0, 0], sizes = [1, 1, 8, 32], strides = [1, 1, 1, 1]} : vector<8x8x8x32xbf16> to vector<1x1x8x32xbf16>
    %286 = vector.shape_cast %285 : vector<1x1x8x32xbf16> to vector<8x32xbf16>
    %287 = vector.extract_strided_slice %18 {offsets = [4, 6, 0, 0], sizes = [1, 1, 8, 32], strides = [1, 1, 1, 1]} : vector<8x8x8x32xbf16> to vector<1x1x8x32xbf16>
    %288 = vector.shape_cast %287 : vector<1x1x8x32xbf16> to vector<8x32xbf16>
    %289 = vector.extract_strided_slice %18 {offsets = [4, 7, 0, 0], sizes = [1, 1, 8, 32], strides = [1, 1, 1, 1]} : vector<8x8x8x32xbf16> to vector<1x1x8x32xbf16>
    %290 = vector.shape_cast %289 : vector<1x1x8x32xbf16> to vector<8x32xbf16>
    %291 = vector.extract_strided_slice %18 {offsets = [5, 4, 0, 0], sizes = [1, 1, 8, 32], strides = [1, 1, 1, 1]} : vector<8x8x8x32xbf16> to vector<1x1x8x32xbf16>
    %292 = vector.shape_cast %291 : vector<1x1x8x32xbf16> to vector<8x32xbf16>
    %293 = vector.extract_strided_slice %18 {offsets = [5, 5, 0, 0], sizes = [1, 1, 8, 32], strides = [1, 1, 1, 1]} : vector<8x8x8x32xbf16> to vector<1x1x8x32xbf16>
    %294 = vector.shape_cast %293 : vector<1x1x8x32xbf16> to vector<8x32xbf16>
    %295 = vector.extract_strided_slice %18 {offsets = [5, 6, 0, 0], sizes = [1, 1, 8, 32], strides = [1, 1, 1, 1]} : vector<8x8x8x32xbf16> to vector<1x1x8x32xbf16>
    %296 = vector.shape_cast %295 : vector<1x1x8x32xbf16> to vector<8x32xbf16>
    %297 = vector.extract_strided_slice %18 {offsets = [5, 7, 0, 0], sizes = [1, 1, 8, 32], strides = [1, 1, 1, 1]} : vector<8x8x8x32xbf16> to vector<1x1x8x32xbf16>
    %298 = vector.shape_cast %297 : vector<1x1x8x32xbf16> to vector<8x32xbf16>
    %299 = vector.extract_strided_slice %18 {offsets = [6, 4, 0, 0], sizes = [1, 1, 8, 32], strides = [1, 1, 1, 1]} : vector<8x8x8x32xbf16> to vector<1x1x8x32xbf16>
    %300 = vector.shape_cast %299 : vector<1x1x8x32xbf16> to vector<8x32xbf16>
    %301 = vector.extract_strided_slice %18 {offsets = [6, 5, 0, 0], sizes = [1, 1, 8, 32], strides = [1, 1, 1, 1]} : vector<8x8x8x32xbf16> to vector<1x1x8x32xbf16>
    %302 = vector.shape_cast %301 : vector<1x1x8x32xbf16> to vector<8x32xbf16>
    %303 = vector.extract_strided_slice %18 {offsets = [6, 6, 0, 0], sizes = [1, 1, 8, 32], strides = [1, 1, 1, 1]} : vector<8x8x8x32xbf16> to vector<1x1x8x32xbf16>
    %304 = vector.shape_cast %303 : vector<1x1x8x32xbf16> to vector<8x32xbf16>
    %305 = vector.extract_strided_slice %18 {offsets = [6, 7, 0, 0], sizes = [1, 1, 8, 32], strides = [1, 1, 1, 1]} : vector<8x8x8x32xbf16> to vector<1x1x8x32xbf16>
    %306 = vector.shape_cast %305 : vector<1x1x8x32xbf16> to vector<8x32xbf16>
    %307 = vector.extract_strided_slice %18 {offsets = [7, 4, 0, 0], sizes = [1, 1, 8, 32], strides = [1, 1, 1, 1]} : vector<8x8x8x32xbf16> to vector<1x1x8x32xbf16>
    %308 = vector.shape_cast %307 : vector<1x1x8x32xbf16> to vector<8x32xbf16>
    %309 = vector.extract_strided_slice %18 {offsets = [7, 5, 0, 0], sizes = [1, 1, 8, 32], strides = [1, 1, 1, 1]} : vector<8x8x8x32xbf16> to vector<1x1x8x32xbf16>
    %310 = vector.shape_cast %309 : vector<1x1x8x32xbf16> to vector<8x32xbf16>
    %311 = vector.extract_strided_slice %18 {offsets = [7, 6, 0, 0], sizes = [1, 1, 8, 32], strides = [1, 1, 1, 1]} : vector<8x8x8x32xbf16> to vector<1x1x8x32xbf16>
    %312 = vector.shape_cast %311 : vector<1x1x8x32xbf16> to vector<8x32xbf16>
    %313 = vector.extract_strided_slice %18 {offsets = [7, 7, 0, 0], sizes = [1, 1, 8, 32], strides = [1, 1, 1, 1]} : vector<8x8x8x32xbf16> to vector<1x1x8x32xbf16>
    %314 = vector.shape_cast %313 : vector<1x1x8x32xbf16> to vector<8x32xbf16>
    %315 = tpu.concatenate %284, %286, %288, %290, %292, %294, %296, %298, %300, %302, %304, %306, %308, %310, %312, %314 in 1 : vector<8x32xbf16>, vector<8x32xbf16>, vector<8x32xbf16>, vector<8x32xbf16>, vector<8x32xbf16>, vector<8x32xbf16>, vector<8x32xbf16>, vector<8x32xbf16>, vector<8x32xbf16>, vector<8x32xbf16>, vector<8x32xbf16>, vector<8x32xbf16>, vector<8x32xbf16>, vector<8x32xbf16>, vector<8x32xbf16>, vector<8x32xbf16> -> vector<8x512xbf16>
    %316 = tpu.concatenate %51, %84, %117, %150, %183, %216, %249, %282, %315 in 0 : vector<8x512xbf16>, vector<8x512xbf16>, vector<8x512xbf16>, vector<8x512xbf16>, vector<8x512xbf16>, vector<8x512xbf16>, vector<8x512xbf16>, vector<8x512xbf16>, vector<8x512xbf16> -> vector<72x512xbf16>
    %c0_8 = arith.constant 0 : index
    %c0_9 = arith.constant 0 : index
    %317 = vector.load %arg4[%c0_8, %c0_9] : memref<512x64xbf16, #tpu.memory_space<vmem>>, vector<512x64xbf16>
    %cst_10 = arith.constant dense<0.000000e+00> : vector<72x64xf32>
    %318 = tpu.matmul %316, %317, %cst_10 {dimension_numbers = #tpu.dot_dimension_numbers<[1], [0], [0], [1], [0, 0, 1, 1], [], []>} : vector<72x512xbf16>, vector<512x64xbf16>, vector<72x64xf32> -> vector<72x64xf32>
    %c0_11 = arith.constant 0 : index
    %c0_12 = arith.constant 0 : index
    %319 = vector.load %arg5[%c0_11, %c0_12] : memref<1x64xf32, #tpu.memory_space<vmem>>, vector<1x64xf32>
    %320 = vector.broadcast %319 : vector<1x64xf32> to vector<72x64xf32>
    %321 = arith.addf %318, %320 : vector<72x64xf32>
    %cst_13 = arith.constant 0.000000e+00 : f32
    %322 = vector.broadcast %cst_13 : f32 to vector<72x64xf32>
    %323 = arith.maximumf %321, %322 : vector<72x64xf32>
    %324 = arith.truncf %323 : vector<72x64xf32> to vector<72x64xbf16>
    %325 = vector.shape_cast %324 : vector<72x64xbf16> to vector<9x8x64xbf16>
    %326 = vector.extract_strided_slice %325 {offsets = [0, 0, 0], sizes = [1, 8, 64], strides = [1, 1, 1]} : vector<9x8x64xbf16> to vector<1x8x64xbf16>
    %327 = vector.shape_cast %326 : vector<1x8x64xbf16> to vector<8x64xbf16>
    %328 = vector.extract_strided_slice %325 {offsets = [1, 0, 0], sizes = [1, 8, 64], strides = [1, 1, 1]} : vector<9x8x64xbf16> to vector<1x8x64xbf16>
    %329 = vector.shape_cast %328 : vector<1x8x64xbf16> to vector<8x64xbf16>
    %330 = vector.extract_strided_slice %325 {offsets = [2, 0, 0], sizes = [1, 8, 64], strides = [1, 1, 1]} : vector<9x8x64xbf16> to vector<1x8x64xbf16>
    %331 = vector.shape_cast %330 : vector<1x8x64xbf16> to vector<8x64xbf16>
    %332 = vector.extract_strided_slice %325 {offsets = [3, 0, 0], sizes = [1, 8, 64], strides = [1, 1, 1]} : vector<9x8x64xbf16> to vector<1x8x64xbf16>
    %333 = vector.shape_cast %332 : vector<1x8x64xbf16> to vector<8x64xbf16>
    %334 = vector.extract_strided_slice %325 {offsets = [4, 0, 0], sizes = [1, 8, 64], strides = [1, 1, 1]} : vector<9x8x64xbf16> to vector<1x8x64xbf16>
    %335 = vector.shape_cast %334 : vector<1x8x64xbf16> to vector<8x64xbf16>
    %336 = vector.extract_strided_slice %325 {offsets = [5, 0, 0], sizes = [1, 8, 64], strides = [1, 1, 1]} : vector<9x8x64xbf16> to vector<1x8x64xbf16>
    %337 = vector.shape_cast %336 : vector<1x8x64xbf16> to vector<8x64xbf16>
    %338 = vector.extract_strided_slice %325 {offsets = [6, 0, 0], sizes = [1, 8, 64], strides = [1, 1, 1]} : vector<9x8x64xbf16> to vector<1x8x64xbf16>
    %339 = vector.shape_cast %338 : vector<1x8x64xbf16> to vector<8x64xbf16>
    %340 = vector.extract_strided_slice %325 {offsets = [7, 0, 0], sizes = [1, 8, 64], strides = [1, 1, 1]} : vector<9x8x64xbf16> to vector<1x8x64xbf16>
    %341 = vector.shape_cast %340 : vector<1x8x64xbf16> to vector<8x64xbf16>
    %342 = vector.extract_strided_slice %325 {offsets = [8, 0, 0], sizes = [1, 8, 64], strides = [1, 1, 1]} : vector<9x8x64xbf16> to vector<1x8x64xbf16>
    %343 = vector.shape_cast %342 : vector<1x8x64xbf16> to vector<8x64xbf16>
    %344 = tpu.concatenate %327, %329, %331, %333, %335, %337, %339, %341, %343 in 1 : vector<8x64xbf16>, vector<8x64xbf16>, vector<8x64xbf16>, vector<8x64xbf16>, vector<8x64xbf16>, vector<8x64xbf16>, vector<8x64xbf16>, vector<8x64xbf16>, vector<8x64xbf16> -> vector<8x576xbf16>
    %c0_14 = arith.constant 0 : index
    %c0_15 = arith.constant 0 : index
    %345 = vector.load %arg6[%c0_14, %c0_15] : memref<576x64xbf16, #tpu.memory_space<vmem>>, vector<576x64xbf16>
    %cst_16 = arith.constant dense<0.000000e+00> : vector<8x64xf32>
    %346 = tpu.matmul %344, %345, %cst_16 {dimension_numbers = #tpu.dot_dimension_numbers<[1], [0], [0], [1], [0, 0, 1, 1], [], []>} : vector<8x576xbf16>, vector<576x64xbf16>, vector<8x64xf32> -> vector<8x64xf32>
    %c0_17 = arith.constant 0 : index
    %c0_18 = arith.constant 0 : index
    %347 = vector.load %arg7[%c0_17, %c0_18] : memref<1x64xf32, #tpu.memory_space<vmem>>, vector<1x64xf32>
    %348 = vector.broadcast %347 : vector<1x64xf32> to vector<8x64xf32>
    %349 = arith.addf %346, %348 : vector<8x64xf32>
    %cst_19 = arith.constant 0.000000e+00 : f32
    %350 = vector.broadcast %cst_19 : f32 to vector<8x64xf32>
    %351 = arith.maximumf %349, %350 : vector<8x64xf32>
    %352 = arith.truncf %351 : vector<8x64xf32> to vector<8x64xbf16>
    %c0_20 = arith.constant 0 : index
    %c0_21 = arith.constant 0 : index
    %353 = vector.load %arg8[%c0_20, %c0_21] : memref<64x512xbf16, #tpu.memory_space<vmem>>, vector<64x512xbf16>
    %cst_22 = arith.constant dense<0.000000e+00> : vector<8x512xf32>
    %354 = tpu.matmul %352, %353, %cst_22 {dimension_numbers = #tpu.dot_dimension_numbers<[1], [0], [0], [1], [0, 0, 1, 1], [], []>} : vector<8x64xbf16>, vector<64x512xbf16>, vector<8x512xf32> -> vector<8x512xf32>
    %c0_23 = arith.constant 0 : index
    %c0_24 = arith.constant 0 : index
    %355 = vector.load %arg9[%c0_23, %c0_24] : memref<1x512xf32, #tpu.memory_space<vmem>>, vector<1x512xf32>
    %356 = vector.broadcast %355 : vector<1x512xf32> to vector<8x512xf32>
    %357 = arith.addf %354, %356 : vector<8x512xf32>
    %cst_25 = arith.constant 0.000000e+00 : f32
    %358 = vector.broadcast %cst_25 : f32 to vector<8x512xf32>
    %359 = arith.maximumf %357, %358 : vector<8x512xf32>
    %360 = arith.truncf %359 : vector<8x512xf32> to vector<8x512xbf16>
    %c0_26 = arith.constant 0 : index
    %c0_27 = arith.constant 0 : index
    %361 = vector.load %arg10[%c0_26, %c0_27] : memref<512x128xbf16, #tpu.memory_space<vmem>>, vector<512x128xbf16>
    %cst_28 = arith.constant dense<0.000000e+00> : vector<8x128xf32>
    %362 = tpu.matmul %360, %361, %cst_28 {dimension_numbers = #tpu.dot_dimension_numbers<[1], [0], [0], [1], [0, 0, 1, 1], [], []>} : vector<8x512xbf16>, vector<512x128xbf16>, vector<8x128xf32> -> vector<8x128xf32>
    %c0_29 = arith.constant 0 : index
    %c0_30 = arith.constant 0 : index
    %363 = vector.load %arg11[%c0_29, %c0_30] : memref<1x128xf32, #tpu.memory_space<vmem>>, vector<1x128xf32>
    %364 = vector.broadcast %363 : vector<1x128xf32> to vector<8x128xf32>
    %365 = arith.addf %362, %364 : vector<8x128xf32>
    %c0_31 = arith.constant 0 : index
    %c0_32 = arith.constant 0 : index
    %366 = vector.load %arg12[%c0_31, %c0_32] : memref<8x128xf32, #tpu.memory_space<vmem>>, vector<8x128xf32>
    tpu.vector_store %arg12[%c0_31, %c0_32], %365 {strides = array<i32>} : memref<8x128xf32, #tpu.memory_space<vmem>>, vector<8x128xf32>,
    return
  }
  func.func @transform_0(%arg0: i32) -> (i32, i32, i32, i32) {
    %c0_i32 = arith.constant 0 : i32
    %c0_i32_0 = arith.constant 0 : i32
    %c0_i32_1 = arith.constant 0 : i32
    %c0_i32_2 = arith.constant 0 : i32
    return %c0_i32, %c0_i32_0, %arg0, %c0_i32_1 : i32, i32, i32, i32
  }
  func.func @transform_1(%arg0: i32) -> (i32, i32) {
    %c0_i32 = arith.constant 0 : i32
    %c0_i32_0 = arith.constant 0 : i32
    %c0_i32_1 = arith.constant 0 : i32
    return %c0_i32, %c0_i32_0 : i32, i32
  }
  func.func @transform_2(%arg0: i32) -> (i32, i32) {
    %c0_i32 = arith.constant 0 : i32
    %c0_i32_0 = arith.constant 0 : i32
    %c0_i32_1 = arith.constant 0 : i32
    return %c0_i32, %c0_i32_0 : i32, i32
  }
  func.func @transform_3(%arg0: i32) -> (i32, i32) {
    %c0_i32 = arith.constant 0 : i32
    %c0_i32_0 = arith.constant 0 : i32
    %c0_i32_1 = arith.constant 0 : i32
    return %c0_i32, %c0_i32_0 : i32, i32
  }
  func.func @transform_4(%arg0: i32) -> (i32, i32) {
    %c0_i32 = arith.constant 0 : i32
    %c0_i32_0 = arith.constant 0 : i32
    %c0_i32_1 = arith.constant 0 : i32
    return %c0_i32, %c0_i32_0 : i32, i32
  }
  func.func @transform_5(%arg0: i32) -> (i32, i32) {
    %c0_i32 = arith.constant 0 : i32
    %c0_i32_0 = arith.constant 0 : i32
    %c0_i32_1 = arith.constant 0 : i32
    return %c0_i32, %c0_i32_0 : i32, i32
  }
  func.func @transform_6(%arg0: i32) -> (i32, i32) {
    %c0_i32 = arith.constant 0 : i32
    %c0_i32_0 = arith.constant 0 : i32
    %c0_i32_1 = arith.constant 0 : i32
    return %c0_i32, %c0_i32_0 : i32, i32
  }
  func.func @transform_7(%arg0: i32) -> (i32, i32) {
    %c0_i32 = arith.constant 0 : i32
    %c0_i32_0 = arith.constant 0 : i32
    %c0_i32_1 = arith.constant 0 : i32
    return %c0_i32, %c0_i32_0 : i32, i32
  }
  func.func @transform_8(%arg0: i32) -> (i32, i32) {
    %c0_i32 = arith.constant 0 : i32
    %c0_i32_0 = arith.constant 0 : i32
    %c0_i32_1 = arith.constant 0 : i32
    return %c0_i32, %c0_i32_0 : i32, i32
  }
  func.func @transform_9(%arg0: i32) -> (i32, i32) {
    %c0_i32 = arith.constant 0 : i32
    %c0_i32_0 = arith.constant 0 : i32
    %c0_i32_1 = arith.constant 0 : i32
    return %c0_i32, %c0_i32_0 : i32, i32
  }
  func.func @transform_10(%arg0: i32) -> (i32, i32) {
    %c0_i32 = arith.constant 0 : i32
    %c0_i32_0 = arith.constant 0 : i32
    %c0_i32_1 = arith.constant 0 : i32
    return %c0_i32, %c0_i32_0 : i32, i32
  }
  func.func @transform_11(%arg0: i32) -> (i32, i32) {
    %c0_i32 = arith.constant 0 : i32
    %c0_i32_0 = arith.constant 0 : i32
    return %arg0, %c0_i32 : i32, i32
  }
}

</mosaic_0001>

<bundles_post_ra>
// kernel: dqn_forward.1
= control target key start
LH: loop header
LB: loop body
LE: loop exit
PB: predicated region body
PF: predicated region fallthrough
CT: control target
= control target key end

     0   :  { %v5474_v2 = vmov 0   ;;  %s3871_s12 = smov 64   ;;  %vm426_vm0 = vcmask 523264   ;;  %s3873_s20 = smov 96   ;;  %vm1243_vm1 = vcmask 261120   ;;  %vm1249_vm2 = vcmask 785408   ;;  %s5462_s0 = inlined_call_operand.vmem [shape: bf16[9,9,8,64], index: 0, kind: input, shape index: {}]   ;;  %s5463_s1 = inlined_call_operand.vmem [shape: bf16[256,32], index: 1, kind: input, shape index: {}]   ;;  %s5464_s2 = inlined_call_operand.vmem [shape: f32[1,32], index: 2, kind: input, shape index: {}]   ;;  %s5465_s3 = inlined_call_operand.vmem [shape: bf16[512,64], index: 3, kind: input, shape index: {}]   ;;  %s5466_s5 = inlined_call_operand.vmem [shape: bf16[576,64], index: 5, kind: input, shape index: {}]   ;;  %s5467_s4 = inlined_call_operand.vmem [shape: f32[1,64], index: 4, kind: input, shape index: {}]   ;;  %s5468_s7 = inlined_call_operand.vmem [shape: bf16[64,512], index: 7, kind: input, shape index: {}]   ;;  %s5469_s9 = inlined_call_operand.vmem [shape: bf16[512,128], index: 9, kind: input, shape index: {}]   ;;  %s5470_s6 = inlined_call_operand.vmem [shape: f32[1,64], index: 6, kind: input, shape index: {}]   ;;  %s5471_s8 = inlined_call_operand.vmem [shape: f32[1,512], index: 8, kind: input, shape index: {}]   ;;  %s5472_s10 = inlined_call_operand.vmem [shape: f32[1,128], index: 10, kind: input, shape index: {}]   ;;  %s5473_s11 = inlined_call_operand.vmem [shape: f32[8,128], index: 11, kind: output, shape index: {}]  }
   0x1   :  { %v3939_v0 = vld [vmem:[%s5462_s0 + $0x28] sm:$0xf]  ;;  %v3944_v1 = vld [vmem:[%s5462_s0 + $0x2c] sm:$0xf]  ;;  %706 = vmatprep.subr.bf16.mxu0 %v5474_v2  ;;  %v3952_v4 = vld [vmem:[%s5462_s0 + $0x4] sm:$0xf] }
   0x2   :  { %v3133_v3 = vcombine.low %v3939_v0, %v3944_v1  ;;  %v3957_v5 = vld [vmem:[%s5462_s0 + $0x8] sm:$0xf]  ;;  %v3962_v6 = vld [vmem:[%s5462_s0 + $0x30] sm:$0xf]  ;;  %v3967_v7 = vld [vmem:[%s5462_s0 + $0x34] sm:$0xf] }
   0x3   :  { %v3972_v8 = vld [vmem:[%s5462_s0 + $0x38] sm:$0xf]  ;;  %v3129_v9 = vcombine.low %v3952_v4, %v3957_v5  ;;  %v3134_v11 = vcombine.low %v3962_v6, %v3967_v7  ;;  %v3986_v13 = vld [vmem:[%s5462_s0 + $0xc] sm:$0xf]  ;;  %v3991_v14 = vld [vmem:[%s5462_s0 + $0x10] sm:$0xf] }
   0x4   :  { %336 = vrot.lane.b32.xlu0 %v3133_v3, %s3871_s12  ;;  %v3998_v16 = vld [vmem:[%s5462_s0 + $0x3c] sm:$0xf]  ;;  %v4003_v17 = vld [vmem:[%s5462_s0 + $0x14] sm:$0xf]  ;;  %v4008_v18 = vld [vmem:[%s5462_s0 + $0x40] sm:$0xf]  ;;  %v3130_v19 = vcombine.low %v3986_v13, %v3991_v14 }
   0x5   :  { %338 = vrot.lane.b32.xlu1 %v3134_v11, %s3871_s12  ;;  %v4016_v20 = vld [vmem:[%s5462_s0 + $0x18] sm:$0xf]  ;;  %v4025_v23 = vld [vmem:[%s5462_s0 + $0x1c] sm:$0xf]  ;;  %v4032_v25 = vld [vmem:[%s5462_s0 + $0x50] sm:$0xf]  ;;  %v3135_v26 = vcombine.low %v3972_v8, %v3998_v16 }
   0x6   :  { %v4040_v27 = vld [vmem:[%s5462_s0 + $0x54] sm:$0xf]  ;;  %v4045_v28 = vld [vmem:[%s5462_s0 + $0x58] sm:$0xf]  ;;  %v4050_v29 = vld [vmem:[%s5462_s0 + $0x5c] sm:$0xf]  ;;  %v3131_v33 = vcombine.low %v4003_v17, %v4016_v20 }
   0x7   :  { %v56_v30 = vld [vmem:[%s5462_s0 + $0x44] sm:$0xf]  ;;  %v4065_v34 = vld [vmem:[%s5462_s0 + $0x60] sm:$0xf]  ;;  %v3682_v40 = vld [vmem:[%s5463_s1 + $0x8] sm:$0xff]   ;;  %v3138_v48 = vcombine.low %v4040_v27, %v4045_v28  ;;  %vm1601_vm3 = vcmask 1043456  }
   0x8   :  { %328 = vrot.lane.b32.xlu0 %v3129_v9, %s3871_s12  ;;  %v3679_v35 = vld [vmem:[%s5463_s1] sm:$0xff]   ;;  %v3136_v39 = vcombine.low %v4008_v18, %v56_v30  ;;  %v4088_v41 = vld [vmem:[%s5462_s0 + $0x4c] sm:$0xf]  ;;  %v3683_v43 = vld [vmem:[%s5463_s1 + $0x10] sm:$0xff]   ;;  %v3139_v53 = vcombine.low %v4050_v29, %v4065_v34  ;;  %vm3875_vm4 = vmmov 0  }
   0x9   :  { %330 = vrot.lane.b32.xlu1 %v3130_v19, %s3871_s12  ;;  %v4073_v36 = vld [vmem:[%s5462_s0 + $0x64] sm:$0xf]  ;;  %v47_v37 = vld [vmem:[%s5462_s0 + $0x20] sm:$0xf]  ;;  %707 = vmatpush1.bf16.msra.mxu0 %v3679_v35  ;;  %v3137_v44 = vcombine.low %v4088_v41, %v4032_v25  ;;  %v4102_v45 = vld [vmem:[%s5462_s0 + $0x74] sm:$0xf] }
   0xa   :  { %708 = vmatprep.subr.bf16.mxu0 %v5474_v2  ;;  %v3132_v42 = vcombine.low %v4025_v23, %v47_v37  ;;  %v4107_v46 = vld [vmem:[%s5462_s0 + $0x78] sm:$0xf]  ;;  %v4118_v49 = vld [vmem:[%s5462_s0 + $0x7c] sm:$0xf]  ;;  %v4123_v50 = vld [vmem:[%s5462_s0 + $0x80] sm:$0xf] }
   0xb   :  { %v65_v51 = vld [vmem:[%s5462_s0 + $0x68] sm:$0xf]  ;;  %v3686_v54 = vld [vmem:[%s5463_s1 + $0x18] sm:$0xff]   ;;  %v4139_v55 = vld [vmem:[%s5462_s0 + $0x70] sm:$0xf]  ;;  %v3142_v62 = vcombine.low %v4107_v46, %v4118_v49 }
   0xc   :  { %340 = vrot.lane.b32.xlu0 %v3135_v26, %s3871_s12  ;;  %v4145_v56 = vld [vmem:[%s5462_s0 + $0x84] sm:$0xf]  ;;  %v4150_v57 = vld [vmem:[%s5462_s0 + $0x88] sm:$0xf]  ;;  %v3140_v58 = vcombine.low %v4073_v36, %v65_v51  ;;  %v3141_v60 = vcombine.low %v4139_v55, %v4102_v45  ;;  %v74_v3 = vld [vmem:[%s5462_s0 + $0x8c] sm:$0xf] }
   0xd   :  { %332 = vrot.lane.b32.xlu1 %v3131_v33, %s3871_s12  ;;  %709 = vmatpush1.bf16.msra.mxu0 %v3682_v40  ;;  %v3687_v61 = vld [vmem:[%s5463_s1 + $0x20] sm:$0xff]   ;;  %v3690_v63 = vld [vmem:[%s5463_s1 + $0x28] sm:$0xff]   ;;  %v4175_v9 = vld [vmem:[%s5462_s0 + $0x98] sm:$0xf]  ;;  %v3143_v19 = vcombine.low %v4123_v50, %v4145_v56  ;;  %v3144_v37 = vcombine.low %v4150_v57, %v74_v3 }
   0xe   :  { %710 = vmatprep.subr.bf16.mxu0 %v5474_v2  ;;  %v4180_v11 = vld [vmem:[%s5462_s0 + $0x9c] sm:$0xf]  ;;  %v4188_v26 = vld [vmem:[%s5462_s0 + $0x94] sm:$0xf]  ;;  %v4196_v33 = vld [vmem:[%s5462_s0 + $0xa0] sm:$0xf] }
   0xf   :  { %v4201_v35 = vld [vmem:[%s5462_s0 + $0xa4] sm:$0xf]  ;;  %v4210_v40 = vld [vmem:[%s5462_s0 + $0xa8] sm:$0xf]  ;;  %v4228_v51 = vld [vmem:[%s5462_s0 + $0xbc] sm:$0xf] }
  0x10   :  { %342 = vrot.lane.b32.xlu0 %v3136_v39, %s3871_s12  ;;  %v4261_v3 = vld [vmem:[%s5462_s0 + $0xd0] sm:$0xf]  ;;  %v4324_v59 = vld [vmem:[%s5462_s0 + $0xe8] sm:$0xf]  ;;  %v3710_v38 = vld [vmem:[%s5463_s1 + $0x78] sm:$0xff]  }
  0x11   :  { %334 = vrot.lane.b32.xlu1 %v3132_v42, %s3871_s12  ;;  %711 = vmatpush1.bf16.msra.mxu0 %v3683_v43  ;;  %v4215_v42 = vld [vmem:[%s5462_s0 + $0xac] sm:$0xf]  ;;  %v3691_v43 = vld [vmem:[%s5463_s1 + $0x30] sm:$0xff]   ;;  %v110_v24 = vld [vmem:[%s5462_s0 + $0x11c] sm:$0xf] }
  0x12   :  { %712 = vmatprep.subr.bf16.mxu0 %v5474_v2  ;;  %v3699_v52 = vld [vmem:[%s5463_s1 + $0x50] sm:$0xff]   ;;  %v4448_v31 = vld [vmem:[%s5462_s0 + $0x128] sm:$0xf] }
  0x13   :  { %5491 = vst [vmem:[#allocation8_spill] sm:$0xff] %v4448_v31  ;;  %v4478_v22 = vld [vmem:[%s5462_s0 + $0x134] sm:$0xf] }
  0x14   :  { %344 = vrot.lane.b32.xlu0 %v3137_v44, %s3871_s12  ;;  %v3145_v44 = vcombine.low %v4188_v26, %v4175_v9  ;;  %5493 = vst [vmem:[#allocation10_spill] sm:$0xff] %v4478_v22 }
  0x15   :  { %346 = vrot.lane.b32.xlu1 %v3138_v48, %s3871_s12  ;;  %713 = vmatpush1.bf16.msra.mxu0 %v3686_v54  ;;  %v4239_v54 = vld [vmem:[%s5462_s0 + $0xc4] sm:$0xf]  ;;  %v4278_v48 = vld [vmem:[%s5462_s0 + $0xb8] sm:$0xf] }
  0x16   :  { %714 = vmatprep.subr.bf16.mxu0 %v5474_v2 }
  0x18   :  { %348 = vrot.lane.b32.xlu0 %v3139_v53, %s3871_s12  ;;  %v4234_v53 = vld [vmem:[%s5462_s0 + $0xc0] sm:$0xf] }
  0x19   :  { %350 = vrot.lane.b32.xlu1 %v3140_v58, %s3871_s12  ;;  %715 = vmatpush1.bf16.msra.mxu0 %v3687_v61  ;;  %v4244_v58 = vld [vmem:[%s5462_s0 + $0xc8] sm:$0xf]  ;;  %v3694_v61 = vld [vmem:[%s5463_s1 + $0x38] sm:$0xff]   ;;  %v3150_v39 = vcombine.low %v4234_v53, %v4239_v54 }
  0x1a   :  { %716 = vmatprep.subr.bf16.mxu0 %v5474_v2 }
  0x1c   :  { %352 = vrot.lane.b32.xlu0 %v3141_v60, %s3871_s12  ;;  %v3146_v60 = vcombine.low %v4180_v11, %v4196_v33 }
  0x1d   :  { %354 = vrot.lane.b32.xlu1 %v3142_v62, %s3871_s12  ;;  %717 = vmatpush1.bf16.msra.mxu0 %v3690_v63  ;;  %v4254_v62 = vld [vmem:[%s5462_s0 + $0xcc] sm:$0xf]  ;;  %v3147_v63 = vcombine.low %v4201_v35, %v4210_v40 }
  0x1e   :  { %718 = vmatprep.subr.bf16.mxu0 %v5474_v2 }
  0x20   :  { %356 = vrot.lane.b32.xlu0 %v3143_v19, %s3871_s12  ;;  %v83_v19 = vld [vmem:[%s5462_s0 + $0xb0] sm:$0xf] }
  0x21   :  { %358 = vrot.lane.b32.xlu1 %v3144_v37, %s3871_s12  ;;  %719 = vmatpush1.bf16.msra.mxu0 %v3691_v43  ;;  %v3148_v43 = vcombine.low %v4215_v42, %v83_v19  ;;  %v3695_v37 = vld [vmem:[%s5463_s1 + $0x40] sm:$0xff]  }
  0x22   :  { %720 = vmatprep.subr.bf16.mxu0 %v5474_v2  ;;  %v4304_v19 = vld [vmem:[%s5462_s0 + $0xe0] sm:$0xf] }
  0x24   :  { %360 = vrot.lane.b32.xlu0 %v3145_v44, %s3871_s12  ;;  %v3149_v44 = vcombine.low %v4278_v48, %v4228_v51 }
  0x25   :  { %362 = vrot.lane.b32.xlu1 %v3146_v60, %s3871_s12  ;;  %721 = vmatpush1.bf16.msra.mxu0 %v3694_v61  ;;  %v92_v60 = vld [vmem:[%s5462_s0 + $0xd4] sm:$0xf]  ;;  %v3698_v61 = vld [vmem:[%s5463_s1 + $0x48] sm:$0xff]  }
  0x26   :  { %722 = vmatprep.subr.bf16.mxu0 %v5474_v2  ;;  %v3152_v30 = vcombine.low %v4261_v3, %v92_v60  ;;  %v3702_v60 = vld [vmem:[%s5463_s1 + $0x58] sm:$0xff]  }
  0x28   :  { %364 = vrot.lane.b32.xlu0 %v3147_v63, %s3871_s12  ;;  %v3151_v63 = vcombine.low %v4244_v58, %v4254_v62 }
  0x29   :  { %366 = vrot.lane.b32.xlu1 %v3148_v43, %s3871_s12  ;;  %723 = vmatpush1.bf16.msra.mxu0 %v3695_v37  ;;  %v4309_v43 = vld [vmem:[%s5462_s0 + $0xe4] sm:$0xf]  ;;  %v4315_v37 = vld [vmem:[%s5462_s0 + $0xdc] sm:$0xf] }
  0x2a   :  { %724 = vmatprep.subr.bf16.mxu0 %v5474_v2  ;;  %v3153_v47 = vcombine.low %v4315_v37, %v4304_v19 }
  0x2c   :  { %368 = vrot.lane.b32.xlu0 %v3149_v44, %s3871_s12  ;;  %v3706_v44 = vld [vmem:[%s5463_s1 + $0x68] sm:$0xff]  }
  0x2d   :  { %370 = vrot.lane.b32.xlu1 %v3150_v39, %s3871_s12  ;;  %725 = vmatpush1.bf16.msra.mxu0 %v3698_v61  ;;  %v3154_v39 = vcombine.low %v4309_v43, %v4324_v59  ;;  %v4343_v61 = vld [vmem:[%s5462_s0 + $0xec] sm:$0xf] }
  0x2e   :  { %726 = vmatprep.subr.bf16.mxu0 %v5474_v2 }
  0x30   :  { %372 = vrot.lane.b32.xlu0 %v3151_v63, %s3871_s12  ;;  %v4348_v63 = vld [vmem:[%s5462_s0 + $0xf0] sm:$0xf] }
  0x31   :  { %374 = vrot.lane.b32.xlu1 %v3152_v30, %s3871_s12  ;;  %727 = vmatpush1.bf16.msra.mxu0 %v3699_v52  ;;  %v3155_v30 = vcombine.low %v4343_v61, %v4348_v63  ;;  %v4367_v52 = vld [vmem:[%s5462_s0 + $0xf4] sm:$0xf] }
  0x32   :  { %728 = vmatprep.subr.bf16.mxu0 %v5474_v2 }
  0x34   :  { %376 = vrot.lane.b32.xlu0 %v3153_v47, %s3871_s12  ;;  %v3703_v47 = vld [vmem:[%s5463_s1 + $0x60] sm:$0xff]  }
  0x35   :  { %378 = vrot.lane.b32.xlu1 %v3154_v39, %s3871_s12  ;;  %729 = vmatpush1.bf16.msra.mxu0 %v3702_v60  ;;  %v101_v39 = vld [vmem:[%s5462_s0 + $0xf8] sm:$0xf]  ;;  %v4387_v60 = vld [vmem:[%s5462_s0 + $0x100] sm:$0xf] }
  0x36   :  { %730 = vmatprep.subr.bf16.mxu0 %v5474_v2 }
  0x38   :  { %380 = vrot.lane.b32.xlu0 %v3155_v30, %s3871_s12  ;;  %v3156_v30 = vcombine.low %v4367_v52, %v101_v39 }
  0x39   :  { %731 = vmatpush1.bf16.msra.mxu0 %v3703_v47  ;;  %v3707_v47 = vld [vmem:[%s5463_s1 + $0x70] sm:$0xff]  }
  0x3a   :  { %732 = vmatprep.subr.bf16.mxu0 %v5474_v2  ;;  %382 = vrot.lane.b32.xlu1 %v3156_v30, %s3871_s12  ;;  %v4401_v30 = vld [vmem:[%s5462_s0 + $0x108] sm:$0xf] }
  0x3b   :  { %5485 = vst [vmem:[#allocation2_spill] sm:$0xff] %v4401_v30 }
  0x3d   :  { %733 = vmatpush1.bf16.msra.mxu0 %v3706_v44  ;;  %v4392_v44 = vld [vmem:[%s5462_s0 + $0x104] sm:$0xf] }
  0x3e   :  { %734 = vmatprep.subr.bf16.mxu0 %v5474_v2  ;;  %v3157_v39 = vcombine.low %v4387_v60, %v4392_v44 }
  0x40   :  { %384 = vrot.lane.b32.xlu0 %v3157_v39, %s3871_s12  ;;  %v4421_v39 = vld [vmem:[%s5462_s0 + $0x114] sm:$0xf] }
  0x41   :  { %735 = vmatpush1.bf16.msra.mxu0 %v3707_v47  ;;  %v4406_v47 = vld [vmem:[%s5462_s0 + $0x10c] sm:$0xf]  ;;  %5488 = vst [vmem:[#allocation5_spill] sm:$0xff] %v4421_v39 }
  0x42   :  { %736 = vmatprep.subr.bf16.mxu0 %v5474_v2  ;;  %5486 = vst [vmem:[#allocation3_spill] sm:$0xff] %v4406_v47  ;;  %v3158_v2 = vcombine.low %v4401_v30, %v4406_v47  ;;  %v5494_v47 = vcombine.low %v3944_v1, %v3962_v6 }
  0x44   :  { %386 = vrot.lane.b32.xlu1 %v3158_v2, %s3871_s12  ;;  %v4431_v2 = vld [vmem:[%s5462_s0 + $0x118] sm:$0xf] }
  0x45   :  { %737 = vmatpush1.bf16.msra.mxu0 %v3710_v38  ;;  %v4416_v38 = vld [vmem:[%s5462_s0 + $0x110] sm:$0xf]  ;;  %5489 = vst [vmem:[#allocation6_spill] sm:$0xff] %v4431_v2  ;;  %v3160_v21 = vcombine.low %v4431_v2, %v110_v24  ;;  %v4456_v24 = vld [vmem:[%s5462_s0 + $0x12c] sm:$0xf] }
  0x46   :  { %5487 = vst [vmem:[#allocation4_spill] sm:$0xff] %v4416_v38  ;;  %v3159_v32 = vcombine.low %v4416_v38, %v4421_v39  ;;  %5492 = vst [vmem:[#allocation9_spill] sm:$0xff] %v4456_v24 }
  0x48   :  { %388 = vrot.lane.b32.xlu0 %v3159_v32, %s3871_s12  ;;  %390 = vrot.lane.b32.xlu1 %v3160_v21, %s3871_s12  ;;  %v4443_v32 = vld [vmem:[%s5462_s0 + $0x124] sm:$0xf]  ;;  %v4461_v21 = vld [vmem:[%s5462_s0 + $0x130] sm:$0xf] }
  0x49   :  { %5490 = vst [vmem:[#allocation7_spill] sm:$0xff] %v4443_v32  ;;  %v3165_v10 = vcombine.low %v4443_v32, %v4448_v31  ;;  %v3166_v15 = vcombine.low %v4456_v24, %v4461_v21  ;;  %v39_v32 = vld [vmem:[%s5462_s0] sm:$0xf] }
  0x4a   :  { %v3097_v31 = vcombine.low %v39_v32, %v3952_v4  ;;  %v119_v4 = vld [vmem:[%s5462_s0 + $0x140] sm:$0xf] }
  0x4c   :  { %418 = vrot.lane.b32.xlu0 %v3165_v10, %s3871_s12  ;;  %420 = vrot.lane.b32.xlu1 %v3166_v15, %s3871_s12  ;;  %v48_v10 = vld [vmem:[%s5462_s0 + $0x24] sm:$0xf]  ;;  %v4483_v15 = vld [vmem:[%s5462_s0 + $0x138] sm:$0xf] }
  0x4d   :  { %v3101_v12 = vcombine.low %v48_v10, %v3939_v0  ;;  %v3167_v0 = vcombine.low %v4478_v22, %v4483_v15  ;;  %v4500_v22 = vld [vmem:[%s5462_s0 + $0x13c] sm:$0xf] }
  0x4e   :  { %v3168_v1 = vcombine.low %v4500_v22, %v119_v4 }
  0x50   :  { %422 = vrot.lane.b32.xlu0 %v3167_v0, %s3871_s12  ;;  %424 = vrot.lane.b32.xlu1 %v3168_v1, %s3871_s12  ;;  %v5498_v1 = vcombine.low %v3998_v16, %v4008_v18  ;;  %v5500_v18 = vcombine.low %v4032_v25, %v4040_v27  ;;  %v66_v25 = vld [vmem:[%s5462_s0 + $0x6c] sm:$0xf] }
  0x51   :  { %v3109_v27 = vcombine.low %v66_v25, %v4139_v55 }
  0x76   :  { %v337_v10 = vpop.permute.xlu0 %336 }
  0x77   :  { %v445_v2 = vsel %vm426_vm0, %v3101_v12, %v337_v10  ;;  %v339_v39 = vpop.permute.xlu1 %338  ;;  %v3164_v12 = vcombine.low %v4483_v15, %v4500_v22  ;;  %v5497_v10 = vcombine.low %v3991_v14, %v4003_v17  ;;  %v5499_v14 = vcombine.low %v4016_v20, %v4025_v23 }
  0x78   :  { %738 = vmatprep.mubr.bf16.mxu0 %v445_v2  ;;  %v449_v30 = vsel %vm426_vm0, %v5494_v47, %v339_v39  ;;  %v5496_v39 = vcombine.low %v3967_v7, %v3972_v8  ;;  %v57_v7 = vld [vmem:[%s5462_s0 + $0x48] sm:$0xf] }
  0x79   :  { %v3105_v8 = vcombine.low %v57_v7, %v4088_v41  ;;  %v5507_v7 = vcombine.low %v4196_v33, %v4201_v35 }
  0x7a   :  { %v329_v38 = vpop.permute.xlu0 %328 }
  0x7b   :  { %v429_v24 = vsel %vm426_vm0, %v3097_v31, %v329_v38  ;;  %v331_v6 = vpop.permute.xlu1 %330  ;;  %v5495_v31 = vcombine.low %v3957_v5, %v3986_v13 }
  0x7c   :  { %739 = vmatmul.mubr.bf16.vlgmr.msra.gmra.mrb[0].mxu0 %v429_v24 }
  0x7d   :  { %746 = vmatprep.mubr.bf16.mxu0 %v449_v30  ;;  %v433_v38 = vsel %vm426_vm0, %v5495_v31, %v331_v6 }
  0x7e   :  { %v341_v47 = vpop.permute.xlu0 %340 }
  0x7f   :  { %v453_v32 = vsel %vm426_vm0, %v5496_v39, %v341_v47  ;;  %v333_v24 = vpop.permute.xlu1 %332  ;;  %v5502_v39 = vcombine.low %v4065_v34, %v4073_v36 }
  0x80   :  { %v437_v4 = vsel %vm426_vm0, %v5497_v10, %v333_v24  ;;  %v5505_v10 = vcombine.low %v4145_v56, %v4150_v57 }
  0x82   :  { %v343_v0 = vpop.permute.xlu0 %342 }
  0x83   :  { %v457_v5 = vsel %vm426_vm0, %v5498_v1, %v343_v0  ;;  %v335_v13 = vpop.permute.xlu1 %334 }
  0x84   :  { %747 = vmatmul.mubr.bf16.gmra.mrb[4].mxu0 %v433_v38  ;;  %v441_v17 = vsel %vm426_vm0, %v5499_v14, %v335_v13  ;;  %v5501_v38 = vcombine.low %v4045_v28, %v4050_v29  ;;  %v5508_v13 = vcombine.low %v4210_v40, %v4215_v42 }
  0x85   :  { %754 = vmatprep.mubr.bf16.mxu0 %v453_v32 }
  0x86   :  { %v345_v6 = vpop.permute.xlu0 %344 }
  0x87   :  { %v461_v47 = vsel %vm426_vm0, %v3105_v8, %v345_v6  ;;  %v347_v16 = vpop.permute.xlu1 %346 }
  0x88   :  { %v465_v31 = vsel %vm426_vm0, %v5500_v18, %v347_v16  ;;  %v5511_v18 = vcombine.low %v4254_v62, %v4261_v3 }
  0x8a   :  { %v349_v41 = vpop.permute.xlu0 %348 }
  0x8b   :  { %v469_v20 = vsel %vm426_vm0, %v5501_v38, %v349_v41  ;;  %v351_v23 = vpop.permute.xlu1 %350  ;;  %v5512_v38 = vcombine.low %v4304_v19, %v4309_v43  ;;  %v102_v19 = vld [vmem:[%s5462_s0 + $0xfc] sm:$0xf] }
  0x8c   :  { %755 = vmatmul.mubr.bf16.gmra.mrb[8].mxu0 %v437_v4  ;;  %v473_v24 = vsel %vm426_vm0, %v5502_v39, %v351_v23  ;;  %v5514_v39 = vcombine.low %v4348_v63, %v4367_v52  ;;  %v3125_v43 = vcombine.low %v102_v19, %v4387_v60 }
  0x8d   :  { %762 = vmatprep.mubr.bf16.mxu0 %v457_v5 }
  0x8f   :  { %v355_v29 = vpop.permute.xlu1 %354 }
  0x93   :  { %v359_v55 = vpop.permute.xlu1 %358 }
  0x94   :  { %763 = vmatmul.mubr.bf16.gmra.mrb[12].mxu0 %v441_v17  ;;  %v489_v4 = vsel %vm426_vm0, %v5505_v10, %v359_v55  ;;  %v5509_v17 = vcombine.low %v4228_v51, %v4234_v53  ;;  %v93_v51 = vld [vmem:[%s5462_s0 + $0xd8] sm:$0xf]  ;;  %v111_v55 = vld [vmem:[%s5462_s0 + $0x120] sm:$0xf]  ;;  %v5523_v10 = vld [vmem:[#allocation7_spill] sm:$0xff] }
  0x95   :  { %770 = vmatprep.mubr.bf16.mxu0 %v461_v47  ;;  %v3121_v53 = vcombine.low %v93_v51, %v4315_v37 }
  0x9c   :  { %771 = vmatmul.mubr.bf16.gmra.mrb[16].mxu0 %v445_v2  ;;  %v353_v2 = vpop.permute.xlu0 %352 }
  0x9d   :  { %778 = vmatprep.mubr.bf16.mxu0 %v465_v31  ;;  %v477_v28 = vsel %vm426_vm0, %v3109_v27, %v353_v2  ;;  %v5515_v27 = vld [vmem:[#allocation2_spill] sm:$0xff] }
  0x9e   :  { %v5516_v2 = vcombine.low %v4392_v44, %v5515_v27 }
  0xa0   :  { %v357_v36 = vpop.permute.xlu0 %356 }
  0xa4   :  { %779 = vmatmul.mubr.bf16.gmra.mrb[20].mxu0 %v449_v30  ;;  %v5503_v30 = vcombine.low %v4102_v45, %v4107_v46  ;;  %v75_v45 = vld [vmem:[%s5462_s0 + $0x90] sm:$0xf]  ;;  %v361_v1 = vpop.permute.xlu0 %360 }
  0xa5   :  { %786 = vmatprep.mubr.bf16.mxu0 %v469_v20  ;;  %v3113_v46 = vcombine.low %v75_v45, %v4188_v26 }
  0xa6   :  { %v481_v34 = vsel %vm426_vm0, %v5503_v30, %v355_v29  ;;  %v5518_v29 = vld [vmem:[#allocation4_spill] sm:$0xff] }
  0xa8   :  { %v365_v57 = vpop.permute.xlu0 %364 }
  0xa9   :  { %v501_v8 = vsel %vm426_vm0, %v5507_v7, %v365_v57 }
  0xac   :  { %787 = vmatmul.mubr.bf16.gmra.mrb[24].mxu0 %v453_v32  ;;  %v5504_v32 = vcombine.low %v4118_v49, %v4123_v50  ;;  %v493_v49 = vsel %vm426_vm0, %v3113_v46, %v361_v1  ;;  %v363_v50 = vpop.permute.xlu1 %362  ;;  %v369_v14 = vpop.permute.xlu0 %368 }
  0xad   :  { %794 = vmatprep.mubr.bf16.mxu0 %v473_v24 }
  0xae   :  { %v485_v0 = vsel %vm426_vm0, %v5504_v32, %v357_v36  ;;  %v5520_v36 = vld [vmem:[#allocation5_spill] sm:$0xff]  ;;  %v5521_v32 = vld [vmem:[#allocation6_spill] sm:$0xff] }
  0xb0   :  { %v367_v26 = vpop.permute.xlu1 %366  ;;  %v373_v42 = vpop.permute.xlu0 %372 }
  0xb1   :  { %v505_v6 = vsel %vm426_vm0, %v5508_v13, %v367_v26 }
  0xb4   :  { %795 = vmatmul.mubr.bf16.gmra.mrb[28].mxu0 %v457_v5  ;;  %v5506_v5 = vcombine.low %v4175_v9, %v4180_v11  ;;  %v84_v9 = vld [vmem:[%s5462_s0 + $0xb4] sm:$0xf]  ;;  %v371_v35 = vpop.permute.xlu1 %370  ;;  %v377_v41 = vpop.permute.xlu0 %376  ;;  %s3872_s0 = smov 32  }
  0xb5   :  { %802 = vmatprep.mubr.bf16.mxu0 %v477_v28  ;;  %v3117_v11 = vcombine.low %v84_v9, %v4278_v48  ;;  %v513_v40 = vsel %vm426_vm0, %v5509_v17, %v371_v35  ;;  %v5524_v17 = vld [vmem:[#allocation8_spill] sm:$0xff] }
  0xb6   :  { %v497_v56 = vsel %vm426_vm0, %v5506_v5, %v363_v50 }
  0xb7   :  { %v509_v33 = vsel %vm426_vm0, %v3117_v11, %v369_v14 }
  0xb8   :  { %v375_v48 = vpop.permute.xlu1 %374  ;;  %v381_v3 = vpop.permute.xlu0 %380 }
  0xbc   :  { %803 = vmatmul.mubr.bf16.gmra.mrb[32].mxu0 %v461_v47  ;;  %v5510_v47 = vcombine.low %v4239_v54, %v4244_v58  ;;  %v525_v54 = vsel %vm426_vm0, %v3121_v53, %v377_v41  ;;  %v379_v58 = vpop.permute.xlu1 %378  ;;  %v385_v25 = vpop.permute.xlu0 %384 }
  0xbd   :  { %810 = vmatprep.mubr.bf16.mxu0 %v481_v34  ;;  %v529_v62 = vsel %vm426_vm0, %v5512_v38, %v379_v58  ;;  %v3746_v38 = vld [vmem:[%s5465_s3] sm:$0xff]  }
  0xbe   :  { %v517_v16 = vsel %vm426_vm0, %v5510_v47, %v373_v42 }
  0xc0   :  { %v383_v37 = vpop.permute.xlu1 %382  ;;  %v389_v52 = vpop.permute.xlu0 %388 }
  0xc4   :  { %811 = vmatmul.mubr.bf16.gmra.mrb[36].mxu0 %v465_v31  ;;  %v521_v31 = vsel %vm426_vm0, %v5511_v18, %v375_v48  ;;  %v419_v46 = vpop.permute.xlu0 %418 }
  0xc5   :  { %818 = vmatprep.mubr.bf16.mxu0 %v485_v0 }
  0xcc   :  { %819 = vmatmul.mubr.bf16.gmra.mrb[40].mxu0 %v469_v20  ;;  %v5513_v20 = vcombine.low %v4324_v59, %v4343_v61  ;;  %v541_v59 = vsel %vm426_vm0, %v3125_v43, %v385_v25  ;;  %v387_v61 = vpop.permute.xlu1 %386  ;;  %v3747_v43 = vld [vmem:[%s5465_s3 + $0x48] sm:$0xff]  }
  0xcd   :  { %826 = vmatprep.mubr.bf16.mxu0 %v489_v4  ;;  %v545_v63 = vsel %vm426_vm0, %v5516_v2, %v387_v61  ;;  %v3748_v25 = vld [vmem:[%s5465_s3 + $0x8] sm:$0xff]  }
  0xce   :  { %v533_v23 = vsel %vm426_vm0, %v5513_v20, %v381_v3 }
  0xd0   :  { %v391_v60 = vpop.permute.xlu1 %390 }
  0xd4   :  { %827 = vmatmul.mubr.bf16.gmra.mrb[44].mxu0 %v473_v24  ;;  %v537_v24 = vsel %vm426_vm0, %v5514_v39, %v383_v37  ;;  %v421_v13 = vpop.permute.xlu1 %420 }
  0xd5   :  { %834 = vmatprep.mubr.bf16.mxu0 %v493_v49 }
  0xdc   :  { %835 = vmatmul.mubr.bf16.gmra.mrb[48].mxu0 %v477_v28  ;;  %v5517_v28 = vld [vmem:[#allocation3_spill] sm:$0xff] }
  0xdd   :  { %842 = vmatprep.mubr.bf16.mxu0 %v497_v56  ;;  %v5519_v30 = vcombine.low %v5517_v28, %v5518_v29  ;;  %v3750_v28 = vld [vmem:[%s5465_s3 + $0x10] sm:$0xff]  }
  0xe4   :  { %843 = vmatmul.mubr.bf16.gmra.mrb[52].mxu0 %v481_v34  ;;  %v4627_v34 = vsel %vm426_vm0, %v5519_v30, %v389_v52 }
  0xe5   :  { %850 = vmatprep.mubr.bf16.mxu0 %v501_v8 }
  0xec   :  { %851 = vmatmul.mubr.bf16.gmra.mrb[56].mxu0 %v485_v0  ;;  %v5522_v0 = vcombine.low %v5520_v36, %v5521_v32 }
  0xed   :  { %858 = vmatprep.mubr.bf16.mxu0 %v505_v6 }
  0xee   :  { %v4634_v44 = vsel %vm426_vm0, %v5522_v0, %v391_v60 }
  0xf4   :  { %859 = vmatmul.mubr.bf16.gmra.mrb[60].mxu0 %v489_v4  ;;  %v3161_v4 = vcombine.low %v111_v55, %v5523_v10  ;;  %v3751_v55 = vld [vmem:[%s5465_s3 + $0x58] sm:$0xff]  }
  0xf5   :  { %866 = vmatprep.mubr.bf16.mxu0 %v509_v33  ;;  %v3752_v10 = vld [vmem:[%s5465_s3 + $0x18] sm:$0xff]  }
  0xf6   :  { %v557_v57 = vsel %vm426_vm0, %v3161_v4, %v419_v46  ;;  %v3754_v46 = vld [vmem:[%s5465_s3 + $0x20] sm:$0xff]  }
  0xfc   :  { %867 = vmatmul.mubr.bf16.gmra.mrb[64].mxu0 %v493_v49  ;;  %v4646_v49 = vld [vmem:[%s5464_s2] ss:$0 sm:$0xff] }
  0xfd   :  { %874 = vmatprep.mubr.bf16.mxu0 %v513_v40 }
 0x104   :  { %875 = vmatmul.mubr.bf16.gmra.mrb[68].mxu0 %v497_v56 }
 0x105   :  { %882 = vmatprep.mubr.bf16.mxu0 %v517_v16 }
 0x10c   :  { %883 = vmatmul.mubr.bf16.gmra.mrb[72].mxu0 %v501_v8 }
 0x10d   :  { %890 = vmatprep.mubr.bf16.mxu0 %v521_v31 }
 0x114   :  { %891 = vmatmul.mubr.bf16.gmra.mrb[76].mxu0 %v505_v6 }
 0x115   :  { %898 = vmatprep.mubr.bf16.mxu0 %v525_v54 }
 0x11c   :  { %899 = vmatmul.mubr.bf16.gmra.mrb[80].mxu0 %v509_v33 }
 0x11d   :  { %906 = vmatprep.mubr.bf16.mxu0 %v529_v62 }
 0x124   :  { %907 = vmatmul.mubr.bf16.gmra.mrb[84].mxu0 %v513_v40  ;;  %v5525_v40 = vld [vmem:[#allocation9_spill] sm:$0xff] }
 0x125   :  { %914 = vmatprep.mubr.bf16.mxu0 %v533_v23  ;;  %v5526_v42 = vcombine.low %v5524_v17, %v5525_v40  ;;  %v3759_v40 = vld [vmem:[%s5465_s3 + $0x78] sm:$0xff]  }
 0x127   :  { %v561_v47 = vsel %vm426_vm0, %v5526_v42, %v421_v13  ;;  %v3760_v42 = vld [vmem:[%s5465_s3 + $0x38] sm:$0xff]  }
 0x12c   :  { %915 = vmatmul.mubr.bf16.gmra.mrb[88].mxu0 %v517_v16 }
 0x12d   :  { %922 = vmatprep.mubr.bf16.mxu0 %v537_v24 }
 0x134   :  { %923 = vmatmul.mubr.bf16.gmra.mrb[92].mxu0 %v521_v31  ;;  %v423_v31 = vpop.permute.xlu0 %422 }
 0x135   :  { %930 = vmatprep.mubr.bf16.mxu0 %v541_v59 }
 0x13c   :  { %931 = vmatmul.mubr.bf16.gmra.mrb[96].mxu0 %v525_v54  ;;  %v3745_v54 = vld [vmem:[%s5465_s3 + $0x40] sm:$0xff]  }
 0x13d   :  { %938 = vmatprep.mubr.bf16.mxu0 %v545_v63  ;;  %3454 = vmatprep.subr.bf16.mxu1 %v3745_v54 }
 0x13e   :  { %3455 = vmatpush3.bf16.msra.mxu1 %v3746_v38 }
 0x13f   :  { %3456 = vmatprep.subr.bf16.mxu1 %v3747_v43 }
 0x142   :  { %3457 = vmatpush3.bf16.msra.mxu1 %v3748_v25 }
 0x144   :  { %939 = vmatmul.mubr.bf16.gmra.mrb[100].mxu0 %v529_v62 }
 0x145   :  { %946 = vmatprep.mubr.bf16.mxu0 %v4627_v34 }
 0x14c   :  { %947 = vmatmul.mubr.bf16.gmra.mrb[104].mxu0 %v533_v23  ;;  %v5527_v23 = vld [vmem:[#allocation10_spill] sm:$0xff] }
 0x14d   :  { %954 = vmatprep.mubr.bf16.mxu0 %v4634_v44  ;;  %v5528_v37 = vcombine.low %v4461_v21, %v5527_v23 }
 0x14f   :  { %v4641_v45 = vpop.f32.mrb[0].mxu0  ;;  %v565_v39 = vsel %vm426_vm0, %v5528_v37, %v423_v31 }
 0x150   :  { %v742_v1 = vpop.f32.mrb[1].mxu0 }
 0x151   :  { %v743_v50 = vpop.f32.mrb[2].mxu0 }
 0x152   :  { %v744_v5 = vadd.f32 %v4646_v49, %v743_v50  ;;  %v745_v56 = vpop.f32.mrb[3].mxu0 }
 0x153   :  { %v3755_v56 = vld [vmem:[%s5465_s3 + $0x68] sm:$0xff]  }
 0x154   :  { %v996_v7 = vmax.f32 %v744_v5, 0.0  ;;  %955 = vmatmul.mubr.bf16.gmra.mrb[108].mxu0 %v537_v24 }
 0x155   :  { %962 = vmatprep.mubr.bf16.mxu0 %v557_v57  ;;  %v3756_v57 = vld [vmem:[%s5465_s3 + $0x28] sm:$0xff]  }
 0x156   :  { %v3405_v8 = vpack.c.bf16 %v996_v7, %v996_v7 }
 0x157   :  { %v748_v26 = vpop.f32.mrb[4].mxu0 }
 0x158   :  { %v749_v6 = vadd.f32 %v4646_v49, %v748_v26  ;;  %v750_v9 = vpop.f32.mrb[5].mxu0  ;;  %1212 = vrot.lane.b32.xlu0 %v3405_v8, %s3872_s0 }
 0x159   :  { %v751_v11 = vpop.f32.mrb[6].mxu0  ;;  %v3758_v9 = vld [vmem:[%s5465_s3 + $0x30] sm:$0xff]  }
 0x15a   :  { %v997_v14 = vmax.f32 %v749_v6, 0.0  ;;  %v752_v33 = vadd.f32 %v4646_v49, %v751_v11  ;;  %v753_v35 = vpop.f32.mrb[7].mxu0 }
 0x15c   :  { %v4657_v16 = vpack.c.bf16 %v997_v14, %v997_v14  ;;  %v998_v48 = vmax.f32 %v752_v33, 0.0  ;;  %963 = vmatmul.mubr.bf16.gmra.mrb[112].mxu0 %v541_v59  ;;  %v425_v59 = vpop.permute.xlu1 %424 }
 0x15d   :  { %970 = vmatprep.mubr.bf16.mxu0 %v561_v47  ;;  %v569_v36 = vsel %vm426_vm0, %v3164_v12, %v425_v59 }
 0x15e   :  { %1214 = vrot.lane.b32.xlu1 %v4657_v16, %s3871_s12  ;;  %v3406_v51 = vpack.c.bf16 %v998_v48, %v998_v48 }
 0x15f   :  { %v756_v18 = vpop.f32.mrb[8].mxu0 }
 0x160   :  { %v757_v53 = vadd.f32 %v4646_v49, %v756_v18  ;;  %v758_v41 = vpop.f32.mrb[9].mxu0 }
 0x161   :  { %v759_v58 = vpop.f32.mrb[10].mxu0 }
 0x162   :  { %v999_v62 = vmax.f32 %v757_v53, 0.0  ;;  %v760_v3 = vadd.f32 %v4646_v49, %v759_v58  ;;  %v761_v20 = vpop.f32.mrb[11].mxu0  ;;  %1273 = vrot.lane.b32.xlu1 %v3406_v51, %s3872_s0 }
 0x164   :  { %v4674_v24 = vpack.c.bf16 %v999_v62, %v999_v62  ;;  %v1000_v19 = vmax.f32 %v760_v3, 0.0  ;;  %971 = vmatmul.mubr.bf16.gmra.mrb[116].mxu0 %v545_v63  ;;  %v3749_v63 = vld [vmem:[%s5465_s3 + $0x50] sm:$0xff]  }
 0x165   :  { %978 = vmatprep.mubr.bf16.mxu0 %v565_v39  ;;  %3458 = vmatprep.subr.bf16.mxu1 %v3749_v63 }
 0x166   :  { %1217 = vrot.lane.b32.xlu1 %v3406_v51, %s3873_s20  ;;  %1275 = vrot.lane.b32.xlu0 %v4674_v24, %s3871_s12  ;;  %v3413_v61 = vpack.c.bf16 %v1000_v19, %v1000_v19 }
 0x167   :  { %v764_v21 = vpop.f32.mrb[12].mxu0  ;;  %3459 = vmatpush3.bf16.msra.mxu1 %v3750_v28 }
 0x168   :  { %v765_v27 = vadd.f32 %v4646_v49, %v764_v21  ;;  %v766_v2 = vpop.f32.mrb[13].mxu0  ;;  %3460 = vmatprep.subr.bf16.mxu1 %v3751_v55 }
 0x169   :  { %v767_v52 = vpop.f32.mrb[14].mxu0 }
 0x16a   :  { %v1001_v29 = vmax.f32 %v765_v27, 0.0  ;;  %v768_v30 = vadd.f32 %v4646_v49, %v767_v52  ;;  %v769_v60 = vpop.f32.mrb[15].mxu0  ;;  %1329 = vrot.lane.b32.xlu1 %v3413_v61, %s3872_s0  ;;  %1278 = vrot.lane.b32.xlu0 %v3413_v61, %s3873_s20 }
 0x16b   :  { %3461 = vmatpush3.bf16.msra.mxu1 %v3752_v10 }
 0x16c   :  { %v3417_v32 = vpack.c.bf16 %v1001_v29, %v1001_v29  ;;  %v1002_v0 = vmax.f32 %v768_v30, 0.0  ;;  %979 = vmatmul.mubr.bf16.gmra.mrb[120].mxu0 %v4627_v34  ;;  %v3753_v34 = vld [vmem:[%s5465_s3 + $0x60] sm:$0xff]  }
 0x16d   :  { %986 = vmatprep.mubr.bf16.mxu0 %v569_v36  ;;  %3462 = vmatprep.subr.bf16.mxu1 %v3753_v34 }
 0x16e   :  { %1332 = vrot.lane.b32.xlu1 %v3417_v32, %s3871_s12  ;;  %v3418_v15 = vpack.c.bf16 %v1002_v0, %v1002_v0 }
 0x16f   :  { %v4707_v22 = vpop.f32.mrb[16].mxu0  ;;  %3463 = vmatpush3.bf16.msra.mxu1 %v3754_v46 }
 0x170   :  { %v774_v12 = vpop.f32.mrb[17].mxu0  ;;  %3464 = vmatprep.subr.bf16.mxu1 %v3755_v56 }
 0x171   :  { %v775_v4 = vpop.f32.mrb[18].mxu0 }
 0x172   :  { %v776_v1 = vadd.f32 %v4646_v49, %v775_v4  ;;  %v777_v50 = vpop.f32.mrb[19].mxu0  ;;  %1335 = vrot.lane.b32.xlu1 %v3418_v15, %s3873_s20 }
 0x173   :  { %3465 = vmatpush3.bf16.msra.mxu1 %v3756_v57 }
 0x174   :  { %v1004_v5 = vmax.f32 %v776_v1, 0.0  ;;  %987 = vmatmul.mubr.bf16.gmra.mrb[124].mxu0 %v4634_v44  ;;  %v3757_v44 = vld [vmem:[%s5465_s3 + $0x70] sm:$0xff]  }
 0x175   :  { %3466 = vmatprep.subr.bf16.mxu1 %v3757_v44 }
 0x176   :  { %v3407_v7 = vpack.c.bf16 %v1004_v5, %v1004_v5 }
 0x177   :  { %v780_v8 = vpop.f32.mrb[20].mxu0  ;;  %3467 = vmatpush3.bf16.msra.mxu1 %v3758_v9 }
 0x178   :  { %v781_v26 = vadd.f32 %v4646_v49, %v780_v8  ;;  %v782_v13 = vpop.f32.mrb[21].mxu0  ;;  %1220 = vrot.lane.b32.xlu1 %v3407_v7, %s3872_s0  ;;  %3468 = vmatprep.subr.bf16.mxu1 %v3759_v40 }
 0x179   :  { %v783_v6 = vpop.f32.mrb[22].mxu0 }
 0x17a   :  { %v1005_v11 = vmax.f32 %v781_v26, 0.0  ;;  %v784_v14 = vadd.f32 %v4646_v49, %v783_v6  ;;  %v785_v33 = vpop.f32.mrb[23].mxu0 }
 0x17b   :  { %3469 = vmatpush3.bf16.msra.mxu1 %v3760_v42 }
 0x17c   :  { %v4733_v35 = vpack.c.bf16 %v1005_v11, %v1005_v11  ;;  %v1006_v17 = vmax.f32 %v784_v14, 0.0 }
 0x17e   :  { %v3408_v47 = vpack.c.bf16 %v1006_v17, %v1006_v17  ;;  %1222 = vrot.lane.b32.xlu1 %v4733_v35, %s3871_s12 }
 0x17f   :  { %v788_v48 = vpop.f32.mrb[24].mxu0 }
 0x180   :  { %v789_v18 = vadd.f32 %v4646_v49, %v788_v48  ;;  %v790_v31 = vpop.f32.mrb[25].mxu0  ;;  %1280 = vrot.lane.b32.xlu0 %v3408_v47, %s3872_s0 }
 0x181   :  { %v791_v51 = vpop.f32.mrb[26].mxu0 }
 0x182   :  { %v1007_v53 = vmax.f32 %v789_v18, 0.0  ;;  %v792_v41 = vadd.f32 %v4646_v49, %v791_v51  ;;  %v793_v54 = vpop.f32.mrb[27].mxu0 }
 0x184   :  { %v1008_v58 = vmax.f32 %v792_v41, 0.0  ;;  %1225 = vrot.lane.b32.xlu0 %v3408_v47, %s3873_s20  ;;  %v4747_v38 = vpack.c.bf16 %v1007_v53, %v1007_v53 }
 0x186   :  { %v3414_v62 = vpack.c.bf16 %v1008_v58, %v1008_v58 }
 0x187   :  { %v796_v3 = vpop.f32.mrb[28].mxu0 }
 0x188   :  { %v797_v20 = vadd.f32 %v4646_v49, %v796_v3  ;;  %v798_v23 = vpop.f32.mrb[29].mxu0  ;;  %1285 = vrot.lane.b32.xlu1 %v3414_v62, %s3873_s20  ;;  %1282 = vrot.lane.b32.xlu0 %v4747_v38, %s3871_s12 }
 0x189   :  { %v799_v37 = vpop.f32.mrb[30].mxu0 }
 0x18a   :  { %v1009_v39 = vmax.f32 %v797_v20, 0.0  ;;  %v800_v19 = vadd.f32 %v4646_v49, %v799_v37  ;;  %v801_v43 = vpop.f32.mrb[31].mxu0 }
 0x18c   :  { %v3419_v25 = vpack.c.bf16 %v1009_v39, %v1009_v39  ;;  %v1010_v21 = vmax.f32 %v800_v19, 0.0  ;;  %1337 = vrot.lane.b32.xlu1 %v3414_v62, %s3872_s0 }
 0x18e   :  { %1340 = vrot.lane.b32.xlu0 %v3419_v25, %s3871_s12  ;;  %v3420_v61 = vpack.c.bf16 %v1010_v21, %v1010_v21 }
 0x18f   :  { %v4756_v59 = vpop.f32.mrb[32].mxu0 }
 0x190   :  { %v806_v27 = vpop.f32.mrb[33].mxu0 }
 0x191   :  { %v807_v2 = vpop.f32.mrb[34].mxu0 }
 0x192   :  { %v808_v63 = vadd.f32 %v4646_v49, %v807_v2  ;;  %v809_v52 = vpop.f32.mrb[35].mxu0  ;;  %1343 = vrot.lane.b32.xlu0 %v3420_v61, %s3873_s20 }
 0x194   :  { %v1012_v28 = vmax.f32 %v808_v63, 0.0 }
 0x196   :  { %v3409_v29 = vpack.c.bf16 %v1012_v28, %v1012_v28 }
 0x197   :  { %v812_v30 = vpop.f32.mrb[36].mxu0 }
 0x198   :  { %v813_v60 = vadd.f32 %v4646_v49, %v812_v30  ;;  %v814_v36 = vpop.f32.mrb[37].mxu0  ;;  %1228 = vrot.lane.b32.xlu1 %v3409_v29, %s3872_s0 }
 0x199   :  { %v815_v32 = vpop.f32.mrb[38].mxu0 }
 0x19a   :  { %v1013_v0 = vmax.f32 %v813_v60, 0.0  ;;  %v816_v55 = vadd.f32 %v4646_v49, %v815_v32  ;;  %v817_v10 = vpop.f32.mrb[39].mxu0 }
 0x19c   :  { %v4763_v15 = vpack.c.bf16 %v1013_v0, %v1013_v0  ;;  %v1014_v12 = vmax.f32 %v816_v55, 0.0 }
 0x19e   :  { %v3410_v34 = vpack.c.bf16 %v1014_v12, %v1014_v12  ;;  %1230 = vrot.lane.b32.xlu1 %v4763_v15, %s3871_s12 }
 0x19f   :  { %v820_v4 = vpop.f32.mrb[40].mxu0 }
 0x1a0   :  { %v821_v46 = vadd.f32 %v4646_v49, %v820_v4  ;;  %v822_v1 = vpop.f32.mrb[41].mxu0  ;;  %1233 = vrot.lane.b32.xlu0 %v3410_v34, %s3873_s20 }
 0x1a1   :  { %v823_v50 = vpop.f32.mrb[42].mxu0 }
 0x1a2   :  { %v1015_v5 = vmax.f32 %v821_v46, 0.0  ;;  %v824_v56 = vadd.f32 %v4646_v49, %v823_v50  ;;  %v825_v57 = vpop.f32.mrb[43].mxu0 }
 0x1a4   :  { %v4770_v7 = vpack.c.bf16 %v1015_v5, %v1015_v5  ;;  %v1016_v8 = vmax.f32 %v824_v56, 0.0  ;;  %1287 = vrot.lane.b32.xlu0 %v3410_v34, %s3872_s0 }
 0x1a6   :  { %1289 = vrot.lane.b32.xlu1 %v4770_v7, %s3871_s12  ;;  %v3415_v13 = vpack.c.bf16 %v1016_v8, %v1016_v8 }
 0x1a7   :  { %v828_v26 = vpop.f32.mrb[44].mxu0 }
 0x1a8   :  { %v829_v44 = vadd.f32 %v4646_v49, %v828_v26  ;;  %v830_v6 = vpop.f32.mrb[45].mxu0 }
 0x1a9   :  { %v831_v9 = vpop.f32.mrb[46].mxu0 }
 0x1aa   :  { %v1017_v11 = vmax.f32 %v829_v44, 0.0  ;;  %v832_v14 = vadd.f32 %v4646_v49, %v831_v9  ;;  %v833_v33 = vpop.f32.mrb[47].mxu0  ;;  %1345 = vrot.lane.b32.xlu1 %v3415_v13, %s3872_s0 }
 0x1ac   :  { %v3421_v17 = vpack.c.bf16 %v1017_v11, %v1017_v11  ;;  %v1018_v40 = vmax.f32 %v832_v14, 0.0 }
 0x1ae   :  { %1292 = vrot.lane.b32.xlu1 %v3415_v13, %s3873_s20  ;;  %1348 = vrot.lane.b32.xlu0 %v3421_v17, %s3871_s12  ;;  %v3422_v47 = vpack.c.bf16 %v1018_v40, %v1018_v40 }
 0x1af   :  { %v4780_v42 = vpop.f32.mrb[48].mxu0 }
 0x1b0   :  { %v838_v48 = vpop.f32.mrb[49].mxu0 }
 0x1b1   :  { %v839_v18 = vpop.f32.mrb[50].mxu0 }
 0x1b2   :  { %v840_v31 = vadd.f32 %v4646_v49, %v839_v18  ;;  %v841_v51 = vpop.f32.mrb[51].mxu0  ;;  %1351 = vrot.lane.b32.xlu0 %v3422_v47, %s3873_s20 }
 0x1b4   :  { %v1020_v53 = vmax.f32 %v840_v31, 0.0 }
 0x1b6   :  { %v3411_v41 = vpack.c.bf16 %v1020_v53, %v1020_v53 }
 0x1b7   :  { %v844_v54 = vpop.f32.mrb[52].mxu0 }
 0x1b8   :  { %v845_v58 = vadd.f32 %v4646_v49, %v844_v54  ;;  %v846_v62 = vpop.f32.mrb[53].mxu0  ;;  %1236 = vrot.lane.b32.xlu0 %v3411_v41, %s3872_s0 }
 0x1b9   :  { %v847_v3 = vpop.f32.mrb[54].mxu0 }
 0x1ba   :  { %v1021_v20 = vmax.f32 %v845_v58, 0.0  ;;  %v848_v23 = vadd.f32 %v4646_v49, %v847_v3  ;;  %v849_v37 = vpop.f32.mrb[55].mxu0 }
 0x1bc   :  { %v4787_v39 = vpack.c.bf16 %v1021_v20, %v1021_v20  ;;  %v1022_v19 = vmax.f32 %v848_v23, 0.0 }
 0x1be   :  { %v3412_v43 = vpack.c.bf16 %v1022_v19, %v1022_v19  ;;  %1238 = vrot.lane.b32.xlu0 %v4787_v39, %s3871_s12 }
 0x1bf   :  { %v852_v25 = vpop.f32.mrb[56].mxu0 }
 0x1c0   :  { %v853_v21 = vadd.f32 %v4646_v49, %v852_v25  ;;  %v854_v61 = vpop.f32.mrb[57].mxu0  ;;  %1294 = vrot.lane.b32.xlu1 %v3412_v43, %s3872_s0 }
 0x1c1   :  { %v855_v27 = vpop.f32.mrb[58].mxu0 }
 0x1c2   :  { %v1023_v2 = vmax.f32 %v853_v21, 0.0  ;;  %v856_v63 = vadd.f32 %v4646_v49, %v855_v27  ;;  %v857_v52 = vpop.f32.mrb[59].mxu0  ;;  %1241 = vrot.lane.b32.xlu0 %v3412_v43, %s3873_s20 }
 0x1c4   :  { %v4795_v28 = vpack.c.bf16 %v1023_v2, %v1023_v2  ;;  %v1024_v29 = vmax.f32 %v856_v63, 0.0 }
 0x1c6   :  { %v3416_v30 = vpack.c.bf16 %v1024_v29, %v1024_v29  ;;  %1296 = vrot.lane.b32.xlu1 %v4795_v28, %s3871_s12 }
 0x1c7   :  { %v860_v60 = vpop.f32.mrb[60].mxu0 }
 0x1c8   :  { %v861_v36 = vadd.f32 %v4646_v49, %v860_v60  ;;  %v862_v32 = vpop.f32.mrb[61].mxu0  ;;  %1353 = vrot.lane.b32.xlu0 %v3416_v30, %s3872_s0  ;;  %v3761_v60 = vld [vmem:[%s5465_s3 + $0xc0] sm:$0xff]  }
 0x1c9   :  { %v863_v0 = vpop.f32.mrb[62].mxu0  ;;  %3500 = vmatprep.subr.bf16.mxu1 %v3761_v60 }
 0x1ca   :  { %v1025_v55 = vmax.f32 %v861_v36, 0.0  ;;  %v864_v10 = vadd.f32 %v4646_v49, %v863_v0  ;;  %v865_v12 = vpop.f32.mrb[63].mxu0  ;;  %v1213_v43 = vpop.permute.xlu0 %1212 }
 0x1cc   :  { %v1026_v34 = vmax.f32 %v864_v10, 0.0  ;;  %1299 = vrot.lane.b32.xlu0 %v3416_v30, %s3873_s20  ;;  %v3423_v4 = vpack.c.bf16 %v1025_v55, %v1025_v55 }
 0x1ce   :  { %v3424_v46 = vpack.c.bf16 %v1026_v34, %v1026_v34 }
 0x1cf   :  { %v4803_v1 = vpop.f32.mrb[64].mxu0 }
 0x1d0   :  { %v870_v50 = vpop.f32.mrb[65].mxu0  ;;  %1359 = vrot.lane.b32.xlu1 %v3424_v46, %s3873_s20  ;;  %v4806_v5 = vpop.permute.xlu1 %1214  ;;  %1356 = vrot.lane.b32.xlu0 %v3423_v4, %s3871_s12  ;;  %v773_v46 = vadd.f32 %v4646_v49, %v4707_v22 }
 0x1d1   :  { %v871_v56 = vpop.f32.mrb[66].mxu0  ;;  %v741_v50 = vadd.f32 %v4646_v49, %v4641_v45 }
 0x1d2   :  { %v872_v57 = vadd.f32 %v4646_v49, %v871_v56  ;;  %v873_v8 = vpop.f32.mrb[67].mxu0 }
 0x1d4   :  { %v1028_v26 = vmax.f32 %v872_v57, 0.0  ;;  %v4810_v13 = vpop.permute.xlu1 %1273 }
 0x1d6   :  { %v3425_v44 = vpack.c.bf16 %v1028_v26, %v1028_v26 }
 0x1d7   :  { %v876_v6 = vpop.f32.mrb[68].mxu0 }
 0x1d8   :  { %v877_v9 = vadd.f32 %v4646_v49, %v876_v6  ;;  %v878_v11 = vpop.f32.mrb[69].mxu0  ;;  %v4813_v14 = vpop.permute.xlu1 %1217  ;;  %1390 = vrot.lane.b32.xlu0 %v3425_v44, %s3872_s0  ;;  %v1003_v44 = vmax.f32 %v773_v46, 0.0 }
 0x1d9   :  { %v879_v33 = vpop.f32.mrb[70].mxu0  ;;  %v1276_v2 = vpop.permute.xlu0 %1275  ;;  %v1303_v11 = vsel %vm1243_vm1, %v4657_v16, %v4810_v13 }
 0x1da   :  { %v1029_v17 = vmax.f32 %v877_v9, 0.0  ;;  %v880_v40 = vadd.f32 %v4646_v49, %v879_v33  ;;  %v881_v47 = vpop.f32.mrb[71].mxu0  ;;  %v995_v9 = vmax.f32 %v741_v50, 0.0  ;;  %v1305_v22 = vsel %vm426_vm0, %v1303_v11, %v1276_v2 }
 0x1db   :  { %v805_v50 = vadd.f32 %v4646_v49, %v4756_v59 }
 0x1dc   :  { %v4817_v48 = vpack.c.bf16 %v1029_v17, %v1029_v17  ;;  %v1030_v18 = vmax.f32 %v880_v40, 0.0  ;;  %v1330_v31 = vpop.permute.xlu1 %1329  ;;  %v3381_v13 = vpack.c.bf16 %v995_v9, %v995_v9  ;;  %v3766_v9 = vld [vmem:[%s5465_s3 + $0x90] sm:$0xff]  }
 0x1dd   :  { %v1363_v41 = vsel %vm1243_vm1, %v4674_v24, %v1330_v31  ;;  %v1279_v36 = vpop.permute.xlu0 %1278 }
 0x1de   :  { %1392 = vrot.lane.b32.xlu1 %v4817_v48, %s3871_s12  ;;  %v3426_v53 = vpack.c.bf16 %v1030_v18, %v1030_v18  ;;  %v1307_v45 = vsel %vm1249_vm2, %v1305_v22, %v1279_v36  ;;  %v3767_v22 = vld [vmem:[%s5465_s3 + $0xd8] sm:$0xff]  }
 0x1df   :  { %v884_v51 = vpop.f32.mrb[72].mxu0 }
 0x1e0   :  { %v885_v54 = vadd.f32 %v4646_v49, %v884_v51  ;;  %v886_v58 = vpop.f32.mrb[73].mxu0  ;;  %v1333_v62 = vpop.permute.xlu1 %1332 }
 0x1e1   :  { %v1365_v3 = vsel %vm426_vm0, %v1363_v41, %v1333_v62  ;;  %v887_v20 = vpop.f32.mrb[74].mxu0 }
 0x1e2   :  { %v1031_v23 = vmax.f32 %v885_v54, 0.0  ;;  %v888_v37 = vadd.f32 %v4646_v49, %v887_v20  ;;  %v889_v19 = vpop.f32.mrb[75].mxu0  ;;  %1419 = vrot.lane.b32.xlu1 %v3426_v53, %s3872_s0 }
 0x1e4   :  { %v4827_v25 = vpack.c.bf16 %v1031_v23, %v1031_v23  ;;  %v1032_v21 = vmax.f32 %v888_v37, 0.0  ;;  %v1336_v61 = vpop.permute.xlu1 %1335  ;;  %v1246_v37 = vsel %vm1243_vm1, %v3381_v13, %v1213_v43 }
 0x1e5   :  { %v4830_v24 = vsel %vm1249_vm2, %v1365_v3, %v1336_v61  ;;  %v1573_v3 = vrot.slane %v1307_v45, 4  ;;  %v1248_v61 = vsel %vm426_vm0, %v1246_v37, %v4806_v5  ;;  %v3763_v5 = vld [vmem:[%s5465_s3 + $0xc8] sm:$0xff]  }
 0x1e6   :  { %1395 = vrot.lane.b32.xlu1 %v3426_v53, %s3873_s20  ;;  %1421 = vrot.lane.b32.xlu0 %v4827_v25, %s3871_s12  ;;  %v4837_v63 = vpack.c.bf16 %v1032_v21, %v1032_v21  ;;  %v3384_v53 = vpack.c.bf16 %v1003_v44, %v1003_v44  ;;  %v1251_v43 = vsel %vm1249_vm2, %v1248_v61, %v4813_v14  ;;  %v3771_v61 = vld [vmem:[%s5465_s3 + $0xe8] sm:$0xff]  }
 0x1e7   :  { %v4835_v27 = vpop.f32.mrb[76].mxu0 }
 0x1e8   :  { %v894_v52 = vpop.f32.mrb[77].mxu0 }
 0x1e9   :  { %v4839_v29 = vpop.f32.mrb[78].mxu0 }
 0x1ea   :  { %v897_v30 = vpop.f32.mrb[79].mxu0  ;;  %1424 = vrot.lane.b32.xlu0 %v4837_v63, %s3873_s20  ;;  %v1221_v55 = vpop.permute.xlu1 %1220  ;;  %v896_v45 = vadd.f32 %v4646_v49, %v4839_v29  ;;  %v3769_v29 = vld [vmem:[%s5465_s3 + $0xe0] sm:$0xff]  }
 0x1eb   :  { %v1254_v20 = vsel %vm1243_vm1, %v3384_v53, %v1221_v55  ;;  %v3762_v30 = vld [vmem:[%s5465_s3 + $0x80] sm:$0xff]  }
 0x1ec   :  { %v1034_v13 = vmax.f32 %v896_v45, 0.0 }
 0x1ef   :  { %v4846_v32 = vpop.f32.mrb[80].mxu0 }
 0x1f0   :  { %v902_v0 = vpop.f32.mrb[81].mxu0  ;;  %v1223_v57 = vpop.permute.xlu1 %1222 }
 0x1f1   :  { %v903_v10 = vpop.f32.mrb[82].mxu0  ;;  %v1256_v19 = vsel %vm426_vm0, %v1254_v20, %v1223_v57  ;;  %v893_v57 = vadd.f32 %v4646_v49, %v4835_v27  ;;  %v1011_v27 = vmax.f32 %v805_v50, 0.0 }
 0x1f2   :  { %v904_v12 = vadd.f32 %v4646_v49, %v903_v10  ;;  %v905_v34 = vpop.f32.mrb[83].mxu0  ;;  %v1281_v4 = vpop.permute.xlu0 %1280  ;;  %v1603_v10 = vsel %vm1601_vm3, %v1251_v43, %v1573_v3 }
 0x1f3   :  { %v1310_v41 = vsel %vm1243_vm1, %v4733_v35, %v1281_v4  ;;  %v3764_v4 = vld [vmem:[%s5465_s3 + $0x88] sm:$0xff]  }
 0x1f4   :  { %v1036_v56 = vmax.f32 %v904_v12, 0.0 }
 0x1f6   :  { %v3427_v8 = vpack.c.bf16 %v1036_v56, %v1036_v56  ;;  %v1226_v26 = vpop.permute.xlu0 %1225  ;;  %v3765_v56 = vld [vmem:[%s5465_s3 + $0xd0] sm:$0xff]  }
 0x1f7   :  { %v908_v6 = vpop.f32.mrb[84].mxu0  ;;  %v1258_v2 = vsel %vm1249_vm2, %v1256_v19, %v1226_v26 }
 0x1f8   :  { %v909_v33 = vadd.f32 %v4646_v49, %v908_v6  ;;  %v910_v17 = vpop.f32.mrb[85].mxu0  ;;  %1398 = vrot.lane.b32.xlu1 %v3427_v8, %s3872_s0 }
 0x1f9   :  { %v911_v40 = vpop.f32.mrb[86].mxu0 }
 0x1fa   :  { %v1037_v47 = vmax.f32 %v909_v33, 0.0  ;;  %v912_v18 = vadd.f32 %v4646_v49, %v911_v40  ;;  %v913_v31 = vpop.f32.mrb[87].mxu0  ;;  %v1286_v51 = vpop.permute.xlu1 %1285  ;;  %v1033_v40 = vmax.f32 %v893_v57, 0.0  ;;  %v3775_v57 = vld [vmem:[%s5465_s3 + $0xf8] sm:$0xff]  }
 0x1fb   :  { %v1283_v16 = vpop.permute.xlu0 %1282 }
 0x1fc   :  { %v4863_v54 = vpack.c.bf16 %v1037_v47, %v1037_v47  ;;  %v1038_v58 = vmax.f32 %v912_v18, 0.0  ;;  %v1312_v62 = vsel %vm426_vm0, %v1310_v41, %v1283_v16  ;;  %v3387_v41 = vpack.c.bf16 %v1011_v27, %v1011_v27 }
 0x1fd   :  { %v1314_v23 = vsel %vm1249_vm2, %v1312_v62, %v1286_v51  ;;  %v3768_v51 = vld [vmem:[%s5465_s3 + $0x98] sm:$0xff]   ;;  %v3431_v16 = vpack.c.bf16 %v1033_v40, %v1033_v40 }
 0x1fe   :  { %v3428_v21 = vpack.c.bf16 %v1038_v58, %v1038_v58  ;;  %1400 = vrot.lane.b32.xlu1 %v4863_v54, %s3871_s12  ;;  %v1574_v35 = vrot.slane %v1314_v23, 4  ;;  %v4901_v44 = vpop.permute.xlu1 %1337 }
 0x1ff   :  { %v916_v52 = vpop.f32.mrb[88].mxu0 }
 0x200   :  { %v917_v60 = vadd.f32 %v4646_v49, %v916_v52  ;;  %v918_v36 = vpop.f32.mrb[89].mxu0  ;;  %1426 = vrot.lane.b32.xlu0 %v3428_v21, %s3872_s0  ;;  %v1606_v0 = vsel %vm1601_vm3, %v1258_v2, %v1574_v35  ;;  %v4906_v11 = vpop.permute.xlu0 %1340  ;;  %v3432_v2 = vpack.c.bf16 %v1034_v13, %v1034_v13 }
 0x201   :  { %1945 = vmatprep.mubr.bf16.mxu1 %v1606_v0  ;;  %v919_v55 = vpop.f32.mrb[90].mxu0  ;;  %v3772_v0 = vld [vmem:[%s5465_s3 + $0xa8] sm:$0xff]  }
 0x202   :  { %v1039_v12 = vmax.f32 %v917_v60, 0.0  ;;  %v920_v34 = vadd.f32 %v4646_v49, %v919_v55  ;;  %1946 = vmatmul.mubr.bf16.vlgmr.msra.gmra.mrb[0].mxu1 %v1603_v10  ;;  %v921_v14 = vpop.f32.mrb[91].mxu0  ;;  %v3773_v10 = vld [vmem:[%s5465_s3 + $0xf0] sm:$0xff]  }
 0x203   :  { %3501 = vmatpush3.bf16.msra.mxu1 %v3762_v30 }
 0x204   :  { %v1040_v46 = vmax.f32 %v920_v34, 0.0  ;;  %1403 = vrot.lane.b32.xlu0 %v3428_v21, %s3873_s20  ;;  %3502 = vmatprep.subr.bf16.mxu1 %v3763_v5  ;;  %v4899_v8 = vpack.c.bf16 %v1039_v12, %v1039_v12  ;;  %v4927_v58 = vpop.permute.xlu0 %1343 }
 0x206   :  { %v3430_v26 = vpack.c.bf16 %v1040_v46, %v1040_v46 }
 0x207   :  { %v924_v6 = vpop.f32.mrb[92].mxu0  ;;  %3503 = vmatpush3.bf16.msra.mxu1 %v3764_v4  ;;  %v3774_v4 = vld [vmem:[%s5465_s3 + $0xb0] sm:$0xff]  }
 0x208   :  { %v925_v59 = vadd.f32 %v4646_v49, %v924_v6  ;;  %v926_v33 = vpop.f32.mrb[93].mxu0  ;;  %1431 = vrot.lane.b32.xlu1 %v3430_v26, %s3873_s20  ;;  %1428 = vrot.lane.b32.xlu0 %v4899_v8, %s3871_s12 }
 0x209   :  { %v927_v17 = vpop.f32.mrb[94].mxu0  ;;  %3504 = vmatprep.subr.bf16.mxu1 %v3765_v56  ;;  %v3776_v33 = vld [vmem:[%s5465_s3 + $0xb8] sm:$0xff]  }
 0x20a   :  { %v1041_v47 = vmax.f32 %v925_v59, 0.0  ;;  %v928_v18 = vadd.f32 %v4646_v49, %v927_v17  ;;  %v929_v31 = vpop.f32.mrb[95].mxu0  ;;  %v1229_v53 = vpop.permute.xlu1 %1228 }
 0x20b   :  { %3505 = vmatpush3.bf16.msra.mxu1 %v3766_v9  ;;  %v1261_v23 = vsel %vm1243_vm1, %v3387_v41, %v1229_v53 }
 0x20c   :  { %1447 = vrot.lane.b32.xlu1 %v4837_v63, %s3872_s0  ;;  %1455 = vrot.lane.b32.xlu0 %v3430_v26, %s3872_s0  ;;  %v3433_v62 = vpack.c.bf16 %v1041_v47, %v1041_v47  ;;  %v1042_v3 = vmax.f32 %v928_v18, 0.0  ;;  %v3770_v63 = vld [vmem:[%s5465_s3 + $0xa0] sm:$0xff]  }
 0x20d   :  { %3506 = vmatprep.subr.bf16.mxu1 %v3767_v22 }
 0x20e   :  { %v3434_v52 = vpack.c.bf16 %v1042_v3, %v1042_v3 }
 0x20f   :  { %v4929_v20 = vpop.f32.mrb[96].mxu0  ;;  %3507 = vmatpush3.bf16.msra.mxu1 %v3768_v51 }
 0x210   :  { %v934_v37 = vpop.f32.mrb[97].mxu0  ;;  %1450 = vrot.lane.b32.xlu1 %v3431_v16, %s3871_s12  ;;  %v1231_v19 = vpop.permute.xlu1 %1230  ;;  %1458 = vrot.lane.b32.xlu0 %v3433_v62, %s3871_s12  ;;  %v4986_v62 = vld [vmem:[%s5464_s2] ss:$0 sm:$0xff] }
 0x211   :  { %v1263_v21 = vsel %vm426_vm0, %v1261_v23, %v1231_v19  ;;  %v935_v35 = vpop.f32.mrb[98].mxu0  ;;  %3508 = vmatprep.subr.bf16.mxu1 %v3769_v29 }
 0x212   :  { %v936_v30 = vadd.f32 %v4646_v49, %v935_v35  ;;  %v937_v43 = vpop.f32.mrb[99].mxu0  ;;  %v1234_v60 = vpop.permute.xlu0 %1233 }
 0x213   :  { %v1265_v36 = vsel %vm1249_vm2, %v1263_v21, %v1234_v60  ;;  %3509 = vmatpush3.bf16.msra.mxu1 %v3770_v63 }
 0x214   :  { %v1044_v5 = vmax.f32 %v936_v30, 0.0  ;;  %v1581_v55 = vrot.slane %v1265_v36, 4  ;;  %1453 = vrot.lane.b32.xlu1 %v3432_v2, %s3873_s20  ;;  %1461 = vrot.lane.b32.xlu0 %v3434_v52, %s3873_s20  ;;  %v837_v2 = vadd.f32 %v4986_v62, %v4780_v42  ;;  %v1370_v42 = vsel %vm1243_vm1, %v4747_v38, %v4901_v44 }
 0x215   :  { %3510 = vmatprep.subr.bf16.mxu1 %v3771_v61 }
 0x216   :  { %v3435_v12 = vpack.c.bf16 %v1044_v5, %v1044_v5  ;;  %v4953_v34 = vsel %vm1601_vm3, %v4830_v24, %v1581_v55  ;;  %v1288_v24 = vpop.permute.xlu0 %1287  ;;  %v1019_v60 = vmax.f32 %v837_v2, 0.0 }
 0x217   :  { %v940_v14 = vpop.f32.mrb[100].mxu0  ;;  %3511 = vmatpush3.bf16.msra.mxu1 %v3772_v0  ;;  %v1317_v40 = vsel %vm1243_vm1, %v4763_v15, %v1288_v24 }
 0x218   :  { %v941_v46 = vadd.f32 %v4646_v49, %v940_v14  ;;  %v942_v50 = vpop.f32.mrb[101].mxu0  ;;  %v1290_v56 = vpop.permute.xlu1 %1289  ;;  %1478 = vrot.lane.b32.xlu0 %v3435_v12, %s3872_s0  ;;  %3512 = vmatprep.subr.bf16.mxu1 %v3773_v10  ;;  %v3390_v55 = vpack.c.bf16 %v1019_v60, %v1019_v60 }
 0x219   :  { %v943_v26 = vpop.f32.mrb[102].mxu0  ;;  %v1319_v47 = vsel %vm426_vm0, %v1317_v40, %v1290_v56 }
 0x21a   :  { %v1045_v6 = vmax.f32 %v941_v46, 0.0  ;;  %v944_v9 = vadd.f32 %v4646_v49, %v943_v26  ;;  %v945_v59 = vpop.f32.mrb[103].mxu0  ;;  %v1372_v26 = vsel %vm426_vm0, %v1370_v42, %v4906_v11 }
 0x21b   :  { %3513 = vmatpush3.bf16.msra.mxu1 %v3774_v4 }
 0x21c   :  { %v4967_v27 = vpack.c.bf16 %v1045_v6, %v1045_v6  ;;  %v1046_v17 = vmax.f32 %v944_v9, 0.0  ;;  %v4969_v22 = vpop.permute.xlu1 %1345  ;;  %3514 = vmatprep.subr.bf16.mxu1 %v3775_v57  ;;  %v1374_v9 = vsel %vm1249_vm2, %v1372_v26, %v4927_v58 }
 0x21e   :  { %1480 = vrot.lane.b32.xlu1 %v4967_v27, %s3871_s12  ;;  %v4976_v18 = vpack.c.bf16 %v1046_v17, %v1046_v17 }
 0x21f   :  { %v948_v45 = vpop.f32.mrb[104].mxu0  ;;  %3515 = vmatpush3.bf16.msra.mxu1 %v3776_v33 }
 0x220   :  { %v949_v31 = vadd.f32 %v4646_v49, %v948_v45  ;;  %v950_v51 = vpop.f32.mrb[105].mxu0  ;;  %v1293_v53 = vpop.permute.xlu1 %1292 }
 0x221   :  { %v4980_v41 = vsel %vm1249_vm2, %v1319_v47, %v1293_v53  ;;  %v951_v29 = vpop.f32.mrb[106].mxu0  ;;  %v1349_v13 = vpop.permute.xlu0 %1348 }
 0x222   :  { %v1047_v16 = vmax.f32 %v949_v31, 0.0  ;;  %v1575_v15 = vrot.slane %v4980_v41, 4  ;;  %v952_v3 = vadd.f32 %v4986_v62, %v951_v29  ;;  %v953_v63 = vpop.f32.mrb[107].mxu0  ;;  %1507 = vrot.lane.b32.xlu1 %v4976_v18, %s3872_s0 }
 0x224   :  { %v4991_v49 = vpack.c.bf16 %v1047_v16, %v1047_v16  ;;  %v1048_v23 = vmax.f32 %v952_v3, 0.0  ;;  %v4994_v37 = vsel %vm1601_vm3, %v1265_v36, %v1575_v15  ;;  %v1377_v3 = vsel %vm1243_vm1, %v4770_v7, %v4969_v22 }
 0x225   :  { %v1352_v35 = vpop.permute.xlu0 %1351 }
 0x226   :  { %1509 = vrot.lane.b32.xlu0 %v4991_v49, %s3871_s12  ;;  %v5000_v21 = vpack.c.bf16 %v1048_v23, %v1048_v23 }
 0x227   :  { %v4998_v19 = vpop.f32.mrb[108].mxu0 }
 0x228   :  { %v958_v61 = vpop.f32.mrb[109].mxu0 }
 0x229   :  { %v5004_v52 = vpop.f32.mrb[110].mxu0 }
 0x22a   :  { %v961_v30 = vpop.f32.mrb[111].mxu0  ;;  %1512 = vrot.lane.b32.xlu0 %v5000_v21, %s3873_s20  ;;  %v1237_v43 = vpop.permute.xlu0 %1236 }
 0x22b   :  { %v1268_v4 = vsel %vm1243_vm1, %v3390_v55, %v1237_v43 }
 0x22f   :  { %v5008_v36 = vpop.f32.mrb[112].mxu0 }
 0x230   :  { %v966_v0 = vpop.f32.mrb[113].mxu0  ;;  %v1239_v5 = vpop.permute.xlu0 %1238 }
 0x231   :  { %v967_v10 = vpop.f32.mrb[114].mxu0  ;;  %v1270_v46 = vsel %vm426_vm0, %v1268_v4, %v1239_v5 }
 0x232   :  { %v968_v12 = vadd.f32 %v4986_v62, %v967_v10  ;;  %v969_v14 = vpop.f32.mrb[115].mxu0  ;;  %v1295_v17 = vpop.permute.xlu1 %1294 }
 0x234   :  { %v1052_v50 = vmax.f32 %v968_v12, 0.0  ;;  %v1242_v56 = vpop.permute.xlu0 %1241 }
 0x235   :  { %v5017_v57 = vsel %vm1249_vm2, %v1270_v46, %v1242_v56 }
 0x236   :  { %v3437_v24 = vpack.c.bf16 %v1052_v50, %v1052_v50  ;;  %v1582_v6 = vrot.slane %v5017_v57, 4 }
 0x237   :  { %v972_v59 = vpop.f32.mrb[116].mxu0 }
 0x238   :  { %v973_v38 = vadd.f32 %v4986_v62, %v972_v59  ;;  %v974_v44 = vpop.f32.mrb[117].mxu0  ;;  %1486 = vrot.lane.b32.xlu1 %v3437_v24, %s3872_s0  ;;  %v1618_v33 = vsel %vm1601_vm3, %v1374_v9, %v1582_v6  ;;  %v1297_v53 = vpop.permute.xlu1 %1296  ;;  %v957_v6 = vadd.f32 %v4986_v62, %v4998_v19 }
 0x239   :  { %v975_v40 = vpop.f32.mrb[118].mxu0  ;;  %1953 = vmatprep.mubr.bf16.mxu1 %v1618_v33  ;;  %v869_v44 = vadd.f32 %v4986_v62, %v4803_v1 }
 0x23a   :  { %v1053_v45 = vmax.f32 %v973_v38, 0.0  ;;  %v976_v11 = vadd.f32 %v4986_v62, %v975_v40  ;;  %v977_v47 = vpop.f32.mrb[119].mxu0  ;;  %v1354_v31 = vpop.permute.xlu0 %1353  ;;  %1954 = vmatmul.mubr.bf16.gmra.mrb[4].mxu1 %v4953_v34  ;;  %v1379_v34 = vsel %vm426_vm0, %v1377_v3, %v1349_v13  ;;  %v1324_v13 = vsel %vm1243_vm1, %v4787_v39, %v1295_v17 }
 0x23b   :  { %v1381_v2 = vsel %vm1249_vm2, %v1379_v34, %v1352_v35  ;;  %v1384_v5 = vsel %vm1243_vm1, %v4795_v28, %v1354_v31  ;;  %v1326_v14 = vsel %vm426_vm0, %v1324_v13, %v1297_v53  ;;  %v1049_v33 = vmax.f32 %v957_v6, 0.0 }
 0x23c   :  { %v5029_v51 = vpack.c.bf16 %v1053_v45, %v1053_v45  ;;  %v1054_v58 = vmax.f32 %v976_v11, 0.0  ;;  %v1589_v12 = vrot.slane %v1381_v2, 4  ;;  %v1027_v45 = vmax.f32 %v869_v44, 0.0 }
 0x23d   :  { %v3441_v11 = vpack.c.bf16 %v1049_v33, %v1049_v33 }
 0x23e   :  { %v3438_v29 = vpack.c.bf16 %v1054_v58, %v1054_v58  ;;  %1488 = vrot.lane.b32.xlu1 %v5029_v51, %s3871_s12  ;;  %v1300_v16 = vpop.permute.xlu0 %1299  ;;  %v1627_v24 = vsel %vm1601_vm3, %v4980_v41, %v1589_v12  ;;  %v960_v41 = vadd.f32 %v4986_v62, %v5004_v52  ;;  %v3393_v58 = vpack.c.bf16 %v1027_v45, %v1027_v45 }
 0x23f   :  { %v980_v15 = vpop.f32.mrb[120].mxu0  ;;  %v5056_v28 = vsel %vm1249_vm2, %v1326_v14, %v1300_v16 }
 0x240   :  { %v981_v63 = vadd.f32 %v4986_v62, %v980_v15  ;;  %v982_v23 = vpop.f32.mrb[121].mxu0  ;;  %1514 = vrot.lane.b32.xlu0 %v3438_v29, %s3872_s0  ;;  %v1050_v47 = vmax.f32 %v960_v41, 0.0 }
 0x241   :  { %v983_v61 = vpop.f32.mrb[122].mxu0  ;;  %v901_v23 = vadd.f32 %v4986_v62, %v4846_v32 }
 0x242   :  { %v1055_v30 = vmax.f32 %v981_v63, 0.0  ;;  %v984_v43 = vadd.f32 %v4986_v62, %v983_v61  ;;  %v985_v60 = vpop.f32.mrb[123].mxu0  ;;  %v1360_v0 = vpop.permute.xlu1 %1359  ;;  %v3442_v52 = vpack.c.bf16 %v1050_v47, %v1050_v47 }
 0x243   :  { %v1357_v55 = vpop.permute.xlu0 %1356  ;;  %v1035_v61 = vmax.f32 %v901_v23, 0.0 }
 0x244   :  { %v5043_v7 = vpack.c.bf16 %v1055_v30, %v1055_v30  ;;  %v1056_v22 = vmax.f32 %v984_v43, 0.0  ;;  %v1386_v10 = vsel %vm426_vm0, %v1384_v5, %v1357_v55 }
 0x245   :  { %v5049_v35 = vsel %vm1249_vm2, %v1386_v10, %v1360_v0  ;;  %v3396_v60 = vpack.c.bf16 %v1035_v61, %v1035_v61 }
 0x246   :  { %v3440_v42 = vpack.c.bf16 %v1056_v22, %v1056_v22  ;;  %v1590_v4 = vrot.slane %v5049_v35, 4  ;;  %1516 = vrot.lane.b32.xlu0 %v5043_v7, %s3871_s12 }
 0x247   :  { %v988_v46 = vpop.f32.mrb[124].mxu0 }
 0x248   :  { %v989_v50 = vadd.f32 %v4986_v62, %v988_v46  ;;  %v990_v56 = vpop.f32.mrb[125].mxu0  ;;  %1519 = vrot.lane.b32.xlu1 %v3440_v42, %s3873_s20  ;;  %v1630_v39 = vsel %vm1601_vm3, %v5056_v28, %v1590_v4 }
 0x249   :  { %1961 = vmatprep.mubr.bf16.mxu1 %v1630_v39  ;;  %v991_v26 = vpop.f32.mrb[126].mxu0 }
 0x24a   :  { %1962 = vmatmul.mubr.bf16.gmra.mrb[8].mxu1 %v1627_v24  ;;  %v993_v9 = vpop.f32.mrb[127].mxu0  ;;  %1491 = vrot.lane.b32.xlu0 %v3438_v29, %s3873_s20  ;;  %v1057_v59 = vmax.f32 %v989_v50, 0.0  ;;  %v992_v38 = vadd.f32 %v4986_v62, %v991_v26  ;;  %v1391_v31 = vpop.permute.xlu0 %1390 }
 0x24b   :  { %v1407_v53 = vsel %vm1243_vm1, %v3393_v58, %v1391_v31 }
 0x24c   :  { %1483 = vrot.lane.b32.xlu1 %v4976_v18, %s3873_s20  ;;  %v3443_v19 = vpack.c.bf16 %v1057_v59, %v1057_v59  ;;  %v1058_v17 = vmax.f32 %v992_v38, 0.0  ;;  %v1576_v38 = vrot.slane %v5056_v28, 4 }
 0x24e   :  { %1543 = vrot.lane.b32.xlu0 %v3440_v42, %s3872_s0  ;;  %v3444_v18 = vpack.c.bf16 %v1058_v17, %v1058_v17  ;;  %v1612_v28 = vsel %vm1601_vm3, %v5017_v57, %v1576_v38  ;;  %v965_v57 = vadd.f32 %v4986_v62, %v5008_v36 }
 0x250   :  { %1535 = vrot.lane.b32.xlu1 %v5000_v21, %s3872_s0  ;;  %v1393_v40 = vpop.permute.xlu1 %1392 }
 0x251   :  { %v1409_v29 = vsel %vm426_vm0, %v1407_v53, %v1393_v40 }
 0x252   :  { %1546 = vrot.lane.b32.xlu0 %v3443_v19, %s3871_s12 }
 0x254   :  { %1538 = vrot.lane.b32.xlu1 %v3441_v11, %s3871_s12  ;;  %v1420_v1 = vpop.permute.xlu1 %1419 }
 0x255   :  { %v1435_v10 = vsel %vm1243_vm1, %v4817_v48, %v1420_v1 }
 0x256   :  { %1549 = vrot.lane.b32.xlu0 %v3444_v18, %s3873_s20 }
 0x258   :  { %1541 = vrot.lane.b32.xlu1 %v3442_v52, %s3873_s20  ;;  %v1396_v21 = vpop.permute.xlu1 %1395  ;;  %v1422_v63 = vpop.permute.xlu0 %1421 }
 0x259   :  { %v1411_v16 = vsel %vm1249_vm2, %v1409_v29, %v1396_v21  ;;  %v1437_v12 = vsel %vm426_vm0, %v1435_v10, %v1422_v63  ;;  %v1051_v21 = vmax.f32 %v965_v57, 0.0  ;;  %v3782_v57 = vld [vmem:[%s5466_s5 + $0x10] sm:$0xff]  }
 0x25a   :  { %v1583_v15 = vrot.slane %v1411_v16, 4 }
 0x25b   :  { %v3402_v23 = vpack.c.bf16 %v1051_v21, %v1051_v21  ;;  %v3786_v21 = vld [vmem:[%s5466_s5 + $0x20] sm:$0xff]  }
 0x25c   :  { %v1621_v3 = vsel %vm1601_vm3, %v1381_v2, %v1583_v15  ;;  %v1425_v34 = vpop.permute.xlu0 %1424 }
 0x25d   :  { %v1439_v32 = vsel %vm1249_vm2, %v1437_v12, %v1425_v34 }
 0x25e   :  { %v1597_v56 = vrot.slane %v1439_v32, 4 }
 0x260   :  { %v1639_v9 = vsel %vm1601_vm3, %v1411_v16, %v1597_v56 }
 0x26a   :  { %v1399_v30 = vpop.permute.xlu1 %1398 }
 0x26b   :  { %v1414_v5 = vsel %vm1243_vm1, %v3396_v60, %v1399_v30 }
 0x270   :  { %v1401_v0 = vpop.permute.xlu1 %1400 }
 0x271   :  { %v1416_v55 = vsel %vm426_vm0, %v1414_v5, %v1401_v0 }
 0x272   :  { %v1427_v43 = vpop.permute.xlu0 %1426 }
 0x273   :  { %v1442_v14 = vsel %vm1243_vm1, %v4863_v54, %v1427_v43 }
 0x276   :  { %v1404_v22 = vpop.permute.xlu0 %1403 }
 0x277   :  { %v1418_v2 = vsel %vm1249_vm2, %v1416_v55, %v1404_v22 }
 0x278   :  { %v1584_v13 = vrot.slane %v1418_v2, 4 }
 0x27a   :  { %v1432_v42 = vpop.permute.xlu1 %1431  ;;  %v1429_v4 = vpop.permute.xlu0 %1428  ;;  %v1624_v46 = vsel %vm1601_vm3, %v5049_v35, %v1584_v13 }
 0x27b   :  { %v1444_v50 = vsel %vm426_vm0, %v1442_v14, %v1429_v4 }
 0x27c   :  { %v1446_v48 = vsel %vm1249_vm2, %v1444_v50, %v1432_v42 }
 0x27d   :  { %v1598_v39 = vrot.slane %v1446_v48, 4 }
 0x27e   :  { %v1448_v26 = vpop.permute.xlu1 %1447  ;;  %v1456_v24 = vpop.permute.xlu0 %1455 }
 0x27f   :  { %v1642_v6 = vsel %vm1601_vm3, %v1418_v2, %v1598_v39  ;;  %v1465_v35 = vsel %vm1243_vm1, %v4827_v25, %v1448_v26  ;;  %v1472_v44 = vsel %vm1243_vm1, %v4899_v8, %v1456_v24 }
 0x280   :  { %1969 = vmatprep.mubr.bf16.mxu1 %v1642_v6 }
 0x281   :  { %1970 = vmatmul.mubr.bf16.gmra.mrb[12].mxu1 %v1639_v9 }
 0x282   :  { %v1451_v54 = vpop.permute.xlu1 %1450  ;;  %v1459_v59 = vpop.permute.xlu0 %1458 }
 0x283   :  { %v1467_v33 = vsel %vm426_vm0, %v1465_v35, %v1451_v54  ;;  %v1474_v41 = vsel %vm426_vm0, %v1472_v44, %v1459_v59 }
 0x286   :  { %v1454_v19 = vpop.permute.xlu1 %1453  ;;  %v1462_v17 = vpop.permute.xlu0 %1461 }
 0x287   :  { %v1476_v40 = vsel %vm1249_vm2, %v1474_v41, %v1462_v17  ;;  %v1469_v45 = vsel %vm1249_vm2, %v1467_v33, %v1454_v19 }
 0x288   :  { %1977 = vmatprep.mubr.bf16.mxu1 %v1476_v40  ;;  %v1592_v25 = vrot.slane %v1476_v40, 4  ;;  %v1591_v11 = vrot.slane %v1469_v45, 4 }
 0x289   :  { %1978 = vmatmul.mubr.bf16.gmra.mrb[16].mxu1 %v1469_v45 }
 0x28a   :  { %2017 = vmatprep.mubr.bf16.mxu1 %v1612_v28  ;;  %v1636_v8 = vsel %vm1601_vm3, %v1446_v48, %v1592_v25  ;;  %v1633_v47 = vsel %vm1601_vm3, %v1439_v32, %v1591_v11  ;;  %v1479_v18 = vpop.permute.xlu0 %1478 }
 0x290   :  { %v1481_v31 = vpop.permute.xlu1 %1480 }
 0x291   :  { %2018 = vmatmul.mubr.bf16.vlgmr.msra.gmra.mrb[20].mxu1 %v4994_v37  ;;  %v933_v37 = vadd.f32 %v4986_v62, %v4929_v20 }
 0x292   :  { %2025 = vmatprep.mubr.bf16.mxu1 %v1624_v46 }
 0x293   :  { %v1043_v15 = vmax.f32 %v933_v37, 0.0  ;;  %v3784_v37 = vld [vmem:[%s5466_s5 + $0x18] sm:$0xff]  }
 0x294   :  { %v1508_v58 = vpop.permute.xlu1 %1507 }
 0x295   :  { %v1523_v34 = vsel %vm1243_vm1, %v4967_v27, %v1508_v58  ;;  %v3399_v43 = vpack.c.bf16 %v1043_v15, %v1043_v15  ;;  %v3780_v58 = vld [vmem:[%s5466_s5 + $0x8] sm:$0xff]  }
 0x296   :  { %v3788_v15 = vld [vmem:[%s5466_s5 + $0x28] sm:$0xff]  }
 0x297   :  { %v1495_v55 = vsel %vm1243_vm1, %v3399_v43, %v1479_v18  ;;  %v3777_v18 = vld [vmem:[%s5466_s5 + $0x40] sm:$0xff]  }
 0x298   :  { %v1510_v1 = vpop.permute.xlu0 %1509  ;;  %v1497_v22 = vsel %vm426_vm0, %v1495_v55, %v1481_v31  ;;  %v3778_v31 = vld [vmem:[%s5466_s5] sm:$0xff]   ;;  %3546 = vmatprep.subr.bf16.mxu1 %v3777_v18  ;;  %v3791_v55 = vld [vmem:[%s5466_s5 + $0x78] sm:$0xff]  }
 0x299   :  { %2026 = vmatmul.mubr.bf16.gmra.mrb[24].mxu1 %v1621_v3  ;;  %v1525_v36 = vsel %vm426_vm0, %v1523_v34, %v1510_v1  ;;  %v3779_v1 = vld [vmem:[%s5466_s5 + $0x48] sm:$0xff]  }
 0x29a   :  { %2033 = vmatprep.mubr.bf16.mxu1 %v1636_v8  ;;  %3547 = vmatpush3.bf16.msra.mxu1 %v3778_v31 }
 0x29b   :  { %3548 = vmatprep.subr.bf16.mxu1 %v3779_v1 }
 0x29c   :  { %v1513_v52 = vpop.permute.xlu0 %1512 }
 0x29d   :  { %v1527_v20 = vsel %vm1249_vm2, %v1525_v36, %v1513_v52  ;;  %v3781_v52 = vld [vmem:[%s5466_s5 + $0x50] sm:$0xff]  }
 0x29e   :  { %v1599_v10 = vrot.slane %v1527_v20, 4  ;;  %3549 = vmatpush3.bf16.msra.mxu1 %v3780_v58 }
 0x29f   :  { %3550 = vmatprep.subr.bf16.mxu1 %v3781_v52 }
 0x2a1   :  { %2034 = vmatmul.mubr.bf16.gmra.mrb[28].mxu1 %v1633_v47 }
 0x2a2   :  { %3551 = vmatpush3.bf16.msra.mxu1 %v3782_v57 }
 0x2aa   :  { %v1487_v53 = vpop.permute.xlu1 %1486 }
 0x2ab   :  { %v1502_v62 = vsel %vm1243_vm1, %v3402_v23, %v1487_v53  ;;  %v3783_v53 = vld [vmem:[%s5466_s5 + $0x58] sm:$0xff]  }
 0x2ac   :  { %3552 = vmatprep.subr.bf16.mxu1 %v3783_v53 }
 0x2ad   :  { %3553 = vmatpush3.bf16.msra.mxu1 %v3784_v37 }
 0x2b0   :  { %v1489_v16 = vpop.permute.xlu1 %1488 }
 0x2b1   :  { %v1504_v0 = vsel %vm426_vm0, %v1502_v62, %v1489_v16  ;;  %v3787_v16 = vld [vmem:[%s5466_s5 + $0x68] sm:$0xff]  }
 0x2b2   :  { %v1515_v29 = vpop.permute.xlu0 %1514 }
 0x2b3   :  { %v1530_v3 = vsel %vm1243_vm1, %v5029_v51, %v1515_v29  ;;  %v3785_v29 = vld [vmem:[%s5466_s5 + $0x60] sm:$0xff]  }
 0x2b4   :  { %3554 = vmatprep.subr.bf16.mxu1 %v3785_v29 }
 0x2b5   :  { %3555 = vmatpush3.bf16.msra.mxu1 %v3786_v21 }
 0x2b6   :  { %3556 = vmatprep.subr.bf16.mxu1 %v3787_v16 }
 0x2b8   :  { %v1517_v63 = vpop.permute.xlu0 %1516 }
 0x2b9   :  { %v1532_v61 = vsel %vm426_vm0, %v1530_v3, %v1517_v63  ;;  %3557 = vmatpush3.bf16.msra.mxu1 %v3788_v15 }
 0x2ba   :  { %v1520_v30 = vpop.permute.xlu1 %1519 }
 0x2bb   :  { %v1534_v60 = vsel %vm1249_vm2, %v1532_v61, %v1520_v30 }
 0x2bc   :  { %v1600_v51 = vrot.slane %v1534_v60, 4  ;;  %v1492_v5 = vpop.permute.xlu0 %1491 }
 0x2bd   :  { %v1506_v27 = vsel %vm1249_vm2, %v1504_v0, %v1492_v5  ;;  %v5197_v0 = vld [vmem:[%s5467_s4] ss:$0 sm:$0xff]  ;;  %v3790_v5 = vld [vmem:[%s5466_s5 + $0x30] sm:$0xff]  }
 0x2be   :  { %v1484_v2 = vpop.permute.xlu1 %1483  ;;  %v1648_v12 = vsel %vm1601_vm3, %v1506_v27, %v1600_v51  ;;  %v3789_v51 = vld [vmem:[%s5466_s5 + $0x70] sm:$0xff]  }
 0x2bf   :  { %v1499_v13 = vsel %vm1249_vm2, %v1497_v22, %v1484_v2  ;;  %2041 = vmatprep.mubr.bf16.mxu1 %v1648_v12  ;;  %3558 = vmatprep.subr.bf16.mxu1 %v3789_v51 }
 0x2c0   :  { %v1544_v32 = vpop.permute.xlu0 %1543  ;;  %v1645_v14 = vsel %vm1601_vm3, %v1499_v13, %v1599_v10  ;;  %3559 = vmatpush3.bf16.msra.mxu1 %v3790_v5  ;;  %v3792_v13 = vld [vmem:[%s5466_s5 + $0x38] sm:$0xff]  }
 0x2c1   :  { %2042 = vmatmul.mubr.bf16.gmra.mrb[32].mxu1 %v1645_v14  ;;  %v1563_v50 = vsel %vm1243_vm1, %v5043_v7, %v1544_v32  ;;  %3560 = vmatprep.subr.bf16.mxu1 %v3791_v55 }
 0x2c2   :  { %v1536_v42 = vpop.permute.xlu1 %1535 }
 0x2c3   :  { %v1555_v39 = vsel %vm1243_vm1, %v4991_v49, %v1536_v42 }
 0x2c4   :  { %v1547_v4 = vpop.permute.xlu0 %1546  ;;  %3561 = vmatpush3.bf16.msra.mxu1 %v3792_v13  ;;  %v3798_v13 = vld [vmem:[%s5466_s5 + $0x90] sm:$0xff]  }
 0x2c5   :  { %v1565_v56 = vsel %vm426_vm0, %v1563_v50, %v1547_v4 }
 0x2c6   :  { %v1539_v46 = vpop.permute.xlu1 %1538 }
 0x2c7   :  { %v1557_v24 = vsel %vm426_vm0, %v1555_v39, %v1539_v46 }
 0x2c8   :  { %v1550_v48 = vpop.permute.xlu0 %1549 }
 0x2c9   :  { %v1567_v26 = vsel %vm1249_vm2, %v1565_v56, %v1550_v48 }
 0x2ca   :  { %v1542_v6 = vpop.permute.xlu1 %1541  ;;  %2049 = vmatprep.mubr.bf16.mxu1 %v1567_v26 }
 0x2cb   :  { %v1559_v9 = vsel %vm1249_vm2, %v1557_v24, %v1542_v6 }
 0x2cc   :  { %2050 = vmatmul.mubr.bf16.gmra.mrb[36].mxu1 %v1559_v9 }
 0x2d5   :  { %v3470_v54 = vpop.f32.mrb[0].mxu1 }
 0x2d6   :  { %v3471_v59 = vpop.f32.mrb[1].mxu1 }
 0x2d7   :  { %v3472_v38 = vadd.f32 %v3471_v59, %v3470_v54  ;;  %v3473_v35 = vpop.f32.mrb[2].mxu1 }
 0x2d8   :  { %v3474_v7 = vpop.f32.mrb[3].mxu1 }
 0x2d9   :  { %v5144_v44 = vadd.f32 %v3474_v7, %v3473_v35  ;;  %v1948_v10 = vadd.f32 %v3472_v38, %v5197_v0  ;;  %v3793_v7 = vld [vmem:[%s5466_s5 + $0xc0] sm:$0xff]  }
 0x2da   :  { %3568 = vmatprep.subr.bf16.mxu1 %v3793_v7  ;;  %v3809_v7 = vld [vmem:[%s5466_s5 + $0x100] sm:$0xff]  }
 0x2db   :  { %v1951_v14 = vadd.f32 %v5144_v44, %v5197_v0 }
 0x30d   :  { %v3476_v33 = vpop.f32.mrb[4].mxu1 }
 0x30e   :  { %v3477_v41 = vpop.f32.mrb[5].mxu1 }
 0x30f   :  { %v5146_v19 = vadd.f32 %v3477_v41, %v3476_v33  ;;  %v3479_v49 = vpop.f32.mrb[6].mxu1 }
 0x310   :  { %v3480_v17 = vpop.f32.mrb[7].mxu1 }
 0x311   :  { %v5148_v40 = vadd.f32 %v3480_v17, %v3479_v49  ;;  %v1956_v39 = vadd.f32 %v5146_v19, %v5197_v0 }
 0x313   :  { %v1959_v54 = vadd.f32 %v5148_v40, %v5197_v0 }
 0x31d   :  { %v3482_v45 = vpop.f32.mrb[8].mxu1 }
 0x31e   :  { %v3483_v28 = vpop.f32.mrb[9].mxu1 }
 0x31f   :  { %v5150_v25 = vadd.f32 %v3483_v28, %v3482_v45  ;;  %v3485_v8 = vpop.f32.mrb[10].mxu1 }
 0x320   :  { %v3486_v11 = vpop.f32.mrb[11].mxu1 }
 0x321   :  { %v5152_v47 = vadd.f32 %v3486_v11, %v3485_v8  ;;  %v1964_v19 = vadd.f32 %v5150_v25, %v5197_v0 }
 0x323   :  { %v1967_v28 = vadd.f32 %v5152_v47, %v5197_v0 }
 0x354   :  { %v3488_v3 = vpop.f32.mrb[12].mxu1 }
 0x355   :  { %v3489_v63 = vpop.f32.mrb[13].mxu1 }
 0x356   :  { %v3490_v23 = vadd.f32 %v3489_v63, %v3488_v3  ;;  %v3491_v34 = vpop.f32.mrb[14].mxu1 }
 0x357   :  { %v3492_v61 = vpop.f32.mrb[15].mxu1 }
 0x358   :  { %v5190_v36 = vadd.f32 %v3492_v61, %v3491_v34  ;;  %v1972_v25 = vadd.f32 %v3490_v23, %v5197_v0 }
 0x35a   :  { %v1975_v47 = vadd.f32 %v5190_v36, %v5197_v0 }
 0x35c   :  { %v3494_v30 = vpop.f32.mrb[16].mxu1 }
 0x35d   :  { %v3495_v43 = vpop.f32.mrb[17].mxu1 }
 0x35e   :  { %v5192_v20 = vadd.f32 %v3495_v43, %v3494_v30  ;;  %v3497_v62 = vpop.f32.mrb[18].mxu1 }
 0x35f   :  { %v3498_v60 = vpop.f32.mrb[19].mxu1 }
 0x360   :  { %v1980_v61 = vadd.f32 %v5192_v20, %v5197_v0  ;;  %v3795_v20 = vld [vmem:[%s5466_s5 + $0xc8] sm:$0xff]  }
 0x364   :  { %v3516_v27 = vpop.f32.mrb[20].mxu1 }
 0x365   :  { %v3517_v22 = vpop.f32.mrb[21].mxu1 }
 0x366   :  { %v3518_v2 = vadd.f32 %v3517_v22, %v3516_v27  ;;  %v3519_v12 = vpop.f32.mrb[22].mxu1  ;;  %v3794_v22 = vld [vmem:[%s5466_s5 + $0x80] sm:$0xff]  }
 0x367   :  { %v3520_v32 = vpop.f32.mrb[23].mxu1 }
 0x368   :  { %v2020_v42 = vadd.f32 %v3518_v2, %v1948_v10  ;;  %v3521_v4 = vadd.f32 %v3520_v32, %v3519_v12  ;;  %v3796_v2 = vld [vmem:[%s5466_s5 + $0x88] sm:$0xff]   ;;  %v3797_v12 = vld [vmem:[%s5466_s5 + $0xd0] sm:$0xff]   ;;  %v3799_v32 = vld [vmem:[%s5466_s5 + $0xd8] sm:$0xff]  }
 0x36a   :  { %v2023_v46 = vadd.f32 %v3521_v4, %v1951_v14  ;;  %v2057_v51 = vmax.f32 %v2020_v42, 0.0  ;;  %v3800_v14 = vld [vmem:[%s5466_s5 + $0x98] sm:$0xff]   ;;  %v3801_v42 = vld [vmem:[%s5466_s5 + $0xe0] sm:$0xff]  }
 0x36b   :  { %v3802_v4 = vld [vmem:[%s5466_s5 + $0xa0] sm:$0xff]  }
 0x36c   :  { %v2058_v50 = vmax.f32 %v2023_v46, 0.0  ;;  %v3522_v56 = vpop.f32.mrb[24].mxu1  ;;  %v3445_v55 = vpack.c.bf16 %v2057_v51, %v2057_v51  ;;  %v3803_v46 = vld [vmem:[%s5466_s5 + $0xe8] sm:$0xff]  }
 0x36d   :  { %v3523_v48 = vpop.f32.mrb[25].mxu1 }
 0x36e   :  { %v3450_v26 = vpack.c.bf16 %v2058_v50, %v2058_v50  ;;  %v3524_v24 = vadd.f32 %v3523_v48, %v3522_v56  ;;  %v3525_v6 = vpop.f32.mrb[26].mxu1  ;;  %v3804_v50 = vld [vmem:[%s5466_s5 + $0xa8] sm:$0xff]   ;;  %v3805_v56 = vld [vmem:[%s5466_s5 + $0xf0] sm:$0xff]  }
 0x36f   :  { %v3526_v9 = vpop.f32.mrb[27].mxu1  ;;  %v3806_v48 = vld [vmem:[%s5466_s5 + $0xb0] sm:$0xff]  }
 0x370   :  { %v2028_v59 = vadd.f32 %v3524_v24, %v1956_v39  ;;  %v3527_v38 = vadd.f32 %v3526_v9, %v3525_v6  ;;  %2091 = vrot.lane.b32.xlu1 %v3450_v26, %s3871_s12  ;;  %v3807_v39 = vld [vmem:[%s5466_s5 + $0xf8] sm:$0xff]   ;;  %v3874_v24 = vmov 0.0  }
 0x371   :  { %v3808_v26 = vld [vmem:[%s5466_s5 + $0xb8] sm:$0xff]  }
 0x372   :  { %v2031_v35 = vadd.f32 %v3527_v38, %v1959_v54  ;;  %v2059_v60 = vmax.f32 %v2028_v59, 0.0 }
 0x374   :  { %v2060_v44 = vmax.f32 %v2031_v35, 0.0  ;;  %v3528_v33 = vpop.f32.mrb[28].mxu1  ;;  %v3446_v36 = vpack.c.bf16 %v2059_v60, %v2059_v60 }
 0x375   :  { %v3529_v41 = vpop.f32.mrb[29].mxu1 }
 0x376   :  { %v3451_v49 = vpack.c.bf16 %v2060_v44, %v2060_v44  ;;  %v3530_v17 = vadd.f32 %v3529_v41, %v3528_v33  ;;  %v3531_v45 = vpop.f32.mrb[30].mxu1  ;;  %v3810_v41 = vld [vmem:[%s5466_s5 + $0x108] sm:$0xff]  }
 0x377   :  { %v3532_v40 = vpop.f32.mrb[31].mxu1 }
 0x378   :  { %v5226_v8 = vadd.f32 %v3530_v17, %v1964_v19  ;;  %v3533_v11 = vadd.f32 %v3532_v40, %v3531_v45  ;;  %2094 = vrot.lane.b32.xlu0 %v3451_v49, %s3871_s12  ;;  %v3811_v19 = vld [vmem:[%s5466_s5 + $0x110] sm:$0xff]   ;;  %v3812_v49 = vld [vmem:[%s5466_s5 + $0x118] sm:$0xff]   ;;  %v5529_v40 = vmov 0  }
 0x37a   :  { %v2039_v18 = vadd.f32 %v3533_v11, %v1967_v28  ;;  %v2061_v9 = vmax.f32 %v5226_v8, 0.0  ;;  %v3813_v28 = vld [vmem:[%s5468_s7] ss:$16 sps:$4 sm:$0xff]   ;;  %v3815_v8 = vld [vmem:[%s5468_s7 + $0x4] ss:$16 sps:$4 sm:$0xff]  }
 0x37b   :  { %v3818_v11 = vld [vmem:[%s5468_s7 + $0x24] ss:$16 sps:$4 sm:$0xff]  }
 0x37c   :  { %v2062_v31 = vmax.f32 %v2039_v18, 0.0  ;;  %v3447_v38 = vpack.c.bf16 %v2061_v9, %v2061_v9  ;;  %v3816_v18 = vld [vmem:[%s5468_s7 + $0x20] ss:$16 sps:$4 sm:$0xff]   ;;  %v3851_v9 = vld [vmem:[%s5469_s9 + $0x78] sm:$0xff]  }
 0x37e   :  { %v3452_v1 = vpack.c.bf16 %v2062_v31, %v2062_v31  ;;  %v3821_v31 = vld [vmem:[%s5468_s7 + $0x44] ss:$16 sps:$4 sm:$0xff]  }
 0x380   :  { %2097 = vrot.lane.b32.xlu1 %v3452_v1, %s3871_s12  ;;  %v3819_v1 = vld [vmem:[%s5468_s7 + $0x40] ss:$16 sps:$4 sm:$0xff]  }
 0x394   :  { %v3534_v58 = vpop.f32.mrb[32].mxu1 }
 0x395   :  { %v3535_v52 = vpop.f32.mrb[33].mxu1 }
 0x396   :  { %v3536_v57 = vadd.f32 %v3535_v52, %v3534_v58  ;;  %v3537_v53 = vpop.f32.mrb[34].mxu1  ;;  %v3824_v58 = vld [vmem:[%s5468_s7 + $0x64] ss:$16 sps:$4 sm:$0xff]   ;;  %v3822_v52 = vld [vmem:[%s5468_s7 + $0x60] ss:$16 sps:$4 sm:$0xff]  }
 0x397   :  { %v3538_v37 = vpop.f32.mrb[35].mxu1 }
 0x398   :  { %v2044_v29 = vadd.f32 %v3536_v57, %v1972_v25  ;;  %v3539_v21 = vadd.f32 %v3538_v37, %v3537_v53  ;;  %v3827_v25 = vld [vmem:[%s5468_s7 + $0xc] ss:$16 sps:$4 sm:$0xff]  }
 0x39a   :  { %v2047_v16 = vadd.f32 %v3539_v21, %v1975_v47  ;;  %v2063_v6 = vmax.f32 %v2044_v29, 0.0  ;;  %v3292_v21 = vld [vmem:[%s5470_s6] ss:$0 sm:$0xff] }
 0x39c   :  { %v2064_v15 = vmax.f32 %v2047_v16, 0.0  ;;  %v3448_v54 = vpack.c.bf16 %v2063_v6, %v2063_v6  ;;  %v3850_v6 = vld [vmem:[%s5469_s9 + $0x30] sm:$0xff]  }
 0x39e   :  { %v3453_v3 = vpack.c.bf16 %v2064_v15, %v2064_v15 }
 0x39f   :  { %v3540_v63 = vpop.f32.mrb[36].mxu1 }
 0x3a0   :  { %v3541_v34 = vpop.f32.mrb[37].mxu1  ;;  %2100 = vrot.lane.b32.xlu0 %v3453_v3, %s3871_s12 }
 0x3a1   :  { %v3542_v30 = vadd.f32 %v3541_v34, %v3540_v63  ;;  %v3543_v23 = vpop.f32.mrb[38].mxu1 }
 0x3a2   :  { %v3544_v43 = vpop.f32.mrb[39].mxu1 }
 0x3a3   :  { %v5236_v62 = vadd.f32 %v3542_v30, %v1980_v61 }
 0x3a5   :  { %v2065_v17 = vmax.f32 %v5236_v62, 0.0 }
 0x3a7   :  { %v3449_v45 = vpack.c.bf16 %v2065_v17, %v2065_v17 }
 0x3e2   :  { %v2092_v5 = vpop.permute.xlu1 %2091 }
 0x3e3   :  { %v2104_v0 = vsel %vm426_vm0, %v3445_v55, %v2092_v5  ;;  %v3825_v5 = vld [vmem:[%s5468_s7 + $0x8] ss:$16 sps:$4 sm:$0xff]  }
 0x3ea   :  { %v2095_v27 = vpop.permute.xlu0 %2094 }
 0x3eb   :  { %v2108_v10 = vsel %vm426_vm0, %v3446_v36, %v2095_v27  ;;  %v3830_v27 = vld [vmem:[%s5468_s7 + $0x2c] ss:$16 sps:$4 sm:$0xff]  }
 0x3ec   :  { %2448 = vmatprep.mubr.bf16.mxu1 %v2108_v10  ;;  %v3833_v10 = vld [vmem:[%s5468_s7 + $0x4c] ss:$16 sps:$4 sm:$0xff]  }
 0x3ed   :  { %2449 = vmatmul.mubr.bf16.vlgmr.msra.gmra.mrb[40].mxu1 %v2104_v0  ;;  %v3836_v0 = vld [vmem:[%s5468_s7 + $0x6c] ss:$16 sps:$4 sm:$0xff]  }
 0x3ee   :  { %3569 = vmatpush3.bf16.msra.mxu1 %v3794_v22  ;;  %v3828_v22 = vld [vmem:[%s5468_s7 + $0x28] ss:$16 sps:$4 sm:$0xff]  }
 0x3ef   :  { %3570 = vmatprep.subr.bf16.mxu1 %v3795_v20  ;;  %v3831_v20 = vld [vmem:[%s5468_s7 + $0x48] ss:$16 sps:$4 sm:$0xff]  }
 0x3f2   :  { %3571 = vmatpush3.bf16.msra.mxu1 %v3796_v2  ;;  %v2098_v59 = vpop.permute.xlu1 %2097  ;;  %v3834_v2 = vld [vmem:[%s5468_s7 + $0x68] ss:$16 sps:$4 sm:$0xff]  }
 0x3f3   :  { %3572 = vmatprep.subr.bf16.mxu1 %v3797_v12  ;;  %v2112_v33 = vsel %vm426_vm0, %v3447_v38, %v2098_v59  ;;  %v3837_v12 = vld [vmem:[%s5469_s9 + $0x40] sm:$0xff]   ;;  %v2556_v38 = vlaneseq }
 0x3f4   :  { %v3853_v59 = vld [vmem:[%s5469_s9 + $0xc0] sm:$0xff]  }
 0x3f6   :  { %3573 = vmatpush3.bf16.msra.mxu1 %v3798_v13  ;;  %v3838_v13 = vld [vmem:[%s5469_s9] sm:$0xff]  }
 0x3f7   :  { %3574 = vmatprep.subr.bf16.mxu1 %v3799_v32  ;;  %v3839_v32 = vld [vmem:[%s5469_s9 + $0x48] sm:$0xff]  }
 0x3fa   :  { %3575 = vmatpush3.bf16.msra.mxu1 %v3800_v14  ;;  %v3840_v14 = vld [vmem:[%s5469_s9 + $0x8] sm:$0xff]  }
 0x3fb   :  { %3576 = vmatprep.subr.bf16.mxu1 %v3801_v42  ;;  %v3841_v42 = vld [vmem:[%s5469_s9 + $0x50] sm:$0xff]  }
 0x3fe   :  { %3577 = vmatpush3.bf16.msra.mxu1 %v3802_v4  ;;  %v3842_v4 = vld [vmem:[%s5469_s9 + $0x10] sm:$0xff]  }
 0x3ff   :  { %3578 = vmatprep.subr.bf16.mxu1 %v3803_v46  ;;  %v3843_v46 = vld [vmem:[%s5469_s9 + $0x58] sm:$0xff]  }
 0x402   :  { %3579 = vmatpush3.bf16.msra.mxu1 %v3804_v50  ;;  %v3844_v50 = vld [vmem:[%s5469_s9 + $0x18] sm:$0xff]  }
 0x403   :  { %3580 = vmatprep.subr.bf16.mxu1 %v3805_v56  ;;  %v3845_v56 = vld [vmem:[%s5469_s9 + $0x60] sm:$0xff]  }
 0x406   :  { %3581 = vmatpush3.bf16.msra.mxu1 %v3806_v48  ;;  %v3846_v48 = vld [vmem:[%s5469_s9 + $0x20] sm:$0xff]  }
 0x407   :  { %3582 = vmatprep.subr.bf16.mxu1 %v3807_v39  ;;  %v3847_v39 = vld [vmem:[%s5469_s9 + $0x68] sm:$0xff]  }
 0x40a   :  { %3583 = vmatpush3.bf16.msra.mxu1 %v3808_v26  ;;  %v3848_v26 = vld [vmem:[%s5469_s9 + $0x28] sm:$0xff]  }
 0x40b   :  { %3639 = vmatprep.subr.bf16.mxu1 %v3874_v24 }
 0x412   :  { %v2101_v35 = vpop.permute.xlu0 %2100 }
 0x413   :  { %v2116_v44 = vsel %vm426_vm0, %v3448_v54, %v2101_v35  ;;  %v3852_v54 = vld [vmem:[%s5469_s9 + $0x38] sm:$0xff]   ;;  %v2557_v35 = vshrl.u32 %v2556_v38, 7 }
 0x414   :  { %2488 = vmatprep.mubr.bf16.mxu1 %v2116_v44  ;;  %v2554_v44 = vld [vmem:[%s5471_s8] sm:$0xf] }
 0x415   :  { %2489 = vmatmul.mubr.bf16.vlgmr.msra.gmra.mrb[44].mxu1 %v2112_v33  ;;  %v2562_v33 = vsub.s32 1, %v2557_v35 }
 0x416   :  { %3640 = vmatpush3.bf16.msra.mxu1 %v3809_v7  ;;  %3647 = vmatprep.mubr.msk.bf16.mxu1 %vm3875_vm4, %v3874_v24  ;;  %v2558_v7 = vsub.s32 0, %v2557_v35 }
 0x417   :  { %3641 = vmatprep.subr.bf16.mxu1 %v3874_v24 }
 0x41a   :  { %3642 = vmatpush3.bf16.msra.mxu1 %v3810_v41  ;;  %v2559_v41 = vrot.slane %v2554_v44, %v2558_v7 }
 0x41b   :  { %3643 = vmatprep.subr.bf16.mxu1 %v3874_v24 }
 0x41e   :  { %3644 = vmatpush3.bf16.msra.mxu1 %v3811_v19  ;;  %v2563_v19 = vrot.slane %v2554_v44, %v2562_v33 }
 0x41f   :  { %3645 = vmatprep.subr.bf16.mxu1 %v3874_v24  ;;  %v3849_v24 = vld [vmem:[%s5469_s9 + $0x70] sm:$0xff]  }
 0x422   :  { %3646 = vmatpush3.bf16.msra.mxu1 %v3812_v49 }
 0x423   :  { %2659 = vmatprep.subr.bf16.mxu1 %v3815_v8 }
 0x425   :  { %3648 = vmatmul.mubr.msk.bf16.vlgmr.msra.gmra.mrb[48].mxu1 %vm426_vm0, %v3449_v45 }
 0x426   :  { %2691 = vmatprep.mubr.bf16.mxu1 %v5529_v40  ;;  %2660 = vmatpush1.bf16.msra.mxu1 %v3813_v28 }
 0x427   :  { %2661 = vmatprep.subr.bf16.mxu1 %v3818_v11 }
 0x42a   :  { %2662 = vmatpush1.bf16.msra.mxu1 %v3816_v18 }
 0x42b   :  { %2663 = vmatprep.subr.bf16.mxu1 %v3821_v31 }
 0x42e   :  { %2664 = vmatpush1.bf16.msra.mxu1 %v3819_v1  ;;  %v3854_v1 = vld [vmem:[%s5469_s9 + $0x80] sm:$0xff]  }
 0x42f   :  { %2665 = vmatprep.subr.bf16.mxu1 %v3824_v58 }
 0x432   :  { %2666 = vmatpush1.bf16.msra.mxu1 %v3822_v52  ;;  %v3855_v52 = vld [vmem:[%s5469_s9 + $0xc8] sm:$0xff]  }
 0x433   :  { %2700 = vmatprep.subr.bf16.mxu1 %v3827_v25  ;;  %v3856_v25 = vld [vmem:[%s5469_s9 + $0x88] sm:$0xff]  }
 0x4c0   :  { %v3562_v57 = vpop.f32.mrb[40].mxu1 }
 0x4c1   :  { %v3563_v53 = vpop.f32.mrb[41].mxu1 }
 0x4c2   :  { %v3564_v37 = vadd.f32 %v3563_v53, %v3562_v57  ;;  %v3565_v47 = vpop.f32.mrb[42].mxu1  ;;  %v2570_v57 = vsub.s32 3, %v2557_v35  ;;  %v3857_v53 = vld [vmem:[%s5469_s9 + $0xd0] sm:$0xff]  }
 0x4c3   :  { %v3566_v29 = vpop.f32.mrb[43].mxu1  ;;  %v3858_v47 = vld [vmem:[%s5469_s9 + $0x90] sm:$0xff]  }
 0x4c4   :  { %v2451_v3 = vadd.f32 %v3564_v37, %v3292_v21  ;;  %v2571_v37 = vrot.slane %v2554_v44, %v2570_v57  ;;  %v3859_v29 = vld [vmem:[%s5469_s9 + $0xd8] sm:$0xff]  }
 0x4e8   :  { %v3584_v16 = vpop.f32.mrb[44].mxu1 }
 0x4e9   :  { %v3585_v15 = vpop.f32.mrb[45].mxu1 }
 0x4ea   :  { %v3586_v63 = vadd.f32 %v3585_v15, %v3584_v16  ;;  %v3587_v34 = vpop.f32.mrb[46].mxu1 }
 0x4eb   :  { %v3588_v61 = vpop.f32.mrb[47].mxu1 }
 0x4ec   :  { %v2491_v30 = vadd.f32 %v3586_v63, %v2451_v3  ;;  %v3860_v63 = vld [vmem:[%s5469_s9 + $0x98] sm:$0xff]   ;;  %v3861_v61 = vld [vmem:[%s5469_s9 + $0xe0] sm:$0xff]  }
 0x4f8   :  { %v2530_v23 = vpop.f32.mrb[48].mxu1 }
 0x4f9   :  { %v2531_v43 = vadd.f32 %v2530_v23, %v2491_v30  ;;  %v3649_v62 = vpop.f32.mrb[49].mxu1 }
 0x4fa   :  { %v2533_v60 = vpop.f32.mrb[50].mxu1  ;;  %v2566_v62 = vsub.s32 2, %v2557_v35 }
 0x4fb   :  { %v2536_v51 = vmax.f32 %v2531_v43, 0.0  ;;  %v3650_v36 = vpop.f32.mrb[51].mxu1  ;;  %v3862_v43 = vld [vmem:[%s5469_s9 + $0xa0] sm:$0xff]   ;;  %v3863_v60 = vld [vmem:[%s5469_s9 + $0xe8] sm:$0xff]  }
 0x4fc   :  { %v2567_v36 = vrot.slane %v2554_v44, %v2566_v62 }
 0x4fd   :  { %v2537_v55 = vpack.c.bf16 %v2536_v51, %v2536_v51  ;;  %v3864_v51 = vld [vmem:[%s5469_s9 + $0xa8] sm:$0xff]  }
 0x4ff   :  { %3346 = vmatmul.mubr.msk.bf16.vlgmr.msra.gmra.mrb[52].mxu1 %vm426_vm0, %v2537_v55 }
 0x500   :  { %2701 = vmatpush1.bf16.msra.mxu1 %v3825_v5  ;;  %2732 = vmatprep.mubr.bf16.mxu1 %v5529_v40  ;;  %v3865_v5 = vld [vmem:[%s5469_s9 + $0xf0] sm:$0xff]  }
 0x501   :  { %2702 = vmatprep.subr.bf16.mxu1 %v3830_v27 }
 0x504   :  { %2703 = vmatpush1.bf16.msra.mxu1 %v3828_v22  ;;  %v3867_v22 = vld [vmem:[%s5469_s9 + $0xf8] sm:$0xff]  }
 0x505   :  { %2704 = vmatprep.subr.bf16.mxu1 %v3833_v10  ;;  %v3868_v10 = vld [vmem:[%s5469_s9 + $0xb8] sm:$0xff]  }
 0x508   :  { %2705 = vmatpush1.bf16.msra.mxu1 %v3831_v20 }
 0x509   :  { %2706 = vmatprep.subr.bf16.mxu1 %v3836_v0 }
 0x50c   :  { %2707 = vmatpush1.bf16.msra.mxu1 %v3834_v2 }
 0x50d   :  { %3595 = vmatprep.subr.bf16.mxu1 %v3837_v12 }
 0x50f   :  { %3347 = vmatmul.mubr.msk.bf16.vlgmr.msra.gmra.mrb[56].mxu1 %vm426_vm0, %v2537_v55  ;;  %v3866_v55 = vld [vmem:[%s5469_s9 + $0xb0] sm:$0xff]  }
 0x510   :  { %3596 = vmatpush3.bf16.msra.mxu1 %v3838_v13 }
 0x511   :  { %3597 = vmatprep.subr.bf16.mxu1 %v3839_v32 }
 0x514   :  { %3598 = vmatpush3.bf16.msra.mxu1 %v3840_v14 }
 0x515   :  { %3599 = vmatprep.subr.bf16.mxu1 %v3841_v42  ;;  %v3348_v42 = vld [vmem:[%s5472_s10] ss:$0 sm:$0xff] }
 0x518   :  { %3600 = vmatpush3.bf16.msra.mxu1 %v3842_v4 }
 0x519   :  { %3601 = vmatprep.subr.bf16.mxu1 %v3843_v46 }
 0x51c   :  { %3602 = vmatpush3.bf16.msra.mxu1 %v3844_v50 }
 0x51d   :  { %3603 = vmatprep.subr.bf16.mxu1 %v3845_v56 }
 0x520   :  { %3604 = vmatpush3.bf16.msra.mxu1 %v3846_v48 }
 0x521   :  { %3605 = vmatprep.subr.bf16.mxu1 %v3847_v39 }
 0x524   :  { %3606 = vmatpush3.bf16.msra.mxu1 %v3848_v26 }
 0x525   :  { %3607 = vmatprep.subr.bf16.mxu1 %v3849_v24 }
 0x528   :  { %3608 = vmatpush3.bf16.msra.mxu1 %v3850_v6 }
 0x529   :  { %3609 = vmatprep.subr.bf16.mxu1 %v3851_v9 }
 0x52c   :  { %3610 = vmatpush3.bf16.msra.mxu1 %v3852_v54 }
 0x52d   :  { %3617 = vmatprep.subr.bf16.mxu1 %v3853_v59 }
 0x5d2   :  { %v2693_v49 = vpop.f32.mrb[52].mxu1 }
 0x5d3   :  { %v2694_v17 = vadd.f32 %v2693_v49, %v2559_v41  ;;  %v2695_v45 = vpop.f32.mrb[53].mxu1 }
 0x5d4   :  { %v2696_v40 = vadd.f32 %v2695_v45, %v2563_v19  ;;  %v2697_v28 = vpop.f32.mrb[54].mxu1 }
 0x5d5   :  { %v2741_v8 = vmax.f32 %v2694_v17, 0.0  ;;  %v2698_v11 = vpop.f32.mrb[55].mxu1 }
 0x5d6   :  { %v2742_v18 = vmax.f32 %v2696_v40, 0.0 }
 0x5d7   :  { %v2745_v58 = vpack.c.bf16 %v2741_v8, %v2741_v8 }
 0x5d8   :  { %v2746_v31 = vpack.c.bf16 %v2742_v18, %v2742_v18 }
 0x5da   :  { %3044 = vmatprep.mubr.bf16.mxu1 %v2746_v31 }
 0x5db   :  { %3045 = vmatmul.mubr.bf16.vlgmr.msra.gmra.mrb[60].mxu1 %v2745_v58 }
 0x5dc   :  { %3618 = vmatpush3.bf16.msra.mxu1 %v3854_v1 }
 0x5dd   :  { %3619 = vmatprep.subr.bf16.mxu1 %v3855_v52 }
 0x5e0   :  { %3620 = vmatpush3.bf16.msra.mxu1 %v3856_v25 }
 0x5e1   :  { %3621 = vmatprep.subr.bf16.mxu1 %v3857_v53 }
 0x5e2   :  { %v2734_v21 = vpop.f32.mrb[56].mxu1 }
 0x5e3   :  { %v2736_v16 = vpop.f32.mrb[57].mxu1  ;;  %v2735_v27 = vadd.f32 %v2734_v21, %v2567_v36 }
 0x5e4   :  { %v2737_v15 = vadd.f32 %v2736_v16, %v2571_v37  ;;  %v2738_v3 = vpop.f32.mrb[58].mxu1  ;;  %3622 = vmatpush3.bf16.msra.mxu1 %v3858_v47 }
 0x5e5   :  { %v2739_v34 = vpop.f32.mrb[59].mxu1  ;;  %3623 = vmatprep.subr.bf16.mxu1 %v3859_v29  ;;  %v2743_v20 = vmax.f32 %v2735_v27, 0.0 }
 0x5e6   :  { %v2744_v30 = vmax.f32 %v2737_v15, 0.0 }
 0x5e7   :  { %v2747_v0 = vpack.c.bf16 %v2743_v20, %v2743_v20 }
 0x5e8   :  { %v2748_v23 = vpack.c.bf16 %v2744_v30, %v2744_v30  ;;  %3624 = vmatpush3.bf16.msra.mxu1 %v3860_v63 }
 0x5e9   :  { %3625 = vmatprep.subr.bf16.mxu1 %v3861_v61 }
 0x5ea   :  { %3084 = vmatprep.mubr.bf16.mxu1 %v2748_v23 }
 0x5ec   :  { %3626 = vmatpush3.bf16.msra.mxu1 %v3862_v43 }
 0x5ed   :  { %3627 = vmatprep.subr.bf16.mxu1 %v3863_v60 }
 0x5f0   :  { %3628 = vmatpush3.bf16.msra.mxu1 %v3864_v51 }
 0x5f1   :  { %3629 = vmatprep.subr.bf16.mxu1 %v3865_v5 }
 0x5f4   :  { %3630 = vmatpush3.bf16.msra.mxu1 %v3866_v55 }
 0x5f5   :  { %3631 = vmatprep.subr.bf16.mxu1 %v3867_v22 }
 0x5f8   :  { %3632 = vmatpush3.bf16.msra.mxu1 %v3868_v10 }
 0x5fb   :  { %3085 = vmatmul.mubr.bf16.vlgmr.msra.gmra.mrb[64].mxu1 %v2747_v0 }
 0x6ae   :  { %v3611_v2 = vpop.f32.mrb[60].mxu1 }
 0x6af   :  { %v3612_v12 = vpop.f32.mrb[61].mxu1 }
 0x6b0   :  { %v3613_v13 = vadd.f32 %v3612_v12, %v3611_v2  ;;  %v3614_v32 = vpop.f32.mrb[62].mxu1 }
 0x6b1   :  { %v3615_v14 = vpop.f32.mrb[63].mxu1 }
 0x6b2   :  { %v3047_v50 = vadd.f32 %v3613_v13, %v3348_v42 }
 0x6ce   :  { %v3633_v4 = vpop.f32.mrb[64].mxu1 }
 0x6cf   :  { %v3634_v46 = vpop.f32.mrb[65].mxu1 }
 0x6d0   :  { %v3635_v56 = vadd.f32 %v3634_v46, %v3633_v4  ;;  %v3636_v48 = vpop.f32.mrb[66].mxu1 }
 0x6d1   :  { %v3637_v39 = vpop.f32.mrb[67].mxu1 }
 0x6d2   :  { %v3087_v26 = vadd.f32 %v3635_v56, %v3047_v50 }
 0x6d4   :  { %3092 = vst [vmem:[%s5473_s11] sm:$0xff] %v3087_v26 }

</bundles_post_ra>
